<compile_context>
chip_gen: v6e
topology: v6e:2x2x1
jax: 0.10.0
libtpu: 0.0.40
codegen_flags: <defaults>
</compile_context>

<pallas_src>
import jax
import jax.numpy as jnp
from jax.experimental import pallas as pl
from jax.experimental.pallas import tpu as pltpu


# ---------------------------------------------------------------------------
# Kernels
# ---------------------------------------------------------------------------

def conv_block_kernel(patches_ref, w_ref, scale_ref, shift_ref, out_ref):
    """Fused conv (im2col matmul) + folded-BN affine + ReLU + 2x2 max-pool.

    patches_ref : (4, Mp, K)  im2col patches, leading axis = pool-window position
    w_ref       : (K, C)      conv weight, reshaped/transposed (K = Cin*5*5)
    scale_ref   : (1, C)      gamma / sqrt(var + eps)
    shift_ref   : (1, C)      beta + (conv_bias - mean) * scale
    out_ref     : (Mp, C)     pooled activations, rows ordered (b, ph, pw)
    """
    w = w_ref[...]
    scale = scale_ref[...]
    shift = shift_ref[...]
    acc = None
    for q in range(4):  # static unroll over the 2x2 pool window positions
        y = jnp.dot(patches_ref[q], w, preferred_element_type=jnp.float32)
        y = jnp.maximum(y * scale + shift, 0.0)          # BN (folded) + ReLU
        acc = y if acc is None else jnp.maximum(acc, y)  # max-pool across window positions
    out_ref[...] = acc


def mlp_head_kernel(x_ref, w0_ref, b0_ref, w1_ref, b1_ref, w2_ref, b2_ref, out_ref):
    """fc -> ReLU -> fc1 -> ReLU -> fc2, fused in a single kernel."""
    h = jnp.dot(x_ref[...], w0_ref[...], preferred_element_type=jnp.float32) + b0_ref[...]
    h = jnp.maximum(h, 0.0)
    h = jnp.dot(h, w1_ref[...], preferred_element_type=jnp.float32) + b1_ref[...]
    h = jnp.maximum(h, 0.0)
    out_ref[...] = jnp.dot(h, w2_ref[...], preferred_element_type=jnp.float32) + b2_ref[...]


# ---------------------------------------------------------------------------
# pallas_call wrappers
# ---------------------------------------------------------------------------

_VMEM = pl.BlockSpec(memory_space=pltpu.MemorySpace.VMEM)


def conv_block(patches, w, scale, shift):
    _, mp, _ = patches.shape
    c = w.shape[1]
    return pl.pallas_call(
        conv_block_kernel,
        out_shape=jax.ShapeDtypeStruct((mp, c), jnp.float32),
        in_specs=[_VMEM, _VMEM, _VMEM, _VMEM],
        out_specs=_VMEM,
    )(patches, w, scale, shift)


def mlp_head(flat, w0, b0, w1, b1, w2, b2):
    b = flat.shape[0]
    nc = w2.shape[1]
    return pl.pallas_call(
        mlp_head_kernel,
        out_shape=jax.ShapeDtypeStruct((b, nc), jnp.float32),
        in_specs=[_VMEM] * 7,
        out_specs=_VMEM,
    )(flat, w0, b0, w1, b1, w2, b2)


# ---------------------------------------------------------------------------
# Layout plumbing (wrapper-side, no FLOPs)
# ---------------------------------------------------------------------------

def _im2col_pool_groups(x):
    """x: (B, Cin, H, W) -> (4, B*PH*PW, Cin*25) im2col patches for a 5x5 VALID conv
    followed by a 2x2/stride-2 max-pool. Feature order is (cin, ki, kj) to match
    PyTorch's weight.reshape(Cout, Cin*5*5)."""
    B, Cin, H, W = x.shape
    OH, OW = H - 4, W - 4
    PH, PW = OH // 2, OW // 2
    taps = [x[:, :, ki:ki + OH, kj:kj + OW] for ki in range(5) for kj in range(5)]
    pat = jnp.stack(taps, axis=-1)                  # (B, Cin, OH, OW, 25)
    pat = jnp.transpose(pat, (0, 2, 3, 1, 4))       # (B, OH, OW, Cin, 25)
    pat = pat.reshape(B, OH, OW, Cin * 25)
    groups = [pat[:, di::2, dj::2, :] for di in range(2) for dj in range(2)]
    patches = jnp.stack(groups, axis=0).reshape(4, B * PH * PW, Cin * 25)
    return patches, (B, PH, PW)


def lenet5_forward(x, p):
    x = x.astype(jnp.float32)
    B = x.shape[0]

    # Layer 1: Conv2d(1->6, 5) + BN + ReLU + MaxPool2x2  -- one fused Pallas call
    pat1, (_, PH1, PW1) = _im2col_pool_groups(x)
    y1 = conv_block(pat1, p["w1m"], p["scale1"], p["shift1"])        # (B*PH1*PW1, 6)
    fm1 = jnp.transpose(y1.reshape(B, PH1, PW1, 6), (0, 3, 1, 2))    # (B, 6, PH1, PW1)

    # Layer 2: Conv2d(6->16, 5) + BN + ReLU + MaxPool2x2 -- one fused Pallas call
    pat2, (_, PH2, PW2) = _im2col_pool_groups(fm1)
    y2 = conv_block(pat2, p["w2m"], p["scale2"], p["shift2"])        # (B*PH2*PW2, 16)
    fm2 = jnp.transpose(y2.reshape(B, PH2, PW2, 16), (0, 3, 1, 2))   # (B, 16, PH2, PW2)
    flat = fm2.reshape(B, -1)                                        # PyTorch flatten order (c,i,j)

    # Head: fc -> ReLU -> fc1 -> ReLU -> fc2 -- one fused Pallas call
    return mlp_head(flat, p["wfc"], p["bfc"], p["wfc1"], p["bfc1"], p["wfc2"], p["bfc2"])


# ---------------------------------------------------------------------------
# Parameters
# ---------------------------------------------------------------------------

def init_raw_params(key, num_classes, fc_in):
    """Deterministic synthetic parameters with the module's PyTorch shapes."""
    ks = jax.random.split(key, 18)

    def uni(k, shape, fan_in):
        b = 1.0 / float(fan_in) ** 0.5
        return jax.random.uniform(k, shape, jnp.float32, -b, b)

    return {
        # layer1: Conv2d(1, 6, 5) + BatchNorm2d(6)
        "w1": uni(ks[0], (6, 1, 5, 5), 25), "b1": uni(ks[1], (6,), 25),
        "g1": 1.0 + 0.1 * jax.random.normal(ks[2], (6,), jnp.float32),
        "be1": 0.1 * jax.random.normal(ks[3], (6,), jnp.float32),
        "m1": 0.1 * jax.random.normal(ks[4], (6,), jnp.float32),
        "v1": jax.random.uniform(ks[5], (6,), jnp.float32, 0.5, 1.5),
        # layer2: Conv2d(6, 16, 5) + BatchNorm2d(16)
        "w2": uni(ks[6], (16, 6, 5, 5), 150), "b2": uni(ks[7], (16,), 150),
        "g2": 1.0 + 0.1 * jax.random.normal(ks[8], (16,), jnp.float32),
        "be2": 0.1 * jax.random.normal(ks[9], (16,), jnp.float32),
        "m2": 0.1 * jax.random.normal(ks[10], (16,), jnp.float32),
        "v2": jax.random.uniform(ks[11], (16,), jnp.float32, 0.5, 1.5),
        # head: fc(fc_in,120), fc1(120,84), fc2(84,num_classes)
        "wfc": uni(ks[12], (120, fc_in), fc_in), "bfc": uni(ks[13], (120,), fc_in),
        "wfc1": uni(ks[14], (84, 120), 120), "bfc1": uni(ks[15], (84,), 120),
        "wfc2": uni(ks[16], (num_classes, 84), 84), "bfc2": uni(ks[17], (num_classes,), 84),
    }


def pack_params(raw, eps=1e-5):
    """Kernel-layout params: fold conv bias + eval-mode BN into per-channel scale/shift,
    pre-transpose all matmul weights to row-major x @ W form."""
    s1 = raw["g1"] / jnp.sqrt(raw["v1"] + eps)
    sh1 = raw["be1"] + (raw["b1"] - raw["m1"]) * s1
    s2 = raw["g2"] / jnp.sqrt(raw["v2"] + eps)
    sh2 = raw["be2"] + (raw["b2"] - raw["m2"]) * s2
    return {
        "w1m": raw["w1"].reshape(6, 25).T,            # (25, 6)
        "scale1": s1[None, :], "shift1": sh1[None, :],
        "w2m": raw["w2"].reshape(16, 150).T,          # (150, 16)
        "scale2": s2[None, :], "shift2": sh2[None, :],
        "wfc": raw["wfc"].T, "bfc": raw["bfc"][None, :],
        "wfc1": raw["wfc1"].T, "bfc1": raw["bfc1"][None, :],
        "wfc2": raw["wfc2"].T, "bfc2": raw["bfc2"][None, :],
    }


# ---------------------------------------------------------------------------
# Pure-JAX reference (independent path: lax.conv + reduce_window)
# ---------------------------------------------------------------------------

def reference_forward(x, raw, eps=1e-5):
    def block(y, w, b, g, be, m, v):
        y = jax.lax.conv_general_dilated(y, w, (1, 1), "VALID",
                                         dimension_numbers=("NCHW", "OIHW", "NCHW"))
        y = y + b[None, :, None, None]
        y = (y - m[None, :, None, None]) / jnp.sqrt(v[None, :, None, None] + eps)
        y = g[None, :, None, None] * y + be[None, :, None, None]
        y = jnp.maximum(y, 0.0)
        return jax.lax.reduce_window(y, -jnp.inf, jax.lax.max,
                                     (1, 1, 2, 2), (1, 1, 2, 2), "VALID")

    y = block(x.astype(jnp.float32), raw["w1"], raw["b1"], raw["g1"], raw["be1"], raw["m1"], raw["v1"])
    y = block(y, raw["w2"], raw["b2"], raw["g2"], raw["be2"], raw["m2"], raw["v2"])
    flat = y.reshape(x.shape[0], -1)
    h = jnp.maximum(flat @ raw["wfc"].T + raw["bfc"], 0.0)
    h = jnp.maximum(h @ raw["wfc1"].T + raw["bfc1"], 0.0)
    return h @ raw["wfc2"].T + raw["bfc2"]


# ---------------------------------------------------------------------------
# Main
# ---------------------------------------------------------------------------

if __name__ == "__main__":
    # Small shapes consistent with the module: batch=2, 1 input channel, 32x32 spatial,
    # num_classes=4.  (The real module uses 148x148 -> fc_in=18496; here fc_in=400.)
    key = jax.random.PRNGKey(0)
    kx, kp = jax.random.split(key)
    B, H, W, NC = 2, 32, 32, 4
    x = jax.random.normal(kx, (B, 1, H, W), dtype=jnp.float32)

    fc_in = 16 * (((H - 4) // 2 - 4) // 2) * (((W - 4) // 2 - 4) // 2)   # 16*5*5 = 400
    raw = init_raw_params(kp, NC, fc_in)
    params = pack_params(raw)

    forward = jax.jit(lenet5_forward)
    out = forward(x, params)
    jax.block_until_ready(out)

    ref = reference_forward(x, raw)
    assert out.shape == (B, NC)
    assert jnp.allclose(out, ref, atol=1e-3, rtol=1e-3), "LeNet5 Pallas output mismatch"
    print("KERNEL_OK")
</pallas_src>

<mosaic_0001>
module attributes {stable_mosaic.version = 11 : i64} {
  func.func @conv_block_kernel(%arg0: memref<4x392x25xf32, #tpu.memory_space<vmem>>, %arg1: memref<25x6xf32, #tpu.memory_space<vmem>>, %arg2: memref<1x6xf32, #tpu.memory_space<vmem>>, %arg3: memref<1x6xf32, #tpu.memory_space<vmem>>, %arg4: memref<392x6xf32, #tpu.memory_space<vmem>>) attributes {dimension_semantics = [], scalar_prefetch = 0 : i64, scratch_operands = 0 : i64, tpu.core_type = #tpu.core_type<tc>} {
    %c0 = arith.constant 0 : index
    %c0_0 = arith.constant 0 : index
    %0 = vector.load %arg1[%c0, %c0_0] : memref<25x6xf32, #tpu.memory_space<vmem>>, vector<25x6xf32>
    %c0_1 = arith.constant 0 : index
    %c0_2 = arith.constant 0 : index
    %1 = vector.load %arg2[%c0_1, %c0_2] : memref<1x6xf32, #tpu.memory_space<vmem>>, vector<1x6xf32>
    %c0_3 = arith.constant 0 : index
    %c0_4 = arith.constant 0 : index
    %2 = vector.load %arg3[%c0_3, %c0_4] : memref<1x6xf32, #tpu.memory_space<vmem>>, vector<1x6xf32>
    %c0_5 = arith.constant 0 : index
    %c0_6 = arith.constant 0 : index
    %c0_7 = arith.constant 0 : index
    %3 = vector.load %arg0[%c0_5, %c0_6, %c0_7] : memref<4x392x25xf32, #tpu.memory_space<vmem>>, vector<1x392x25xf32>
    %4 = vector.shape_cast %3 : vector<1x392x25xf32> to vector<392x25xf32>
    %cst = arith.constant dense<0.000000e+00> : vector<392x6xf32>
    %5 = tpu.matmul %4, %0, %cst {dimension_numbers = #tpu.dot_dimension_numbers<[1], [0], [0], [1], [0, 0, 1, 1], [], []>} : vector<392x25xf32>, vector<25x6xf32>, vector<392x6xf32> -> vector<392x6xf32>
    %6 = vector.broadcast %1 : vector<1x6xf32> to vector<392x6xf32>
    %7 = arith.mulf %5, %6 : vector<392x6xf32>
    %8 = vector.broadcast %2 : vector<1x6xf32> to vector<392x6xf32>
    %9 = arith.addf %7, %8 : vector<392x6xf32>
    %cst_8 = arith.constant 0.000000e+00 : f32
    %10 = vector.broadcast %cst_8 : f32 to vector<392x6xf32>
    %11 = arith.maximumf %9, %10 : vector<392x6xf32>
    %c1 = arith.constant 1 : index
    %c0_9 = arith.constant 0 : index
    %c0_10 = arith.constant 0 : index
    %12 = vector.load %arg0[%c1, %c0_9, %c0_10] : memref<4x392x25xf32, #tpu.memory_space<vmem>>, vector<1x392x25xf32>
    %13 = vector.shape_cast %12 : vector<1x392x25xf32> to vector<392x25xf32>
    %cst_11 = arith.constant dense<0.000000e+00> : vector<392x6xf32>
    %14 = tpu.matmul %13, %0, %cst_11 {dimension_numbers = #tpu.dot_dimension_numbers<[1], [0], [0], [1], [0, 0, 1, 1], [], []>} : vector<392x25xf32>, vector<25x6xf32>, vector<392x6xf32> -> vector<392x6xf32>
    %15 = vector.broadcast %1 : vector<1x6xf32> to vector<392x6xf32>
    %16 = arith.mulf %14, %15 : vector<392x6xf32>
    %17 = vector.broadcast %2 : vector<1x6xf32> to vector<392x6xf32>
    %18 = arith.addf %16, %17 : vector<392x6xf32>
    %cst_12 = arith.constant 0.000000e+00 : f32
    %19 = vector.broadcast %cst_12 : f32 to vector<392x6xf32>
    %20 = arith.maximumf %18, %19 : vector<392x6xf32>
    %21 = arith.maximumf %11, %20 : vector<392x6xf32>
    %c2 = arith.constant 2 : index
    %c0_13 = arith.constant 0 : index
    %c0_14 = arith.constant 0 : index
    %22 = vector.load %arg0[%c2, %c0_13, %c0_14] : memref<4x392x25xf32, #tpu.memory_space<vmem>>, vector<1x392x25xf32>
    %23 = vector.shape_cast %22 : vector<1x392x25xf32> to vector<392x25xf32>
    %cst_15 = arith.constant dense<0.000000e+00> : vector<392x6xf32>
    %24 = tpu.matmul %23, %0, %cst_15 {dimension_numbers = #tpu.dot_dimension_numbers<[1], [0], [0], [1], [0, 0, 1, 1], [], []>} : vector<392x25xf32>, vector<25x6xf32>, vector<392x6xf32> -> vector<392x6xf32>
    %25 = vector.broadcast %1 : vector<1x6xf32> to vector<392x6xf32>
    %26 = arith.mulf %24, %25 : vector<392x6xf32>
    %27 = vector.broadcast %2 : vector<1x6xf32> to vector<392x6xf32>
    %28 = arith.addf %26, %27 : vector<392x6xf32>
    %cst_16 = arith.constant 0.000000e+00 : f32
    %29 = vector.broadcast %cst_16 : f32 to vector<392x6xf32>
    %30 = arith.maximumf %28, %29 : vector<392x6xf32>
    %31 = arith.maximumf %21, %30 : vector<392x6xf32>
    %c3 = arith.constant 3 : index
    %c0_17 = arith.constant 0 : index
    %c0_18 = arith.constant 0 : index
    %32 = vector.load %arg0[%c3, %c0_17, %c0_18] : memref<4x392x25xf32, #tpu.memory_space<vmem>>, vector<1x392x25xf32>
    %33 = vector.shape_cast %32 : vector<1x392x25xf32> to vector<392x25xf32>
    %cst_19 = arith.constant dense<0.000000e+00> : vector<392x6xf32>
    %34 = tpu.matmul %33, %0, %cst_19 {dimension_numbers = #tpu.dot_dimension_numbers<[1], [0], [0], [1], [0, 0, 1, 1], [], []>} : vector<392x25xf32>, vector<25x6xf32>, vector<392x6xf32> -> vector<392x6xf32>
    %35 = vector.broadcast %1 : vector<1x6xf32> to vector<392x6xf32>
    %36 = arith.mulf %34, %35 : vector<392x6xf32>
    %37 = vector.broadcast %2 : vector<1x6xf32> to vector<392x6xf32>
    %38 = arith.addf %36, %37 : vector<392x6xf32>
    %cst_20 = arith.constant 0.000000e+00 : f32
    %39 = vector.broadcast %cst_20 : f32 to vector<392x6xf32>
    %40 = arith.maximumf %38, %39 : vector<392x6xf32>
    %41 = arith.maximumf %31, %40 : vector<392x6xf32>
    %c0_21 = arith.constant 0 : index
    %c0_22 = arith.constant 0 : index
    %42 = vector.load %arg4[%c0_21, %c0_22] : memref<392x6xf32, #tpu.memory_space<vmem>>, vector<392x6xf32>
    tpu.vector_store %arg4[%c0_21, %c0_22], %41 {strides = array<i32>} : memref<392x6xf32, #tpu.memory_space<vmem>>, vector<392x6xf32>,
    return
  }
}

module attributes {stable_mosaic.version = 11 : i64} {
  func.func @conv_block_kernel(%arg0: memref<4x50x150xf32, #tpu.memory_space<vmem>>, %arg1: memref<150x16xf32, #tpu.memory_space<vmem>>, %arg2: memref<1x16xf32, #tpu.memory_space<vmem>>, %arg3: memref<1x16xf32, #tpu.memory_space<vmem>>, %arg4: memref<50x16xf32, #tpu.memory_space<vmem>>) attributes {dimension_semantics = [], scalar_prefetch = 0 : i64, scratch_operands = 0 : i64, tpu.core_type = #tpu.core_type<tc>} {
    %c0 = arith.constant 0 : index
    %c0_0 = arith.constant 0 : index
    %0 = vector.load %arg1[%c0, %c0_0] : memref<150x16xf32, #tpu.memory_space<vmem>>, vector<150x16xf32>
    %c0_1 = arith.constant 0 : index
    %c0_2 = arith.constant 0 : index
    %1 = vector.load %arg2[%c0_1, %c0_2] : memref<1x16xf32, #tpu.memory_space<vmem>>, vector<1x16xf32>
    %c0_3 = arith.constant 0 : index
    %c0_4 = arith.constant 0 : index
    %2 = vector.load %arg3[%c0_3, %c0_4] : memref<1x16xf32, #tpu.memory_space<vmem>>, vector<1x16xf32>
    %c0_5 = arith.constant 0 : index
    %c0_6 = arith.constant 0 : index
    %c0_7 = arith.constant 0 : index
    %3 = vector.load %arg0[%c0_5, %c0_6, %c0_7] : memref<4x50x150xf32, #tpu.memory_space<vmem>>, vector<1x50x150xf32>
    %4 = vector.shape_cast %3 : vector<1x50x150xf32> to vector<50x150xf32>
    %cst = arith.constant dense<0.000000e+00> : vector<50x16xf32>
    %5 = tpu.matmul %4, %0, %cst {dimension_numbers = #tpu.dot_dimension_numbers<[1], [0], [0], [1], [0, 0, 1, 1], [], []>} : vector<50x150xf32>, vector<150x16xf32>, vector<50x16xf32> -> vector<50x16xf32>
    %6 = vector.broadcast %1 : vector<1x16xf32> to vector<50x16xf32>
    %7 = arith.mulf %5, %6 : vector<50x16xf32>
    %8 = vector.broadcast %2 : vector<1x16xf32> to vector<50x16xf32>
    %9 = arith.addf %7, %8 : vector<50x16xf32>
    %cst_8 = arith.constant 0.000000e+00 : f32
    %10 = vector.broadcast %cst_8 : f32 to vector<50x16xf32>
    %11 = arith.maximumf %9, %10 : vector<50x16xf32>
    %c1 = arith.constant 1 : index
    %c0_9 = arith.constant 0 : index
    %c0_10 = arith.constant 0 : index
    %12 = vector.load %arg0[%c1, %c0_9, %c0_10] : memref<4x50x150xf32, #tpu.memory_space<vmem>>, vector<1x50x150xf32>
    %13 = vector.shape_cast %12 : vector<1x50x150xf32> to vector<50x150xf32>
    %cst_11 = arith.constant dense<0.000000e+00> : vector<50x16xf32>
    %14 = tpu.matmul %13, %0, %cst_11 {dimension_numbers = #tpu.dot_dimension_numbers<[1], [0], [0], [1], [0, 0, 1, 1], [], []>} : vector<50x150xf32>, vector<150x16xf32>, vector<50x16xf32> -> vector<50x16xf32>
    %15 = vector.broadcast %1 : vector<1x16xf32> to vector<50x16xf32>
    %16 = arith.mulf %14, %15 : vector<50x16xf32>
    %17 = vector.broadcast %2 : vector<1x16xf32> to vector<50x16xf32>
    %18 = arith.addf %16, %17 : vector<50x16xf32>
    %cst_12 = arith.constant 0.000000e+00 : f32
    %19 = vector.broadcast %cst_12 : f32 to vector<50x16xf32>
    %20 = arith.maximumf %18, %19 : vector<50x16xf32>
    %21 = arith.maximumf %11, %20 : vector<50x16xf32>
    %c2 = arith.constant 2 : index
    %c0_13 = arith.constant 0 : index
    %c0_14 = arith.constant 0 : index
    %22 = vector.load %arg0[%c2, %c0_13, %c0_14] : memref<4x50x150xf32, #tpu.memory_space<vmem>>, vector<1x50x150xf32>
    %23 = vector.shape_cast %22 : vector<1x50x150xf32> to vector<50x150xf32>
    %cst_15 = arith.constant dense<0.000000e+00> : vector<50x16xf32>
    %24 = tpu.matmul %23, %0, %cst_15 {dimension_numbers = #tpu.dot_dimension_numbers<[1], [0], [0], [1], [0, 0, 1, 1], [], []>} : vector<50x150xf32>, vector<150x16xf32>, vector<50x16xf32> -> vector<50x16xf32>
    %25 = vector.broadcast %1 : vector<1x16xf32> to vector<50x16xf32>
    %26 = arith.mulf %24, %25 : vector<50x16xf32>
    %27 = vector.broadcast %2 : vector<1x16xf32> to vector<50x16xf32>
    %28 = arith.addf %26, %27 : vector<50x16xf32>
    %cst_16 = arith.constant 0.000000e+00 : f32
    %29 = vector.broadcast %cst_16 : f32 to vector<50x16xf32>
    %30 = arith.maximumf %28, %29 : vector<50x16xf32>
    %31 = arith.maximumf %21, %30 : vector<50x16xf32>
    %c3 = arith.constant 3 : index
    %c0_17 = arith.constant 0 : index
    %c0_18 = arith.constant 0 : index
    %32 = vector.load %arg0[%c3, %c0_17, %c0_18] : memref<4x50x150xf32, #tpu.memory_space<vmem>>, vector<1x50x150xf32>
    %33 = vector.shape_cast %32 : vector<1x50x150xf32> to vector<50x150xf32>
    %cst_19 = arith.constant dense<0.000000e+00> : vector<50x16xf32>
    %34 = tpu.matmul %33, %0, %cst_19 {dimension_numbers = #tpu.dot_dimension_numbers<[1], [0], [0], [1], [0, 0, 1, 1], [], []>} : vector<50x150xf32>, vector<150x16xf32>, vector<50x16xf32> -> vector<50x16xf32>
    %35 = vector.broadcast %1 : vector<1x16xf32> to vector<50x16xf32>
    %36 = arith.mulf %34, %35 : vector<50x16xf32>
    %37 = vector.broadcast %2 : vector<1x16xf32> to vector<50x16xf32>
    %38 = arith.addf %36, %37 : vector<50x16xf32>
    %cst_20 = arith.constant 0.000000e+00 : f32
    %39 = vector.broadcast %cst_20 : f32 to vector<50x16xf32>
    %40 = arith.maximumf %38, %39 : vector<50x16xf32>
    %41 = arith.maximumf %31, %40 : vector<50x16xf32>
    %c0_21 = arith.constant 0 : index
    %c0_22 = arith.constant 0 : index
    %42 = vector.load %arg4[%c0_21, %c0_22] : memref<50x16xf32, #tpu.memory_space<vmem>>, vector<50x16xf32>
    tpu.vector_store %arg4[%c0_21, %c0_22], %41 {strides = array<i32>} : memref<50x16xf32, #tpu.memory_space<vmem>>, vector<50x16xf32>,
    return
  }
}

module attributes {stable_mosaic.version = 11 : i64} {
  func.func @mlp_head_kernel(%arg0: memref<2x400xf32, #tpu.memory_space<vmem>>, %arg1: memref<400x120xf32, #tpu.memory_space<vmem>>, %arg2: memref<1x120xf32, #tpu.memory_space<vmem>>, %arg3: memref<120x84xf32, #tpu.memory_space<vmem>>, %arg4: memref<1x84xf32, #tpu.memory_space<vmem>>, %arg5: memref<84x4xf32, #tpu.memory_space<vmem>>, %arg6: memref<1x4xf32, #tpu.memory_space<vmem>>, %arg7: memref<2x4xf32, #tpu.memory_space<vmem>>) attributes {dimension_semantics = [], scalar_prefetch = 0 : i64, scratch_operands = 0 : i64, tpu.core_type = #tpu.core_type<tc>} {
    %c0 = arith.constant 0 : index
    %c0_0 = arith.constant 0 : index
    %0 = vector.load %arg0[%c0, %c0_0] : memref<2x400xf32, #tpu.memory_space<vmem>>, vector<2x400xf32>
    %c0_1 = arith.constant 0 : index
    %c0_2 = arith.constant 0 : index
    %1 = vector.load %arg1[%c0_1, %c0_2] : memref<400x120xf32, #tpu.memory_space<vmem>>, vector<400x120xf32>
    %cst = arith.constant dense<0.000000e+00> : vector<2x120xf32>
    %2 = tpu.matmul %0, %1, %cst {dimension_numbers = #tpu.dot_dimension_numbers<[1], [0], [0], [1], [0, 0, 1, 1], [], []>} : vector<2x400xf32>, vector<400x120xf32>, vector<2x120xf32> -> vector<2x120xf32>
    %c0_3 = arith.constant 0 : index
    %c0_4 = arith.constant 0 : index
    %3 = vector.load %arg2[%c0_3, %c0_4] : memref<1x120xf32, #tpu.memory_space<vmem>>, vector<1x120xf32>
    %4 = vector.broadcast %3 : vector<1x120xf32> to vector<2x120xf32>
    %5 = arith.addf %2, %4 : vector<2x120xf32>
    %cst_5 = arith.constant 0.000000e+00 : f32
    %6 = vector.broadcast %cst_5 : f32 to vector<2x120xf32>
    %7 = arith.maximumf %5, %6 : vector<2x120xf32>
    %c0_6 = arith.constant 0 : index
    %c0_7 = arith.constant 0 : index
    %8 = vector.load %arg3[%c0_6, %c0_7] : memref<120x84xf32, #tpu.memory_space<vmem>>, vector<120x84xf32>
    %cst_8 = arith.constant dense<0.000000e+00> : vector<2x84xf32>
    %9 = tpu.matmul %7, %8, %cst_8 {dimension_numbers = #tpu.dot_dimension_numbers<[1], [0], [0], [1], [0, 0, 1, 1], [], []>} : vector<2x120xf32>, vector<120x84xf32>, vector<2x84xf32> -> vector<2x84xf32>
    %c0_9 = arith.constant 0 : index
    %c0_10 = arith.constant 0 : index
    %10 = vector.load %arg4[%c0_9, %c0_10] : memref<1x84xf32, #tpu.memory_space<vmem>>, vector<1x84xf32>
    %11 = vector.broadcast %10 : vector<1x84xf32> to vector<2x84xf32>
    %12 = arith.addf %9, %11 : vector<2x84xf32>
    %cst_11 = arith.constant 0.000000e+00 : f32
    %13 = vector.broadcast %cst_11 : f32 to vector<2x84xf32>
    %14 = arith.maximumf %12, %13 : vector<2x84xf32>
    %c0_12 = arith.constant 0 : index
    %c0_13 = arith.constant 0 : index
    %15 = vector.load %arg5[%c0_12, %c0_13] : memref<84x4xf32, #tpu.memory_space<vmem>>, vector<84x4xf32>
    %cst_14 = arith.constant dense<0.000000e+00> : vector<2x4xf32>
    %16 = tpu.matmul %14, %15, %cst_14 {dimension_numbers = #tpu.dot_dimension_numbers<[1], [0], [0], [1], [0, 0, 1, 1], [], []>} : vector<2x84xf32>, vector<84x4xf32>, vector<2x4xf32> -> vector<2x4xf32>
    %c0_15 = arith.constant 0 : index
    %c0_16 = arith.constant 0 : index
    %17 = vector.load %arg6[%c0_15, %c0_16] : memref<1x4xf32, #tpu.memory_space<vmem>>, vector<1x4xf32>
    %18 = vector.broadcast %17 : vector<1x4xf32> to vector<2x4xf32>
    %19 = arith.addf %16, %18 : vector<2x4xf32>
    %c0_17 = arith.constant 0 : index
    %c0_18 = arith.constant 0 : index
    %20 = vector.load %arg7[%c0_17, %c0_18] : memref<2x4xf32, #tpu.memory_space<vmem>>, vector<2x4xf32>
    tpu.vector_store %arg7[%c0_17, %c0_18], %19 {strides = array<i32>} : memref<2x4xf32, #tpu.memory_space<vmem>>, vector<2x4xf32>,
    return
  }
}

</mosaic_0001>

<bundles_post_ra>
// kernel: lenet5_forward.3
= control target key start
LH: loop header
LB: loop body
LE: loop exit
PB: predicated region body
PF: predicated region fallthrough
CT: control target
= control target key end

     0   :  { %vm220_vm0 = vcmask 1040384   ;;  %v4043_v0 = vmov 0.0   ;;  %vm72_vm1 = vcmask 203776   ;;  %vm4044_vm2 = vmmov 0   ;;  %s6043_s1 = inlined_call_operand.vmem [shape: f32[25,6], index: 1, kind: input, shape index: {}]   ;;  %s6044_s0 = inlined_call_operand.vmem [shape: f32[4,392,25], index: 0, kind: input, shape index: {}]   ;;  %s6045_s2 = inlined_call_operand.vmem [shape: f32[1,6], index: 2, kind: input, shape index: {}]   ;;  %s6046_s3 = inlined_call_operand.vmem [shape: f32[1,6], index: 3, kind: input, shape index: {}]   ;;  %s6047_s4 = inlined_call_operand.vmem [shape: f32[392,6], index: 4, kind: output, shape index: {}]  }
   0x1   :  { %3417 = vmatprep.subr.mxu0 %v4043_v0  ;;  %v20_v1 = vld [vmem:[%s6043_s1 + $0x18] sm:$0x1]  ;;  %3572 = vmatprep.subr.mxu1 %v4043_v0  ;;  %v19_v2 = vld [vmem:[%s6043_s1 + $0x10] sm:$0xff]  ;;  %v18_v3 = vld [vmem:[%s6043_s1 + $0x8] sm:$0xff]  ;;  %vm2802_vm3 = vcmask 48128  }
   0x2   :  { %3418 = vmatpush3.msk.msra.mxu0 %vm220_vm0, %v20_v1  ;;  %3573 = vmatpush3.msk.msra.mxu1 %vm220_vm0, %v20_v1  ;;  %v17_v4 = vld [vmem:[%s6043_s1] sm:$0xff]  ;;  %v2908_v6 = vld [vmem:[%s6044_s0 + $0x188] sm:$0xff]  ;;  %v2909_v8 = vld [vmem:[%s6044_s0 + $0x190] sm:$0xff] }
   0x3   :  { %3419 = vmatprep.subr.mxu0 %v4043_v0  ;;  %3574 = vmatprep.subr.mxu1 %v4043_v0  ;;  %v23_v5 = vld [vmem:[%s6044_s0] sm:$0xff]  ;;  %v24_v7 = vld [vmem:[%s6044_s0 + $0x8] sm:$0xff]  ;;  %v25_v9 = vld [vmem:[%s6044_s0 + $0x10] sm:$0xff] }
   0x4   :  { %3420 = vmatpush3.msra.mxu0 %v19_v2  ;;  %3575 = vmatpush3.msra.mxu1 %v19_v2  ;;  %v2910_v10 = vld [vmem:[%s6044_s0 + $0x198] sm:$0xff]  ;;  %v2911_v12 = vld [vmem:[%s6044_s0 + $0x1a0] sm:$0xff]  ;;  %v2912_v14 = vld [vmem:[%s6044_s0 + $0x1a8] sm:$0xff] }
   0x5   :  { %3421 = vmatprep.subr.mxu0 %v4043_v0  ;;  %3576 = vmatprep.subr.mxu1 %v4043_v0  ;;  %v26_v11 = vld [vmem:[%s6044_s0 + $0x18] sm:$0xff]  ;;  %v27_v13 = vld [vmem:[%s6044_s0 + $0x20] sm:$0xff]  ;;  %v28_v15 = vld [vmem:[%s6044_s0 + $0x28] sm:$0xff] }
   0x6   :  { %3422 = vmatpush3.msra.mxu0 %v18_v3  ;;  %3577 = vmatpush3.msra.mxu1 %v18_v3  ;;  %v2913_v16 = vld [vmem:[%s6044_s0 + $0x1b0] sm:$0xff]  ;;  %v2914_v18 = vld [vmem:[%s6044_s0 + $0x1b8] sm:$0xff]  ;;  %v2915_v20 = vld [vmem:[%s6044_s0 + $0x1c0] sm:$0xff] }
   0x7   :  { %3423 = vmatprep.subr.mxu0 %v4043_v0  ;;  %3425 = vmatprep.mubr.msk.f32.mxu0 %vm4044_vm2, %v4043_v0  ;;  %v29_v17 = vld [vmem:[%s6044_s0 + $0x30] sm:$0xff]  ;;  %v30_v19 = vld [vmem:[%s6044_s0 + $0x38] sm:$0xff]  ;;  %v31_v21 = vld [vmem:[%s6044_s0 + $0x40] sm:$0xff] }
   0x8   :  { %3424 = vmatpush3.msra.mxu0 %v17_v4  ;;  %3578 = vmatprep.subr.mxu1 %v4043_v0  ;;  %v2916_v22 = vld [vmem:[%s6044_s0 + $0x1c8] sm:$0xff]  ;;  %v2917_v24 = vld [vmem:[%s6044_s0 + $0x1d0] sm:$0xff]  ;;  %v2918_v26 = vld [vmem:[%s6044_s0 + $0x1d8] sm:$0xff] }
   0x9   :  { %3426 = vmatmul.mubr.msk.f32.vlgmr.msra.gmra.mxu0 %vm72_vm1, %v23_v5  ;;  %3579 = vmatpush3.msra.mxu1 %v17_v4  ;;  %v32_v23 = vld [vmem:[%s6044_s0 + $0x48] sm:$0xff]  ;;  %v33_v25 = vld [vmem:[%s6044_s0 + $0x50] sm:$0xff]  ;;  %v34_v27 = vld [vmem:[%s6044_s0 + $0x58] sm:$0xff] }
   0xa   :  { %3580 = vmatprep.mubr.msk.f32.mxu1 %vm4044_vm2, %v4043_v0  ;;  %3727 = vmatprep.subr.mxu0 %v4043_v0  ;;  %v2919_v28 = vld [vmem:[%s6044_s0 + $0x1e0] sm:$0xff]  ;;  %v2920_v30 = vld [vmem:[%s6044_s0 + $0x1e8] sm:$0xff]  ;;  %v2921_v32 = vld [vmem:[%s6044_s0 + $0x1f0] sm:$0xff] }
   0xb   :  { %3581 = vmatmul.mubr.msk.f32.vlgmr.msra.gmra.mxu1 %vm72_vm1, %v2908_v6  ;;  %3728 = vmatpush3.msk.msra.mxu0 %vm220_vm0, %v20_v1  ;;  %v35_v29 = vld [vmem:[%s6044_s0 + $0x60] sm:$0xff]  ;;  %v36_v31 = vld [vmem:[%s6044_s0 + $0x68] sm:$0xff]  ;;  %v37_v33 = vld [vmem:[%s6044_s0 + $0x70] sm:$0xff] }
   0xc   :  { %3882 = vmatprep.subr.mxu1 %v4043_v0  ;;  %3428 = vmatprep.mubr.msk.f32.mxu0 %vm4044_vm2, %v4043_v0  ;;  %v2922_v34 = vld [vmem:[%s6044_s0 + $0x1f8] sm:$0xff]  ;;  %v2923_v36 = vld [vmem:[%s6044_s0 + $0x200] sm:$0xff]  ;;  %v2924_v38 = vld [vmem:[%s6044_s0 + $0x208] sm:$0xff] }
   0xd   :  { %3883 = vmatpush3.msk.msra.mxu1 %vm220_vm0, %v20_v1  ;;  %3429 = vmatmul.mubr.msk.f32.gmra.mxu0 %vm72_vm1, %v24_v7  ;;  %v38_v35 = vld [vmem:[%s6044_s0 + $0x78] sm:$0xff]  ;;  %v39_v37 = vld [vmem:[%s6044_s0 + $0x80] sm:$0xff]  ;;  %v40_v39 = vld [vmem:[%s6044_s0 + $0x88] sm:$0xff] }
   0xe   :  { %3583 = vmatprep.mubr.msk.f32.mxu1 %vm4044_vm2, %v4043_v0  ;;  %3431 = vmatprep.mubr.msk.f32.mxu0 %vm4044_vm2, %v4043_v0  ;;  %v2925_v40 = vld [vmem:[%s6044_s0 + $0x210] sm:$0xff]  ;;  %v2926_v42 = vld [vmem:[%s6044_s0 + $0x218] sm:$0xff]  ;;  %v2927_v44 = vld [vmem:[%s6044_s0 + $0x220] sm:$0xff] }
   0xf   :  { %3584 = vmatmul.mubr.msk.f32.gmra.mxu1 %vm72_vm1, %v2909_v8  ;;  %3729 = vmatprep.subr.mxu0 %v4043_v0  ;;  %v41_v41 = vld [vmem:[%s6044_s0 + $0x90] sm:$0xff]  ;;  %v42_v43 = vld [vmem:[%s6044_s0 + $0x98] sm:$0xff]  ;;  %v43_v45 = vld [vmem:[%s6044_s0 + $0xa0] sm:$0xff] }
  0x10   :  { %3586 = vmatprep.mubr.msk.f32.mxu1 %vm4044_vm2, %v4043_v0  ;;  %3730 = vmatpush3.msra.mxu0 %v19_v2  ;;  %v2928_v46 = vld [vmem:[%s6044_s0 + $0x228] sm:$0xff]  ;;  %v2929_v48 = vld [vmem:[%s6044_s0 + $0x230] sm:$0xff]  ;;  %v2930_v50 = vld [vmem:[%s6044_s0 + $0x238] sm:$0xff] }
  0x11   :  { %3432 = vmatmul.mubr.msk.f32.gmra.mxu0 %vm72_vm1, %v25_v9  ;;  %3884 = vmatprep.subr.mxu1 %v4043_v0  ;;  %v44_v47 = vld [vmem:[%s6044_s0 + $0xa8] sm:$0xff]  ;;  %v45_v49 = vld [vmem:[%s6044_s0 + $0xb0] sm:$0xff]  ;;  %v46_v51 = vld [vmem:[%s6044_s0 + $0xb8] sm:$0xff] }
  0x12   :  { %3434 = vmatprep.mubr.msk.f32.mxu0 %vm4044_vm2, %v4043_v0  ;;  %3885 = vmatpush3.msra.mxu1 %v19_v2  ;;  %v2931_v52 = vld [vmem:[%s6044_s0 + $0x240] sm:$0xff]  ;;  %v2932_v54 = vld [vmem:[%s6044_s0 + $0x248] sm:$0xff]  ;;  %v2933_v56 = vld [vmem:[%s6044_s0 + $0x250] sm:$0xff] }
  0x13   :  { %3587 = vmatmul.mubr.msk.f32.gmra.mxu1 %vm72_vm1, %v2910_v10  ;;  %3731 = vmatprep.subr.mxu0 %v4043_v0  ;;  %v47_v53 = vld [vmem:[%s6044_s0 + $0xc0] sm:$0xff]  ;;  %v48_v55 = vld [vmem:[%s6044_s0 + $0xc8] sm:$0xff]  ;;  %v49_v57 = vld [vmem:[%s6044_s0 + $0xd0] sm:$0xff] }
  0x14   :  { %3589 = vmatprep.mubr.msk.f32.mxu1 %vm4044_vm2, %v4043_v0  ;;  %3732 = vmatpush3.msra.mxu0 %v18_v3  ;;  %v2934_v58 = vld [vmem:[%s6044_s0 + $0x258] sm:$0xff]  ;;  %v2935_v60 = vld [vmem:[%s6044_s0 + $0x260] sm:$0xff]  ;;  %v2936_v62 = vld [vmem:[%s6044_s0 + $0x268] sm:$0xff] }
  0x15   :  { %3435 = vmatmul.mubr.msk.f32.gmra.mxu0 %vm72_vm1, %v26_v11  ;;  %3886 = vmatprep.subr.mxu1 %v4043_v0  ;;  %v50_v59 = vld [vmem:[%s6044_s0 + $0xd8] sm:$0xff]  ;;  %v51_v61 = vld [vmem:[%s6044_s0 + $0xe0] sm:$0xff]  ;;  %v52_v63 = vld [vmem:[%s6044_s0 + $0xe8] sm:$0xff] }
  0x16   :  { %3437 = vmatprep.mubr.msk.f32.mxu0 %vm4044_vm2, %v4043_v0  ;;  %3887 = vmatpush3.msra.mxu1 %v18_v3  ;;  %v2937_v1 = vld [vmem:[%s6044_s0 + $0x270] sm:$0xff]  ;;  %v2938_v3 = vld [vmem:[%s6044_s0 + $0x278] sm:$0xff]  ;;  %v2939_v5 = vld [vmem:[%s6044_s0 + $0x280] sm:$0xff] }
  0x17   :  { %3590 = vmatmul.mubr.msk.f32.gmra.mxu1 %vm72_vm1, %v2911_v12  ;;  %3733 = vmatprep.subr.mxu0 %v4043_v0  ;;  %v53_v2 = vld [vmem:[%s6044_s0 + $0xf0] sm:$0xff]  ;;  %v55_v6 = vld [vmem:[%s6044_s0 + $0x100] sm:$0xff]  ;;  %v2940_v7 = vld [vmem:[%s6044_s0 + $0x288] sm:$0xff] }
  0x18   :  { %3592 = vmatprep.mubr.msk.f32.mxu1 %vm4044_vm2, %v4043_v0  ;;  %3734 = vmatpush3.msra.mxu0 %v17_v4  ;;  %v56_v8 = vld [vmem:[%s6044_s0 + $0x108] sm:$0xff]  ;;  %v2941_v9 = vld [vmem:[%s6044_s0 + $0x290] sm:$0xff]  ;;  %v2942_v11 = vld [vmem:[%s6044_s0 + $0x298] sm:$0xff] }
  0x19   :  { %3438 = vmatmul.mubr.msk.f32.gmra.mxu0 %vm72_vm1, %v27_v13  ;;  %3888 = vmatprep.subr.mxu1 %v4043_v0  ;;  %v57_v10 = vld [vmem:[%s6044_s0 + $0x110] sm:$0xff]  ;;  %v58_v12 = vld [vmem:[%s6044_s0 + $0x118] sm:$0xff]  ;;  %v2943_v13 = vld [vmem:[%s6044_s0 + $0x2a0] sm:$0xff] }
  0x1a   :  { %3440 = vmatprep.mubr.msk.f32.mxu0 %vm4044_vm2, %v4043_v0  ;;  %3889 = vmatpush3.msra.mxu1 %v17_v4  ;;  %v54_v4 = vld [vmem:[%s6044_s0 + $0xf8] sm:$0xff] }
  0x1b   :  { %3593 = vmatmul.mubr.msk.f32.gmra.mxu1 %vm72_vm1, %v2912_v14  ;;  %v59_v14 = vld [vmem:[%s6044_s0 + $0x120] sm:$0xff] }
  0x1c   :  { %3595 = vmatprep.mubr.msk.f32.mxu1 %vm4044_vm2, %v4043_v0 }
  0x1d   :  { %3441 = vmatmul.mubr.msk.f32.gmra.mxu0 %vm72_vm1, %v28_v15  ;;  %v2944_v15 = vld [vmem:[%s6044_s0 + $0x2a8] sm:$0xff] }
  0x1e   :  { %3443 = vmatprep.mubr.msk.f32.mxu0 %vm4044_vm2, %v4043_v0 }
  0x1f   :  { %3596 = vmatmul.mubr.msk.f32.gmra.mxu1 %vm72_vm1, %v2913_v16  ;;  %v60_v16 = vld [vmem:[%s6044_s0 + $0x128] sm:$0xff] }
  0x20   :  { %3598 = vmatprep.mubr.msk.f32.mxu1 %vm4044_vm2, %v4043_v0 }
  0x21   :  { %3444 = vmatmul.mubr.msk.f32.gmra.mxu0 %vm72_vm1, %v29_v17  ;;  %v2945_v17 = vld [vmem:[%s6044_s0 + $0x2b0] sm:$0xff] }
  0x22   :  { %3446 = vmatprep.mubr.msk.f32.mxu0 %vm4044_vm2, %v4043_v0 }
  0x23   :  { %3599 = vmatmul.mubr.msk.f32.gmra.mxu1 %vm72_vm1, %v2914_v18  ;;  %v61_v18 = vld [vmem:[%s6044_s0 + $0x130] sm:$0xff] }
  0x24   :  { %3601 = vmatprep.mubr.msk.f32.mxu1 %vm4044_vm2, %v4043_v0 }
  0x25   :  { %3447 = vmatmul.mubr.msk.f32.gmra.mxu0 %vm72_vm1, %v30_v19  ;;  %v2946_v19 = vld [vmem:[%s6044_s0 + $0x2b8] sm:$0xff] }
  0x26   :  { %3449 = vmatprep.mubr.msk.f32.mxu0 %vm4044_vm2, %v4043_v0 }
  0x27   :  { %3602 = vmatmul.mubr.msk.f32.gmra.mxu1 %vm72_vm1, %v2915_v20  ;;  %v62_v20 = vld [vmem:[%s6044_s0 + $0x138] sm:$0xff] }
  0x28   :  { %3604 = vmatprep.mubr.msk.f32.mxu1 %vm4044_vm2, %v4043_v0 }
  0x29   :  { %3450 = vmatmul.mubr.msk.f32.gmra.mxu0 %vm72_vm1, %v31_v21  ;;  %v2947_v21 = vld [vmem:[%s6044_s0 + $0x2c0] sm:$0xff] }
  0x2a   :  { %3452 = vmatprep.mubr.msk.f32.mxu0 %vm4044_vm2, %v4043_v0 }
  0x2b   :  { %3605 = vmatmul.mubr.msk.f32.gmra.mxu1 %vm72_vm1, %v2916_v22  ;;  %v63_v22 = vld [vmem:[%s6044_s0 + $0x140] sm:$0xff] }
  0x2c   :  { %3607 = vmatprep.mubr.msk.f32.mxu1 %vm4044_vm2, %v4043_v0 }
  0x2d   :  { %3453 = vmatmul.mubr.msk.f32.gmra.mxu0 %vm72_vm1, %v32_v23  ;;  %v2948_v23 = vld [vmem:[%s6044_s0 + $0x2c8] sm:$0xff] }
  0x2e   :  { %3455 = vmatprep.mubr.msk.f32.mxu0 %vm4044_vm2, %v4043_v0 }
  0x2f   :  { %3608 = vmatmul.mubr.msk.f32.gmra.mxu1 %vm72_vm1, %v2917_v24  ;;  %v64_v24 = vld [vmem:[%s6044_s0 + $0x148] sm:$0xff] }
  0x30   :  { %3610 = vmatprep.mubr.msk.f32.mxu1 %vm4044_vm2, %v4043_v0 }
  0x31   :  { %3456 = vmatmul.mubr.msk.f32.gmra.mxu0 %vm72_vm1, %v33_v25  ;;  %v2949_v25 = vld [vmem:[%s6044_s0 + $0x2d0] sm:$0xff] }
  0x32   :  { %3458 = vmatprep.mubr.msk.f32.mxu0 %vm4044_vm2, %v4043_v0 }
  0x33   :  { %3611 = vmatmul.mubr.msk.f32.gmra.mxu1 %vm72_vm1, %v2918_v26  ;;  %v65_v26 = vld [vmem:[%s6044_s0 + $0x150] sm:$0xff] }
  0x34   :  { %3613 = vmatprep.mubr.msk.f32.mxu1 %vm4044_vm2, %v4043_v0 }
  0x35   :  { %3459 = vmatmul.mubr.msk.f32.gmra.mxu0 %vm72_vm1, %v34_v27  ;;  %v2950_v27 = vld [vmem:[%s6044_s0 + $0x2d8] sm:$0xff] }
  0x36   :  { %3461 = vmatprep.mubr.msk.f32.mxu0 %vm4044_vm2, %v4043_v0 }
  0x37   :  { %3614 = vmatmul.mubr.msk.f32.gmra.mxu1 %vm72_vm1, %v2919_v28  ;;  %v66_v28 = vld [vmem:[%s6044_s0 + $0x158] sm:$0xff] }
  0x38   :  { %3616 = vmatprep.mubr.msk.f32.mxu1 %vm4044_vm2, %v4043_v0 }
  0x39   :  { %3462 = vmatmul.mubr.msk.f32.gmra.mxu0 %vm72_vm1, %v35_v29  ;;  %v2951_v29 = vld [vmem:[%s6044_s0 + $0x2e0] sm:$0xff] }
  0x3a   :  { %3464 = vmatprep.mubr.msk.f32.mxu0 %vm4044_vm2, %v4043_v0 }
  0x3b   :  { %3617 = vmatmul.mubr.msk.f32.gmra.mxu1 %vm72_vm1, %v2920_v30  ;;  %v67_v30 = vld [vmem:[%s6044_s0 + $0x160] sm:$0xff] }
  0x3c   :  { %3619 = vmatprep.mubr.msk.f32.mxu1 %vm4044_vm2, %v4043_v0 }
  0x3d   :  { %3465 = vmatmul.mubr.msk.f32.gmra.mxu0 %vm72_vm1, %v36_v31  ;;  %v2952_v31 = vld [vmem:[%s6044_s0 + $0x2e8] sm:$0xff] }
  0x3e   :  { %3467 = vmatprep.mubr.msk.f32.mxu0 %vm4044_vm2, %v4043_v0 }
  0x3f   :  { %3620 = vmatmul.mubr.msk.f32.gmra.mxu1 %vm72_vm1, %v2921_v32  ;;  %v68_v32 = vld [vmem:[%s6044_s0 + $0x168] sm:$0xff] }
  0x40   :  { %3622 = vmatprep.mubr.msk.f32.mxu1 %vm4044_vm2, %v4043_v0 }
  0x41   :  { %3468 = vmatmul.mubr.msk.f32.gmra.mxu0 %vm72_vm1, %v37_v33  ;;  %v2953_v33 = vld [vmem:[%s6044_s0 + $0x2f0] sm:$0xff] }
  0x42   :  { %3470 = vmatprep.mubr.msk.f32.mxu0 %vm4044_vm2, %v4043_v0 }
  0x43   :  { %3623 = vmatmul.mubr.msk.f32.gmra.mxu1 %vm72_vm1, %v2922_v34  ;;  %v69_v34 = vld [vmem:[%s6044_s0 + $0x170] sm:$0xff] }
  0x44   :  { %3625 = vmatprep.mubr.msk.f32.mxu1 %vm4044_vm2, %v4043_v0 }
  0x45   :  { %3471 = vmatmul.mubr.msk.f32.gmra.mxu0 %vm72_vm1, %v38_v35  ;;  %v2954_v35 = vld [vmem:[%s6044_s0 + $0x2f8] sm:$0xff] }
  0x46   :  { %3473 = vmatprep.mubr.msk.f32.mxu0 %vm4044_vm2, %v4043_v0 }
  0x47   :  { %3626 = vmatmul.mubr.msk.f32.gmra.mxu1 %vm72_vm1, %v2923_v36  ;;  %v70_v36 = vld [vmem:[%s6044_s0 + $0x178] sm:$0xff] }
  0x48   :  { %3628 = vmatprep.mubr.msk.f32.mxu1 %vm4044_vm2, %v4043_v0 }
  0x49   :  { %3474 = vmatmul.mubr.msk.f32.gmra.mxu0 %vm72_vm1, %v39_v37  ;;  %v2955_v37 = vld [vmem:[%s6044_s0 + $0x300] sm:$0xff] }
  0x4a   :  { %3476 = vmatprep.mubr.msk.f32.mxu0 %vm4044_vm2, %v4043_v0 }
  0x4b   :  { %3629 = vmatmul.mubr.msk.f32.gmra.mxu1 %vm72_vm1, %v2924_v38  ;;  %v71_v38 = vld [vmem:[%s6044_s0 + $0x180] sm:$0xff] }
  0x4c   :  { %3631 = vmatprep.mubr.msk.f32.mxu1 %vm4044_vm2, %v4043_v0 }
  0x4d   :  { %3477 = vmatmul.mubr.msk.f32.gmra.mxu0 %vm72_vm1, %v40_v39  ;;  %v4686_v39 = vld [vmem:[%s6045_s2] ss:$0 sm:$0xff] }
  0x4e   :  { %3479 = vmatprep.mubr.msk.f32.mxu0 %vm4044_vm2, %v4043_v0 }
  0x4f   :  { %3632 = vmatmul.mubr.msk.f32.gmra.mxu1 %vm72_vm1, %v2925_v40  ;;  %v2956_v40 = vld [vmem:[%s6044_s0 + $0x308] sm:$0xff] }
  0x50   :  { %3634 = vmatprep.mubr.msk.f32.mxu1 %vm4044_vm2, %v4043_v0 }
  0x51   :  { %3480 = vmatmul.mubr.msk.f32.gmra.mxu0 %vm72_vm1, %v41_v41  ;;  %v4696_v41 = vld [vmem:[%s6046_s3] ss:$0 sm:$0xff] }
  0x52   :  { %3482 = vmatprep.mubr.msk.f32.mxu0 %vm4044_vm2, %v4043_v0 }
  0x53   :  { %3635 = vmatmul.mubr.msk.f32.gmra.mxu1 %vm72_vm1, %v2926_v42 }
  0x54   :  { %3637 = vmatprep.mubr.msk.f32.mxu1 %vm4044_vm2, %v4043_v0 }
  0x55   :  { %3483 = vmatmul.mubr.msk.f32.gmra.mxu0 %vm72_vm1, %v42_v43 }
  0x56   :  { %3485 = vmatprep.mubr.msk.f32.mxu0 %vm4044_vm2, %v4043_v0 }
  0x57   :  { %3638 = vmatmul.mubr.msk.f32.gmra.mxu1 %vm72_vm1, %v2927_v44  ;;  %v3007_v44 = vld [vmem:[%s6044_s0 + $0x310] sm:$0xff] }
  0x58   :  { %3640 = vmatprep.mubr.msk.f32.mxu1 %vm4044_vm2, %v4043_v0 }
  0x59   :  { %3486 = vmatmul.mubr.msk.f32.gmra.mxu0 %vm72_vm1, %v43_v45 }
  0x5a   :  { %3488 = vmatprep.mubr.msk.f32.mxu0 %vm4044_vm2, %v4043_v0 }
  0x5b   :  { %3641 = vmatmul.mubr.msk.f32.gmra.mxu1 %vm72_vm1, %v2928_v46 }
  0x5c   :  { %3643 = vmatprep.mubr.msk.f32.mxu1 %vm4044_vm2, %v4043_v0 }
  0x5d   :  { %3489 = vmatmul.mubr.msk.f32.gmra.mxu0 %vm72_vm1, %v44_v47 }
  0x5e   :  { %3491 = vmatprep.mubr.msk.f32.mxu0 %vm4044_vm2, %v4043_v0 }
  0x5f   :  { %3644 = vmatmul.mubr.msk.f32.gmra.mxu1 %vm72_vm1, %v2929_v48 }
  0x60   :  { %3646 = vmatprep.mubr.msk.f32.mxu1 %vm4044_vm2, %v4043_v0 }
  0x61   :  { %3492 = vmatmul.mubr.msk.f32.gmra.mxu0 %vm72_vm1, %v45_v49  ;;  %v3106_v49 = vld [vmem:[%s6044_s0 + $0x498] sm:$0xff] }
  0x62   :  { %3494 = vmatprep.mubr.msk.f32.mxu0 %vm4044_vm2, %v4043_v0 }
  0x63   :  { %3647 = vmatmul.mubr.msk.f32.gmra.mxu1 %vm72_vm1, %v2930_v50 }
  0x64   :  { %3649 = vmatprep.mubr.msk.f32.mxu1 %vm4044_vm2, %v4043_v0 }
  0x65   :  { %3495 = vmatmul.mubr.msk.f32.gmra.mxu0 %vm72_vm1, %v46_v51 }
  0x66   :  { %3497 = vmatprep.mubr.msk.f32.mxu0 %vm4044_vm2, %v4043_v0 }
  0x67   :  { %3650 = vmatmul.mubr.msk.f32.gmra.mxu1 %vm72_vm1, %v2931_v52 }
  0x68   :  { %3652 = vmatprep.mubr.msk.f32.mxu1 %vm4044_vm2, %v4043_v0 }
  0x69   :  { %3498 = vmatmul.mubr.msk.f32.gmra.mxu0 %vm72_vm1, %v47_v53 }
  0x6a   :  { %3500 = vmatprep.mubr.msk.f32.mxu0 %vm4044_vm2, %v4043_v0 }
  0x6b   :  { %3653 = vmatmul.mubr.msk.f32.gmra.mxu1 %vm72_vm1, %v2932_v54 }
  0x6c   :  { %3655 = vmatprep.mubr.msk.f32.mxu1 %vm4044_vm2, %v4043_v0 }
  0x6d   :  { %3501 = vmatmul.mubr.msk.f32.gmra.mxu0 %vm72_vm1, %v48_v55  ;;  %v3008_v55 = vld [vmem:[%s6044_s0 + $0x318] sm:$0xff] }
  0x6e   :  { %3503 = vmatprep.mubr.msk.f32.mxu0 %vm4044_vm2, %v4043_v0 }
  0x6f   :  { %3656 = vmatmul.mubr.msk.f32.gmra.mxu1 %vm72_vm1, %v2933_v56 }
  0x70   :  { %3658 = vmatprep.mubr.msk.f32.mxu1 %vm4044_vm2, %v4043_v0 }
  0x71   :  { %3504 = vmatmul.mubr.msk.f32.gmra.mxu0 %vm72_vm1, %v49_v57 }
  0x72   :  { %3506 = vmatprep.mubr.msk.f32.mxu0 %vm4044_vm2, %v4043_v0 }
  0x73   :  { %3659 = vmatmul.mubr.msk.f32.gmra.mxu1 %vm72_vm1, %v2934_v58 }
  0x74   :  { %3661 = vmatprep.mubr.msk.f32.mxu1 %vm4044_vm2, %v4043_v0 }
  0x75   :  { %3507 = vmatmul.mubr.msk.f32.gmra.mxu0 %vm72_vm1, %v50_v59 }
  0x76   :  { %3509 = vmatprep.mubr.msk.f32.mxu0 %vm4044_vm2, %v4043_v0 }
  0x77   :  { %3662 = vmatmul.mubr.msk.f32.gmra.mxu1 %vm72_vm1, %v2935_v60 }
  0x78   :  { %3664 = vmatprep.mubr.msk.f32.mxu1 %vm4044_vm2, %v4043_v0 }
  0x79   :  { %3510 = vmatmul.mubr.msk.f32.gmra.mxu0 %vm72_vm1, %v51_v61  ;;  %v3107_v61 = vld [vmem:[%s6044_s0 + $0x4a0] sm:$0xff] }
  0x7a   :  { %3512 = vmatprep.mubr.msk.f32.mxu0 %vm4044_vm2, %v4043_v0 }
  0x7b   :  { %3665 = vmatmul.mubr.msk.f32.gmra.mxu1 %vm72_vm1, %v2936_v62 }
  0x7c   :  { %3667 = vmatprep.mubr.msk.f32.mxu1 %vm4044_vm2, %v4043_v0 }
  0x7d   :  { %3513 = vmatmul.mubr.msk.f32.gmra.mxu0 %vm72_vm1, %v52_v63 }
  0x7e   :  { %3515 = vmatprep.mubr.msk.f32.mxu0 %vm4044_vm2, %v4043_v0 }
  0x7f   :  { %3668 = vmatmul.mubr.msk.f32.gmra.mxu1 %vm72_vm1, %v2937_v1 }
  0x80   :  { %3670 = vmatprep.mubr.msk.f32.mxu1 %vm4044_vm2, %v4043_v0 }
  0x81   :  { %3516 = vmatmul.mubr.msk.f32.gmra.mxu0 %vm72_vm1, %v53_v2 }
  0x82   :  { %3518 = vmatprep.mubr.msk.f32.mxu0 %vm4044_vm2, %v4043_v0 }
  0x83   :  { %3671 = vmatmul.mubr.msk.f32.gmra.mxu1 %vm72_vm1, %v2938_v3 }
  0x84   :  { %3673 = vmatprep.mubr.msk.f32.mxu1 %vm4044_vm2, %v4043_v0 }
  0x85   :  { %3519 = vmatmul.mubr.msk.f32.gmra.mxu0 %vm72_vm1, %v54_v4 }
  0x86   :  { %3521 = vmatprep.mubr.msk.f32.mxu0 %vm4044_vm2, %v4043_v0 }
  0x87   :  { %3674 = vmatmul.mubr.msk.f32.gmra.mxu1 %vm72_vm1, %v2939_v5  ;;  %v3009_v5 = vld [vmem:[%s6044_s0 + $0x320] sm:$0xff] }
  0x88   :  { %3676 = vmatprep.mubr.msk.f32.mxu1 %vm4044_vm2, %v4043_v0 }
  0x89   :  { %3522 = vmatmul.mubr.msk.f32.gmra.mxu0 %vm72_vm1, %v55_v6 }
  0x8a   :  { %3524 = vmatprep.mubr.msk.f32.mxu0 %vm4044_vm2, %v4043_v0 }
  0x8b   :  { %3677 = vmatmul.mubr.msk.f32.gmra.mxu1 %vm72_vm1, %v2940_v7 }
  0x8c   :  { %3679 = vmatprep.mubr.msk.f32.mxu1 %vm4044_vm2, %v4043_v0 }
  0x8d   :  { %3525 = vmatmul.mubr.msk.f32.gmra.mxu0 %vm72_vm1, %v56_v8 }
  0x8e   :  { %3527 = vmatprep.mubr.msk.f32.mxu0 %vm4044_vm2, %v4043_v0 }
  0x8f   :  { %3680 = vmatmul.mubr.msk.f32.gmra.mxu1 %vm72_vm1, %v2941_v9 }
  0x90   :  { %3682 = vmatprep.mubr.msk.f32.mxu1 %vm4044_vm2, %v4043_v0 }
  0x91   :  { %3528 = vmatmul.mubr.msk.f32.gmra.mxu0 %vm72_vm1, %v57_v10 }
  0x92   :  { %3530 = vmatprep.mubr.msk.f32.mxu0 %vm4044_vm2, %v4043_v0 }
  0x93   :  { %3683 = vmatmul.mubr.msk.f32.gmra.mxu1 %vm72_vm1, %v2942_v11  ;;  %v3108_v11 = vld [vmem:[%s6044_s0 + $0x4a8] sm:$0xff] }
  0x94   :  { %3685 = vmatprep.mubr.msk.f32.mxu1 %vm4044_vm2, %v4043_v0 }
  0x95   :  { %3531 = vmatmul.mubr.msk.f32.gmra.mxu0 %vm72_vm1, %v58_v12 }
  0x96   :  { %3533 = vmatprep.mubr.msk.f32.mxu0 %vm4044_vm2, %v4043_v0 }
  0x97   :  { %3686 = vmatmul.mubr.msk.f32.gmra.mxu1 %vm72_vm1, %v2943_v13 }
  0x98   :  { %3688 = vmatprep.mubr.msk.f32.mxu1 %vm4044_vm2, %v4043_v0 }
  0x99   :  { %3534 = vmatmul.mubr.msk.f32.gmra.mxu0 %vm72_vm1, %v59_v14 }
  0x9a   :  { %3536 = vmatprep.mubr.msk.f32.mxu0 %vm4044_vm2, %v4043_v0 }
  0x9b   :  { %3689 = vmatmul.mubr.msk.f32.gmra.mxu1 %vm72_vm1, %v2944_v15 }
  0x9c   :  { %3691 = vmatprep.mubr.msk.f32.mxu1 %vm4044_vm2, %v4043_v0 }
  0x9d   :  { %3537 = vmatmul.mubr.msk.f32.gmra.mxu0 %vm72_vm1, %v60_v16 }
  0x9e   :  { %3539 = vmatprep.mubr.msk.f32.mxu0 %vm4044_vm2, %v4043_v0 }
  0x9f   :  { %3692 = vmatmul.mubr.msk.f32.gmra.mxu1 %vm72_vm1, %v2945_v17 }
  0xa0   :  { %3694 = vmatprep.mubr.msk.f32.mxu1 %vm4044_vm2, %v4043_v0 }
  0xa1   :  { %3540 = vmatmul.mubr.msk.f32.gmra.mxu0 %vm72_vm1, %v61_v18  ;;  %v3010_v18 = vld [vmem:[%s6044_s0 + $0x328] sm:$0xff] }
  0xa2   :  { %3542 = vmatprep.mubr.msk.f32.mxu0 %vm4044_vm2, %v4043_v0 }
  0xa3   :  { %3695 = vmatmul.mubr.msk.f32.gmra.mxu1 %vm72_vm1, %v2946_v19 }
  0xa4   :  { %3697 = vmatprep.mubr.msk.f32.mxu1 %vm4044_vm2, %v4043_v0 }
  0xa5   :  { %3543 = vmatmul.mubr.msk.f32.gmra.mxu0 %vm72_vm1, %v62_v20 }
  0xa6   :  { %3545 = vmatprep.mubr.msk.f32.mxu0 %vm4044_vm2, %v4043_v0 }
  0xa7   :  { %3698 = vmatmul.mubr.msk.f32.gmra.mxu1 %vm72_vm1, %v2947_v21 }
  0xa8   :  { %3700 = vmatprep.mubr.msk.f32.mxu1 %vm4044_vm2, %v4043_v0 }
  0xa9   :  { %3546 = vmatmul.mubr.msk.f32.gmra.mxu0 %vm72_vm1, %v63_v22 }
  0xaa   :  { %3548 = vmatprep.mubr.msk.f32.mxu0 %vm4044_vm2, %v4043_v0 }
  0xab   :  { %3701 = vmatmul.mubr.msk.f32.gmra.mxu1 %vm72_vm1, %v2948_v23 }
  0xac   :  { %3703 = vmatprep.mubr.msk.f32.mxu1 %vm4044_vm2, %v4043_v0 }
  0xad   :  { %3549 = vmatmul.mubr.msk.f32.gmra.mxu0 %vm72_vm1, %v64_v24  ;;  %v3109_v24 = vld [vmem:[%s6044_s0 + $0x4b0] sm:$0xff] }
  0xae   :  { %3551 = vmatprep.mubr.msk.f32.mxu0 %vm4044_vm2, %v4043_v0 }
  0xaf   :  { %3704 = vmatmul.mubr.msk.f32.gmra.mxu1 %vm72_vm1, %v2949_v25 }
  0xb0   :  { %3706 = vmatprep.mubr.msk.f32.mxu1 %vm4044_vm2, %v4043_v0 }
  0xb1   :  { %3552 = vmatmul.mubr.msk.f32.gmra.mxu0 %vm72_vm1, %v65_v26 }
  0xb2   :  { %3554 = vmatprep.mubr.msk.f32.mxu0 %vm4044_vm2, %v4043_v0 }
  0xb3   :  { %3707 = vmatmul.mubr.msk.f32.gmra.mxu1 %vm72_vm1, %v2950_v27 }
  0xb4   :  { %3709 = vmatprep.mubr.msk.f32.mxu1 %vm4044_vm2, %v4043_v0 }
  0xb5   :  { %3555 = vmatmul.mubr.msk.f32.gmra.mxu0 %vm72_vm1, %v66_v28 }
  0xb6   :  { %3557 = vmatprep.mubr.msk.f32.mxu0 %vm4044_vm2, %v4043_v0 }
  0xb7   :  { %3710 = vmatmul.mubr.msk.f32.gmra.mxu1 %vm72_vm1, %v2951_v29 }
  0xb8   :  { %3712 = vmatprep.mubr.msk.f32.mxu1 %vm4044_vm2, %v4043_v0 }
  0xb9   :  { %3558 = vmatmul.mubr.msk.f32.gmra.mxu0 %vm72_vm1, %v67_v30 }
  0xba   :  { %3560 = vmatprep.mubr.msk.f32.mxu0 %vm4044_vm2, %v4043_v0 }
  0xbb   :  { %3713 = vmatmul.mubr.msk.f32.gmra.mxu1 %vm72_vm1, %v2952_v31  ;;  %v3011_v31 = vld [vmem:[%s6044_s0 + $0x330] sm:$0xff] }
  0xbc   :  { %3715 = vmatprep.mubr.msk.f32.mxu1 %vm4044_vm2, %v4043_v0 }
  0xbd   :  { %3561 = vmatmul.mubr.msk.f32.gmra.mxu0 %vm72_vm1, %v68_v32 }
  0xbe   :  { %3563 = vmatprep.mubr.msk.f32.mxu0 %vm4044_vm2, %v4043_v0 }
  0xbf   :  { %3716 = vmatmul.mubr.msk.f32.gmra.mxu1 %vm72_vm1, %v2953_v33 }
  0xc0   :  { %3718 = vmatprep.mubr.msk.f32.mxu1 %vm4044_vm2, %v4043_v0 }
  0xc1   :  { %3564 = vmatmul.mubr.msk.f32.gmra.mxu0 %vm72_vm1, %v69_v34 }
  0xc2   :  { %3566 = vmatprep.mubr.msk.f32.mxu0 %vm4044_vm2, %v4043_v0 }
  0xc3   :  { %3719 = vmatmul.mubr.msk.f32.gmra.mxu1 %vm72_vm1, %v2954_v35 }
  0xc4   :  { %3721 = vmatprep.mubr.msk.f32.mxu1 %vm4044_vm2, %v4043_v0 }
  0xc5   :  { %3567 = vmatmul.mubr.msk.f32.gmra.mxu0 %vm72_vm1, %v70_v36 }
  0xc6   :  { %3569 = vmatprep.mubr.msk.f32.mxu0 %vm4044_vm2, %v4043_v0 }
  0xc7   :  { %3722 = vmatmul.mubr.msk.f32.gmra.mxu1 %vm72_vm1, %v2955_v37  ;;  %v3110_v37 = vld [vmem:[%s6044_s0 + $0x4b8] sm:$0xff] }
  0xc8   :  { %3724 = vmatprep.mubr.msk.f32.mxu1 %vm4044_vm2, %v4043_v0 }
  0xc9   :  { %v290_v42 = vpop.f32.mrf.mxu0  ;;  %3570 = vmatmul.mubr.msk.f32.gmra.mxu0 %vm72_vm1, %v71_v38 }
  0xca   :  { %v540_v43 = vmul.f32 %v4686_v39, %v290_v42  ;;  %3735 = vmatprep.mubr.msk.f32.mxu0 %vm4044_vm2, %v4043_v0 }
  0xcb   :  { %v956_v45 = vpop.f32.mrf.mxu1  ;;  %3725 = vmatmul.mubr.msk.f32.gmra.mxu1 %vm72_vm1, %v2956_v40  ;;  %v3427_v46 = vpop.f32.mrf.mxu0 }
  0xcc   :  { %v595_v47 = vadd.f32 %v4696_v41, %v540_v43  ;;  %v1200_v48 = vmul.f32 %v4686_v39, %v956_v45  ;;  %3890 = vmatprep.mubr.msk.f32.mxu1 %vm4044_vm2, %v4043_v0  ;;  %v3012_v46 = vld [vmem:[%s6044_s0 + $0x338] sm:$0xff] }
  0xcd   :  { %v3582_v50 = vpop.f32.mrf.mxu1  ;;  %v295_v51 = vpop.f32.mrf.mxu0  ;;  %3736 = vmatmul.mubr.msk.f32.vlgmr.msra.gmra.mxu0 %vm72_vm1, %v3007_v44 }
  0xce   :  { %v644_v52 = vmax.f32 %v595_v47, 0.0  ;;  %v1249_v53 = vadd.f32 %v4696_v41, %v1200_v48  ;;  %v541_v54 = vmul.f32 %v4686_v39, %v295_v51  ;;  %3738 = vmatprep.mubr.msk.f32.mxu0 %vm4044_vm2, %v4043_v0 }
  0xcf   :  { %v961_v56 = vpop.f32.mrf.mxu1  ;;  %3891 = vmatmul.mubr.msk.f32.vlgmr.msra.gmra.mxu1 %vm72_vm1, %v3106_v49  ;;  %v3430_v57 = vpop.f32.mrf.mxu0 }
  0xd0   :  { %v1298_v58 = vmax.f32 %v1249_v53, 0.0  ;;  %v596_v59 = vadd.f32 %v4696_v41, %v541_v54  ;;  %v1201_v60 = vmul.f32 %v4686_v39, %v961_v56  ;;  %3893 = vmatprep.mubr.msk.f32.mxu1 %vm4044_vm2, %v4043_v0 }
  0xd1   :  { %v3585_v62 = vpop.f32.mrf.mxu1  ;;  %v300_v63 = vpop.f32.mrf.mxu0  ;;  %3739 = vmatmul.mubr.msk.f32.gmra.mxu0 %vm72_vm1, %v3008_v55 }
  0xd2   :  { %v4730_v1 = vmax.f32 %v644_v52, %v1298_v58  ;;  %v645_v2 = vmax.f32 %v596_v59, 0.0  ;;  %v1250_v3 = vadd.f32 %v4696_v41, %v1201_v60  ;;  %v542_v4 = vmul.f32 %v4686_v39, %v300_v63  ;;  %3741 = vmatprep.mubr.msk.f32.mxu0 %vm4044_vm2, %v4043_v0  ;;  %v3111_v52 = vld [vmem:[%s6044_s0 + $0x4c0] sm:$0xff] }
  0xd3   :  { %v966_v6 = vpop.f32.mrf.mxu1  ;;  %3894 = vmatmul.mubr.msk.f32.gmra.mxu1 %vm72_vm1, %v3107_v61  ;;  %v3433_v7 = vpop.f32.mrf.mxu0  ;;  %v3013_v59 = vld [vmem:[%s6044_s0 + $0x340] sm:$0xff] }
  0xd4   :  { %v1299_v8 = vmax.f32 %v1250_v3, 0.0  ;;  %v597_v9 = vadd.f32 %v4696_v41, %v542_v4  ;;  %v1202_v10 = vmul.f32 %v4686_v39, %v966_v6  ;;  %3896 = vmatprep.mubr.msk.f32.mxu1 %vm4044_vm2, %v4043_v0  ;;  %v3112_v3 = vld [vmem:[%s6044_s0 + $0x4c8] sm:$0xff] }
  0xd5   :  { %v3588_v12 = vpop.f32.mrf.mxu1  ;;  %v305_v13 = vpop.f32.mrf.mxu0  ;;  %3742 = vmatmul.mubr.msk.f32.gmra.mxu0 %vm72_vm1, %v3009_v5 }
  0xd6   :  { %v4748_v14 = vmax.f32 %v645_v2, %v1299_v8  ;;  %v646_v15 = vmax.f32 %v597_v9, 0.0  ;;  %v1251_v16 = vadd.f32 %v4696_v41, %v1202_v10  ;;  %v543_v17 = vmul.f32 %v4686_v39, %v305_v13  ;;  %3744 = vmatprep.mubr.msk.f32.mxu0 %vm4044_vm2, %v4043_v0  ;;  %v3014_v10 = vld [vmem:[%s6044_s0 + $0x348] sm:$0xff] }
  0xd7   :  { %v971_v19 = vpop.f32.mrf.mxu1  ;;  %3897 = vmatmul.mubr.msk.f32.gmra.mxu1 %vm72_vm1, %v3108_v11  ;;  %v3436_v20 = vpop.f32.mrf.mxu0 }
  0xd8   :  { %v1300_v21 = vmax.f32 %v1251_v16, 0.0  ;;  %v598_v22 = vadd.f32 %v4696_v41, %v543_v17  ;;  %v1203_v23 = vmul.f32 %v4686_v39, %v971_v19  ;;  %3899 = vmatprep.mubr.msk.f32.mxu1 %vm4044_vm2, %v4043_v0  ;;  %v3113_v17 = vld [vmem:[%s6044_s0 + $0x4d0] sm:$0xff] }
  0xd9   :  { %v3591_v25 = vpop.f32.mrf.mxu1  ;;  %v310_v26 = vpop.f32.mrf.mxu0  ;;  %3745 = vmatmul.mubr.msk.f32.gmra.mxu0 %vm72_vm1, %v3010_v18 }
  0xda   :  { %v4766_v27 = vmax.f32 %v646_v15, %v1300_v21  ;;  %v647_v28 = vmax.f32 %v598_v22, 0.0  ;;  %v1252_v29 = vadd.f32 %v4696_v41, %v1203_v23  ;;  %v544_v30 = vmul.f32 %v4686_v39, %v310_v26  ;;  %3747 = vmatprep.mubr.msk.f32.mxu0 %vm4044_vm2, %v4043_v0 }
  0xdb   :  { %v976_v32 = vpop.f32.mrf.mxu1  ;;  %3900 = vmatmul.mubr.msk.f32.gmra.mxu1 %vm72_vm1, %v3109_v24  ;;  %v3439_v33 = vpop.f32.mrf.mxu0  ;;  %v3015_v24 = vld [vmem:[%s6044_s0 + $0x350] sm:$0xff] }
  0xdc   :  { %v1301_v34 = vmax.f32 %v1252_v29, 0.0  ;;  %v599_v35 = vadd.f32 %v4696_v41, %v544_v30  ;;  %v1204_v36 = vmul.f32 %v4686_v39, %v976_v32  ;;  %3902 = vmatprep.mubr.msk.f32.mxu1 %vm4044_vm2, %v4043_v0 }
  0xdd   :  { %v3594_v38 = vpop.f32.mrf.mxu1  ;;  %v315_v40 = vpop.f32.mrf.mxu0  ;;  %3748 = vmatmul.mubr.msk.f32.gmra.mxu0 %vm72_vm1, %v3011_v31  ;;  %v3114_v31 = vld [vmem:[%s6044_s0 + $0x4d8] sm:$0xff] }
  0xde   :  { %v4784_v42 = vmax.f32 %v647_v28, %v1301_v34  ;;  %v648_v43 = vmax.f32 %v599_v35, 0.0  ;;  %v1253_v44 = vadd.f32 %v4696_v41, %v1204_v36  ;;  %v545_v45 = vmul.f32 %v4686_v39, %v315_v40  ;;  %3750 = vmatprep.mubr.msk.f32.mxu0 %vm4044_vm2, %v4043_v0  ;;  %v3016_v38 = vld [vmem:[%s6044_s0 + $0x358] sm:$0xff] }
  0xdf   :  { %v981_v47 = vpop.f32.mrf.mxu1  ;;  %3903 = vmatmul.mubr.msk.f32.gmra.mxu1 %vm72_vm1, %v3110_v37  ;;  %v3442_v48 = vpop.f32.mrf.mxu0 }
  0xe0   :  { %v1302_v49 = vmax.f32 %v1253_v44, 0.0  ;;  %v600_v50 = vadd.f32 %v4696_v41, %v545_v45  ;;  %v1205_v51 = vmul.f32 %v4686_v39, %v981_v47  ;;  %3905 = vmatprep.mubr.msk.f32.mxu1 %vm4044_vm2, %v4043_v0  ;;  %v3115_v47 = vld [vmem:[%s6044_s0 + $0x4e0] sm:$0xff] }
  0xe1   :  { %v3597_v53 = vpop.f32.mrf.mxu1  ;;  %v320_v54 = vpop.f32.mrf.mxu0  ;;  %3751 = vmatmul.mubr.msk.f32.gmra.mxu0 %vm72_vm1, %v3012_v46 }
  0xe2   :  { %v4802_v55 = vmax.f32 %v648_v43, %v1302_v49  ;;  %v649_v56 = vmax.f32 %v600_v50, 0.0  ;;  %v1254_v57 = vadd.f32 %v4696_v41, %v1205_v51  ;;  %v546_v58 = vmul.f32 %v4686_v39, %v320_v54  ;;  %3753 = vmatprep.mubr.msk.f32.mxu0 %vm4044_vm2, %v4043_v0  ;;  %v3017_v54 = vld [vmem:[%s6044_s0 + $0x360] sm:$0xff] }
  0xe3   :  { %v986_v60 = vpop.f32.mrf.mxu1  ;;  %3906 = vmatmul.mubr.msk.f32.gmra.mxu1 %vm72_vm1, %v3111_v52  ;;  %v3445_v61 = vpop.f32.mrf.mxu0 }
  0xe4   :  { %v1303_v62 = vmax.f32 %v1254_v57, 0.0  ;;  %v601_v63 = vadd.f32 %v4696_v41, %v546_v58  ;;  %v1206_v2 = vmul.f32 %v4686_v39, %v986_v60  ;;  %3908 = vmatprep.mubr.msk.f32.mxu1 %vm4044_vm2, %v4043_v0  ;;  %v3116_v61 = vld [vmem:[%s6044_s0 + $0x4e8] sm:$0xff] }
  0xe5   :  { %v3600_v4 = vpop.f32.mrf.mxu1  ;;  %v325_v5 = vpop.f32.mrf.mxu0  ;;  %3754 = vmatmul.mubr.msk.f32.gmra.mxu0 %vm72_vm1, %v3013_v59 }
  0xe6   :  { %v4820_v6 = vmax.f32 %v649_v56, %v1303_v62  ;;  %v650_v7 = vmax.f32 %v601_v63, 0.0  ;;  %v1255_v8 = vadd.f32 %v4696_v41, %v1206_v2  ;;  %v547_v9 = vmul.f32 %v4686_v39, %v325_v5  ;;  %3756 = vmatprep.mubr.msk.f32.mxu0 %vm4044_vm2, %v4043_v0 }
  0xe7   :  { %v991_v11 = vpop.f32.mrf.mxu1  ;;  %3909 = vmatmul.mubr.msk.f32.gmra.mxu1 %vm72_vm1, %v3112_v3  ;;  %v3448_v12 = vpop.f32.mrf.mxu0 }
  0xe8   :  { %v1304_v13 = vmax.f32 %v1255_v8, 0.0  ;;  %v602_v15 = vadd.f32 %v4696_v41, %v547_v9  ;;  %v1207_v16 = vmul.f32 %v4686_v39, %v991_v11  ;;  %3911 = vmatprep.mubr.msk.f32.mxu1 %vm4044_vm2, %v4043_v0 }
  0xe9   :  { %v3603_v18 = vpop.f32.mrf.mxu1  ;;  %v330_v19 = vpop.f32.mrf.mxu0  ;;  %3757 = vmatmul.mubr.msk.f32.gmra.mxu0 %vm72_vm1, %v3014_v10 }
  0xea   :  { %v4838_v20 = vmax.f32 %v650_v7, %v1304_v13  ;;  %v651_v21 = vmax.f32 %v602_v15, 0.0  ;;  %v1256_v22 = vadd.f32 %v4696_v41, %v1207_v16  ;;  %v548_v23 = vmul.f32 %v4686_v39, %v330_v19  ;;  %3759 = vmatprep.mubr.msk.f32.mxu0 %vm4044_vm2, %v4043_v0  ;;  %v3018_v7 = vld [vmem:[%s6044_s0 + $0x368] sm:$0xff]  ;;  %v3117_v13 = vld [vmem:[%s6044_s0 + $0x4f0] sm:$0xff] }
  0xeb   :  { %v996_v25 = vpop.f32.mrf.mxu1  ;;  %3912 = vmatmul.mubr.msk.f32.gmra.mxu1 %vm72_vm1, %v3113_v17  ;;  %v3451_v26 = vpop.f32.mrf.mxu0 }
  0xec   :  { %v1305_v28 = vmax.f32 %v1256_v22, 0.0  ;;  %v603_v29 = vadd.f32 %v4696_v41, %v548_v23  ;;  %v1208_v30 = vmul.f32 %v4686_v39, %v996_v25  ;;  %3914 = vmatprep.mubr.msk.f32.mxu1 %vm4044_vm2, %v4043_v0  ;;  %v3019_v22 = vld [vmem:[%s6044_s0 + $0x370] sm:$0xff] }
  0xed   :  { %v3606_v32 = vpop.f32.mrf.mxu1  ;;  %v335_v33 = vpop.f32.mrf.mxu0  ;;  %3760 = vmatmul.mubr.msk.f32.gmra.mxu0 %vm72_vm1, %v3015_v24 }
  0xee   :  { %v4856_v34 = vmax.f32 %v651_v21, %v1305_v28  ;;  %v652_v35 = vmax.f32 %v603_v29, 0.0  ;;  %v1257_v36 = vadd.f32 %v4696_v41, %v1208_v30  ;;  %v549_v37 = vmul.f32 %v4686_v39, %v335_v33  ;;  %3762 = vmatprep.mubr.msk.f32.mxu0 %vm4044_vm2, %v4043_v0  ;;  %v3118_v29 = vld [vmem:[%s6044_s0 + $0x4f8] sm:$0xff] }
  0xef   :  { %v1001_v40 = vpop.f32.mrf.mxu1  ;;  %3915 = vmatmul.mubr.msk.f32.gmra.mxu1 %vm72_vm1, %v3114_v31  ;;  %v3454_v43 = vpop.f32.mrf.mxu0 }
  0xf0   :  { %v1306_v44 = vmax.f32 %v1257_v36, 0.0  ;;  %v604_v45 = vadd.f32 %v4696_v41, %v549_v37  ;;  %v1209_v46 = vmul.f32 %v4686_v39, %v1001_v40  ;;  %3917 = vmatprep.mubr.msk.f32.mxu1 %vm4044_vm2, %v4043_v0  ;;  %v3020_v37 = vld [vmem:[%s6044_s0 + $0x378] sm:$0xff] }
  0xf1   :  { %v3609_v48 = vpop.f32.mrf.mxu1  ;;  %v340_v49 = vpop.f32.mrf.mxu0  ;;  %3763 = vmatmul.mubr.msk.f32.gmra.mxu0 %vm72_vm1, %v3016_v38 }
  0xf2   :  { %v4874_v50 = vmax.f32 %v652_v35, %v1306_v44  ;;  %v653_v51 = vmax.f32 %v604_v45, 0.0  ;;  %v1258_v52 = vadd.f32 %v4696_v41, %v1209_v46  ;;  %v550_v53 = vmul.f32 %v4686_v39, %v340_v49  ;;  %3765 = vmatprep.mubr.msk.f32.mxu0 %vm4044_vm2, %v4043_v0  ;;  %v3119_v46 = vld [vmem:[%s6044_s0 + $0x500] sm:$0xff] }
  0xf3   :  { %v1006_v56 = vpop.f32.mrf.mxu1  ;;  %3918 = vmatmul.mubr.msk.f32.gmra.mxu1 %vm72_vm1, %v3115_v47  ;;  %v3457_v57 = vpop.f32.mrf.mxu0 }
  0xf4   :  { %v1307_v58 = vmax.f32 %v1258_v52, 0.0  ;;  %v605_v59 = vadd.f32 %v4696_v41, %v550_v53  ;;  %v1210_v60 = vmul.f32 %v4686_v39, %v1006_v56  ;;  %3920 = vmatprep.mubr.msk.f32.mxu1 %vm4044_vm2, %v4043_v0 }
  0xf5   :  { %v3612_v62 = vpop.f32.mrf.mxu1  ;;  %v345_v63 = vpop.f32.mrf.mxu0  ;;  %3766 = vmatmul.mubr.msk.f32.gmra.mxu0 %vm72_vm1, %v3017_v54  ;;  %v3021_v54 = vld [vmem:[%s6044_s0 + $0x380] sm:$0xff] }
  0xf6   :  { %v4892_v2 = vmax.f32 %v653_v51, %v1307_v58  ;;  %v654_v3 = vmax.f32 %v605_v59, 0.0  ;;  %v1259_v4 = vadd.f32 %v4696_v41, %v1210_v60  ;;  %v551_v5 = vmul.f32 %v4686_v39, %v345_v63  ;;  %3768 = vmatprep.mubr.msk.f32.mxu0 %vm4044_vm2, %v4043_v0 }
  0xf7   :  { %v1011_v8 = vpop.f32.mrf.mxu1  ;;  %3921 = vmatmul.mubr.msk.f32.gmra.mxu1 %vm72_vm1, %v3116_v61  ;;  %v3460_v9 = vpop.f32.mrf.mxu0  ;;  %v3120_v61 = vld [vmem:[%s6044_s0 + $0x508] sm:$0xff] }
  0xf8   :  { %v1308_v10 = vmax.f32 %v1259_v4, 0.0  ;;  %v606_v11 = vadd.f32 %v4696_v41, %v551_v5  ;;  %v1211_v12 = vmul.f32 %v4686_v39, %v1011_v8  ;;  %3923 = vmatprep.mubr.msk.f32.mxu1 %vm4044_vm2, %v4043_v0  ;;  %v3022_v8 = vld [vmem:[%s6044_s0 + $0x388] sm:$0xff] }
  0xf9   :  { %v3615_v15 = vpop.f32.mrf.mxu1  ;;  %v350_v16 = vpop.f32.mrf.mxu0  ;;  %3769 = vmatmul.mubr.msk.f32.gmra.mxu0 %vm72_vm1, %v3018_v7 }
  0xfa   :  { %v4910_v17 = vmax.f32 %v654_v3, %v1308_v10  ;;  %v655_v18 = vmax.f32 %v606_v11, 0.0  ;;  %v1260_v19 = vadd.f32 %v4696_v41, %v1211_v12  ;;  %v552_v21 = vmul.f32 %v4686_v39, %v350_v16  ;;  %3771 = vmatprep.mubr.msk.f32.mxu0 %vm4044_vm2, %v4043_v0  ;;  %v3121_v15 = vld [vmem:[%s6044_s0 + $0x510] sm:$0xff] }
  0xfb   :  { %v1016_v23 = vpop.f32.mrf.mxu1  ;;  %3924 = vmatmul.mubr.msk.f32.gmra.mxu1 %vm72_vm1, %v3117_v13  ;;  %v3463_v24 = vpop.f32.mrf.mxu0 }
  0xfc   :  { %v1309_v25 = vmax.f32 %v1260_v19, 0.0  ;;  %v607_v26 = vadd.f32 %v4696_v41, %v552_v21  ;;  %v1212_v28 = vmul.f32 %v4686_v39, %v1016_v23  ;;  %3926 = vmatprep.mubr.msk.f32.mxu1 %vm4044_vm2, %v4043_v0  ;;  %v3023_v24 = vld [vmem:[%s6044_s0 + $0x390] sm:$0xff] }
  0xfd   :  { %v3618_v30 = vpop.f32.mrf.mxu1  ;;  %v355_v31 = vpop.f32.mrf.mxu0  ;;  %3772 = vmatmul.mubr.msk.f32.gmra.mxu0 %vm72_vm1, %v3019_v22 }
  0xfe   :  { %v4928_v32 = vmax.f32 %v655_v18, %v1309_v25  ;;  %v656_v33 = vmax.f32 %v607_v26, 0.0  ;;  %v1261_v35 = vadd.f32 %v4696_v41, %v1212_v28  ;;  %v553_v36 = vmul.f32 %v4686_v39, %v355_v31  ;;  %3774 = vmatprep.mubr.msk.f32.mxu0 %vm4044_vm2, %v4043_v0  ;;  %v3122_v31 = vld [vmem:[%s6044_s0 + $0x518] sm:$0xff] }
  0xff   :  { %v1021_v38 = vpop.f32.mrf.mxu1  ;;  %3927 = vmatmul.mubr.msk.f32.gmra.mxu1 %vm72_vm1, %v3118_v29  ;;  %v3466_v40 = vpop.f32.mrf.mxu0 }
 0x100   :  { %v1310_v43 = vmax.f32 %v1261_v35, 0.0  ;;  %v608_v44 = vadd.f32 %v4696_v41, %v553_v36  ;;  %v1213_v45 = vmul.f32 %v4686_v39, %v1021_v38  ;;  %3929 = vmatprep.mubr.msk.f32.mxu1 %vm4044_vm2, %v4043_v0 }
 0x101   :  { %v3621_v47 = vpop.f32.mrf.mxu1  ;;  %v360_v48 = vpop.f32.mrf.mxu0  ;;  %3775 = vmatmul.mubr.msk.f32.gmra.mxu0 %vm72_vm1, %v3020_v37 }
 0x102   :  { %v4946_v49 = vmax.f32 %v656_v33, %v1310_v43  ;;  %v657_v51 = vmax.f32 %v608_v44, 0.0  ;;  %v1262_v52 = vadd.f32 %v4696_v41, %v1213_v45  ;;  %v554_v53 = vmul.f32 %v4686_v39, %v360_v48  ;;  %3777 = vmatprep.mubr.msk.f32.mxu0 %vm4044_vm2, %v4043_v0  ;;  %v3024_v43 = vld [vmem:[%s6044_s0 + $0x398] sm:$0xff] }
 0x103   :  { %v1026_v56 = vpop.f32.mrf.mxu1  ;;  %3930 = vmatmul.mubr.msk.f32.gmra.mxu1 %vm72_vm1, %v3119_v46  ;;  %v3469_v57 = vpop.f32.mrf.mxu0 }
 0x104   :  { %v1311_v58 = vmax.f32 %v1262_v52, 0.0  ;;  %v609_v59 = vadd.f32 %v4696_v41, %v554_v53  ;;  %v1214_v60 = vmul.f32 %v4686_v39, %v1026_v56  ;;  %3932 = vmatprep.mubr.msk.f32.mxu1 %vm4044_vm2, %v4043_v0 }
 0x105   :  { %v3624_v62 = vpop.f32.mrf.mxu1  ;;  %v365_v63 = vpop.f32.mrf.mxu0  ;;  %3778 = vmatmul.mubr.msk.f32.gmra.mxu0 %vm72_vm1, %v3021_v54 }
 0x106   :  { %v4964_v3 = vmax.f32 %v657_v51, %v1311_v58  ;;  %v658_v4 = vmax.f32 %v609_v59, 0.0  ;;  %v1263_v5 = vadd.f32 %v4696_v41, %v1214_v60  ;;  %v555_v7 = vmul.f32 %v4686_v39, %v365_v63  ;;  %3780 = vmatprep.mubr.msk.f32.mxu0 %vm4044_vm2, %v4043_v0  ;;  %v3123_v51 = vld [vmem:[%s6044_s0 + $0x520] sm:$0xff] }
 0x107   :  { %v1031_v9 = vpop.f32.mrf.mxu1  ;;  %3933 = vmatmul.mubr.msk.f32.gmra.mxu1 %vm72_vm1, %v3120_v61  ;;  %v3472_v10 = vpop.f32.mrf.mxu0  ;;  %v3025_v59 = vld [vmem:[%s6044_s0 + $0x3a0] sm:$0xff] }
 0x108   :  { %v1312_v11 = vmax.f32 %v1263_v5, 0.0  ;;  %v610_v12 = vadd.f32 %v4696_v41, %v555_v7  ;;  %v1215_v13 = vmul.f32 %v4686_v39, %v1031_v9  ;;  %3935 = vmatprep.mubr.msk.f32.mxu1 %vm4044_vm2, %v4043_v0  ;;  %v3124_v5 = vld [vmem:[%s6044_s0 + $0x528] sm:$0xff] }
 0x109   :  { %v3627_v16 = vpop.f32.mrf.mxu1  ;;  %v370_v18 = vpop.f32.mrf.mxu0  ;;  %3781 = vmatmul.mubr.msk.f32.gmra.mxu0 %vm72_vm1, %v3022_v8 }
 0x10a   :  { %v4982_v19 = vmax.f32 %v658_v4, %v1312_v11  ;;  %v659_v21 = vmax.f32 %v610_v12, 0.0  ;;  %v1264_v22 = vadd.f32 %v4696_v41, %v1215_v13  ;;  %v556_v23 = vmul.f32 %v4686_v39, %v370_v18  ;;  %3783 = vmatprep.mubr.msk.f32.mxu0 %vm4044_vm2, %v4043_v0  ;;  %v3026_v13 = vld [vmem:[%s6044_s0 + $0x3a8] sm:$0xff] }
 0x10b   :  { %v1036_v25 = vpop.f32.mrf.mxu1  ;;  %3936 = vmatmul.mubr.msk.f32.gmra.mxu1 %vm72_vm1, %v3121_v15  ;;  %v3475_v26 = vpop.f32.mrf.mxu0 }
 0x10c   :  { %v1313_v28 = vmax.f32 %v1264_v22, 0.0  ;;  %v611_v29 = vadd.f32 %v4696_v41, %v556_v23  ;;  %v1216_v30 = vmul.f32 %v4686_v39, %v1036_v25  ;;  %3938 = vmatprep.mubr.msk.f32.mxu1 %vm4044_vm2, %v4043_v0  ;;  %v3125_v23 = vld [vmem:[%s6044_s0 + $0x530] sm:$0xff] }
 0x10d   :  { %v3630_v33 = vpop.f32.mrf.mxu1  ;;  %v375_v35 = vpop.f32.mrf.mxu0  ;;  %3784 = vmatmul.mubr.msk.f32.gmra.mxu0 %vm72_vm1, %v3023_v24 }
 0x10e   :  { %v5000_v36 = vmax.f32 %v659_v21, %v1313_v28  ;;  %v660_v37 = vmax.f32 %v611_v29, 0.0  ;;  %v1265_v38 = vadd.f32 %v4696_v41, %v1216_v30  ;;  %v557_v40 = vmul.f32 %v4686_v39, %v375_v35  ;;  %3786 = vmatprep.mubr.msk.f32.mxu0 %vm4044_vm2, %v4043_v0 }
 0x10f   :  { %v1041_v44 = vpop.f32.mrf.mxu1  ;;  %3939 = vmatmul.mubr.msk.f32.gmra.mxu1 %vm72_vm1, %v3122_v31  ;;  %v3478_v45 = vpop.f32.mrf.mxu0  ;;  %v3027_v31 = vld [vmem:[%s6044_s0 + $0x3b0] sm:$0xff] }
 0x110   :  { %v1314_v46 = vmax.f32 %v1265_v38, 0.0  ;;  %v612_v47 = vadd.f32 %v4696_v41, %v557_v40  ;;  %v1217_v48 = vmul.f32 %v4686_v39, %v1041_v44  ;;  %3941 = vmatprep.mubr.msk.f32.mxu1 %vm4044_vm2, %v4043_v0 }
 0x111   :  { %v3633_v52 = vpop.f32.mrf.mxu1  ;;  %v380_v53 = vpop.f32.mrf.mxu0  ;;  %3787 = vmatmul.mubr.msk.f32.gmra.mxu0 %vm72_vm1, %v3024_v43  ;;  %v3126_v43 = vld [vmem:[%s6044_s0 + $0x538] sm:$0xff] }
 0x112   :  { %v5018_v54 = vmax.f32 %v660_v37, %v1314_v46  ;;  %v661_v56 = vmax.f32 %v612_v47, 0.0  ;;  %v1266_v57 = vadd.f32 %v4696_v41, %v1217_v48  ;;  %v558_v58 = vmul.f32 %v4686_v39, %v380_v53  ;;  %3789 = vmatprep.mubr.msk.f32.mxu0 %vm4044_vm2, %v4043_v0  ;;  %v3028_v52 = vld [vmem:[%s6044_s0 + $0x3b8] sm:$0xff] }
 0x113   :  { %v1046_v60 = vpop.f32.mrf.mxu1  ;;  %3942 = vmatmul.mubr.msk.f32.gmra.mxu1 %vm72_vm1, %v3123_v51  ;;  %v3481_v61 = vpop.f32.mrf.mxu0 }
 0x114   :  { %v1315_v62 = vmax.f32 %v1266_v57, 0.0  ;;  %v613_v63 = vadd.f32 %v4696_v41, %v558_v58  ;;  %v1218_v4 = vmul.f32 %v4686_v39, %v1046_v60  ;;  %3944 = vmatprep.mubr.msk.f32.mxu1 %vm4044_vm2, %v4043_v0  ;;  %v3127_v60 = vld [vmem:[%s6044_s0 + $0x540] sm:$0xff] }
 0x115   :  { %v3636_v7 = vpop.f32.mrf.mxu1  ;;  %v385_v8 = vpop.f32.mrf.mxu0  ;;  %3790 = vmatmul.mubr.msk.f32.gmra.mxu0 %vm72_vm1, %v3025_v59 }
 0x116   :  { %v5036_v9 = vmax.f32 %v661_v56, %v1315_v62  ;;  %v662_v10 = vmax.f32 %v613_v63, 0.0  ;;  %v1267_v11 = vadd.f32 %v4696_v41, %v1218_v4  ;;  %v559_v12 = vmul.f32 %v4686_v39, %v385_v8  ;;  %3792 = vmatprep.mubr.msk.f32.mxu0 %vm4044_vm2, %v4043_v0  ;;  %v3029_v8 = vld [vmem:[%s6044_s0 + $0x3c0] sm:$0xff] }
 0x117   :  { %v1051_v15 = vpop.f32.mrf.mxu1  ;;  %3945 = vmatmul.mubr.msk.f32.gmra.mxu1 %vm72_vm1, %v3124_v5  ;;  %v3484_v16 = vpop.f32.mrf.mxu0 }
 0x118   :  { %v1316_v18 = vmax.f32 %v1267_v11, 0.0  ;;  %v614_v21 = vadd.f32 %v4696_v41, %v559_v12  ;;  %v1219_v22 = vmul.f32 %v4686_v39, %v1051_v15  ;;  %3947 = vmatprep.mubr.msk.f32.mxu1 %vm4044_vm2, %v4043_v0  ;;  %v3128_v16 = vld [vmem:[%s6044_s0 + $0x548] sm:$0xff] }
 0x119   :  { %v3639_v24 = vpop.f32.mrf.mxu1  ;;  %v390_v25 = vpop.f32.mrf.mxu0  ;;  %3793 = vmatmul.mubr.msk.f32.gmra.mxu0 %vm72_vm1, %v3026_v13 }
 0x11a   :  { %v5054_v26 = vmax.f32 %v662_v10, %v1316_v18  ;;  %v663_v28 = vmax.f32 %v614_v21, 0.0  ;;  %v1268_v29 = vadd.f32 %v4696_v41, %v1219_v22  ;;  %v560_v30 = vmul.f32 %v4686_v39, %v390_v25  ;;  %3795 = vmatprep.mubr.msk.f32.mxu0 %vm4044_vm2, %v4043_v0 }
 0x11b   :  { %v1056_v33 = vpop.f32.mrf.mxu1  ;;  %3948 = vmatmul.mubr.msk.f32.gmra.mxu1 %vm72_vm1, %v3125_v23  ;;  %v3487_v35 = vpop.f32.mrf.mxu0 }
 0x11c   :  { %v1317_v37 = vmax.f32 %v1268_v29, 0.0  ;;  %v615_v38 = vadd.f32 %v4696_v41, %v560_v30  ;;  %v1220_v40 = vmul.f32 %v4686_v39, %v1056_v33  ;;  %3950 = vmatprep.mubr.msk.f32.mxu1 %vm4044_vm2, %v4043_v0 }
 0x11d   :  { %v3642_v44 = vpop.f32.mrf.mxu1  ;;  %v395_v45 = vpop.f32.mrf.mxu0  ;;  %3796 = vmatmul.mubr.msk.f32.gmra.mxu0 %vm72_vm1, %v3027_v31 }
 0x11e   :  { %v5072_v46 = vmax.f32 %v663_v28, %v1317_v37  ;;  %v664_v47 = vmax.f32 %v615_v38, 0.0  ;;  %v1269_v48 = vadd.f32 %v4696_v41, %v1220_v40  ;;  %v561_v51 = vmul.f32 %v4686_v39, %v395_v45  ;;  %3798 = vmatprep.mubr.msk.f32.mxu0 %vm4044_vm2, %v4043_v0  ;;  %v3030_v28 = vld [vmem:[%s6044_s0 + $0x3c8] sm:$0xff]  ;;  %v3129_v37 = vld [vmem:[%s6044_s0 + $0x550] sm:$0xff] }
 0x11f   :  { %v1061_v53 = vpop.f32.mrf.mxu1  ;;  %3951 = vmatmul.mubr.msk.f32.gmra.mxu1 %vm72_vm1, %v3126_v43  ;;  %v3490_v56 = vpop.f32.mrf.mxu0 }
 0x120   :  { %v1318_v57 = vmax.f32 %v1269_v48, 0.0  ;;  %v616_v58 = vadd.f32 %v4696_v41, %v561_v51  ;;  %v1221_v59 = vmul.f32 %v4686_v39, %v1061_v53  ;;  %3953 = vmatprep.mubr.msk.f32.mxu1 %vm4044_vm2, %v4043_v0  ;;  %v3031_v48 = vld [vmem:[%s6044_s0 + $0x3d0] sm:$0xff] }
 0x121   :  { %v3645_v61 = vpop.f32.mrf.mxu1  ;;  %v400_v62 = vpop.f32.mrf.mxu0  ;;  %3799 = vmatmul.mubr.msk.f32.gmra.mxu0 %vm72_vm1, %v3028_v52 }
 0x122   :  { %v5090_v63 = vmax.f32 %v664_v47, %v1318_v57  ;;  %v665_v4 = vmax.f32 %v616_v58, 0.0  ;;  %v1270_v5 = vadd.f32 %v4696_v41, %v1221_v59  ;;  %v562_v7 = vmul.f32 %v4686_v39, %v400_v62  ;;  %3801 = vmatprep.mubr.msk.f32.mxu0 %vm4044_vm2, %v4043_v0  ;;  %v3130_v58 = vld [vmem:[%s6044_s0 + $0x558] sm:$0xff] }
 0x123   :  { %v1066_v10 = vpop.f32.mrf.mxu1  ;;  %3954 = vmatmul.mubr.msk.f32.gmra.mxu1 %vm72_vm1, %v3127_v60  ;;  %v3493_v11 = vpop.f32.mrf.mxu0 }
 0x124   :  { %v1319_v12 = vmax.f32 %v1270_v5, 0.0  ;;  %v617_v13 = vadd.f32 %v4696_v41, %v562_v7  ;;  %v1222_v15 = vmul.f32 %v4686_v39, %v1066_v10  ;;  %3956 = vmatprep.mubr.msk.f32.mxu1 %vm4044_vm2, %v4043_v0  ;;  %v3032_v7 = vld [vmem:[%s6044_s0 + $0x3d8] sm:$0xff] }
 0x125   :  { %v3648_v18 = vpop.f32.mrf.mxu1  ;;  %v405_v21 = vpop.f32.mrf.mxu0  ;;  %3802 = vmatmul.mubr.msk.f32.gmra.mxu0 %vm72_vm1, %v3029_v8 }
 0x126   :  { %v5108_v22 = vmax.f32 %v665_v4, %v1319_v12  ;;  %v666_v23 = vmax.f32 %v617_v13, 0.0  ;;  %v1271_v24 = vadd.f32 %v4696_v41, %v1222_v15  ;;  %v563_v25 = vmul.f32 %v4686_v39, %v405_v21  ;;  %3804 = vmatprep.mubr.msk.f32.mxu0 %vm4044_vm2, %v4043_v0  ;;  %v3131_v15 = vld [vmem:[%s6044_s0 + $0x560] sm:$0xff] }
 0x127   :  { %v1071_v29 = vpop.f32.mrf.mxu1  ;;  %3957 = vmatmul.mubr.msk.f32.gmra.mxu1 %vm72_vm1, %v3128_v16  ;;  %v3496_v30 = vpop.f32.mrf.mxu0 }
 0x128   :  { %v1320_v31 = vmax.f32 %v1271_v24, 0.0  ;;  %v618_v33 = vadd.f32 %v4696_v41, %v563_v25  ;;  %v1223_v35 = vmul.f32 %v4686_v39, %v1071_v29  ;;  %3959 = vmatprep.mubr.msk.f32.mxu1 %vm4044_vm2, %v4043_v0 }
 0x129   :  { %v3651_v38 = vpop.f32.mrf.mxu1  ;;  %v410_v40 = vpop.f32.mrf.mxu0  ;;  %3805 = vmatmul.mubr.msk.f32.gmra.mxu0 %vm72_vm1, %v3030_v28  ;;  %v3033_v28 = vld [vmem:[%s6044_s0 + $0x3e0] sm:$0xff] }
 0x12a   :  { %v5126_v43 = vmax.f32 %v666_v23, %v1320_v31  ;;  %v667_v44 = vmax.f32 %v618_v33, 0.0  ;;  %v1272_v45 = vadd.f32 %v4696_v41, %v1223_v35  ;;  %v564_v47 = vmul.f32 %v4686_v39, %v410_v40  ;;  %3807 = vmatprep.mubr.msk.f32.mxu0 %vm4044_vm2, %v4043_v0 }
 0x12b   :  { %v1076_v51 = vpop.f32.mrf.mxu1  ;;  %3960 = vmatmul.mubr.msk.f32.gmra.mxu1 %vm72_vm1, %v3129_v37  ;;  %v3499_v52 = vpop.f32.mrf.mxu0  ;;  %v3132_v37 = vld [vmem:[%s6044_s0 + $0x568] sm:$0xff] }
 0x12c   :  { %v1321_v53 = vmax.f32 %v1272_v45, 0.0  ;;  %v619_v56 = vadd.f32 %v4696_v41, %v564_v47  ;;  %v1224_v57 = vmul.f32 %v4686_v39, %v1076_v51  ;;  %3962 = vmatprep.mubr.msk.f32.mxu1 %vm4044_vm2, %v4043_v0  ;;  %v3034_v51 = vld [vmem:[%s6044_s0 + $0x3e8] sm:$0xff] }
 0x12d   :  { %v3654_v59 = vpop.f32.mrf.mxu1  ;;  %v415_v60 = vpop.f32.mrf.mxu0  ;;  %3808 = vmatmul.mubr.msk.f32.gmra.mxu0 %vm72_vm1, %v3031_v48 }
 0x12e   :  { %v5144_v61 = vmax.f32 %v667_v44, %v1321_v53  ;;  %v668_v62 = vmax.f32 %v619_v56, 0.0  ;;  %v1273_v4 = vadd.f32 %v4696_v41, %v1224_v57  ;;  %v565_v5 = vmul.f32 %v4686_v39, %v415_v60  ;;  %3810 = vmatprep.mubr.msk.f32.mxu0 %vm4044_vm2, %v4043_v0  ;;  %v3133_v59 = vld [vmem:[%s6044_s0 + $0x570] sm:$0xff] }
 0x12f   :  { %v1081_v8 = vpop.f32.mrf.mxu1  ;;  %3963 = vmatmul.mubr.msk.f32.gmra.mxu1 %vm72_vm1, %v3130_v58  ;;  %v3502_v10 = vpop.f32.mrf.mxu0 }
 0x130   :  { %v1322_v11 = vmax.f32 %v1273_v4, 0.0  ;;  %v620_v12 = vadd.f32 %v4696_v41, %v565_v5  ;;  %v1225_v13 = vmul.f32 %v4686_v39, %v1081_v8  ;;  %3965 = vmatprep.mubr.msk.f32.mxu1 %vm4044_vm2, %v4043_v0  ;;  %v3035_v10 = vld [vmem:[%s6044_s0 + $0x3f0] sm:$0xff] }
 0x131   :  { %v3657_v16 = vpop.f32.mrf.mxu1  ;;  %v420_v18 = vpop.f32.mrf.mxu0  ;;  %3811 = vmatmul.mubr.msk.f32.gmra.mxu0 %vm72_vm1, %v3032_v7 }
 0x132   :  { %v5162_v21 = vmax.f32 %v668_v62, %v1322_v11  ;;  %v669_v23 = vmax.f32 %v620_v12, 0.0  ;;  %v1274_v24 = vadd.f32 %v4696_v41, %v1225_v13  ;;  %v566_v25 = vmul.f32 %v4686_v39, %v420_v18  ;;  %3813 = vmatprep.mubr.msk.f32.mxu0 %vm4044_vm2, %v4043_v0  ;;  %v3134_v18 = vld [vmem:[%s6044_s0 + $0x578] sm:$0xff] }
 0x133   :  { %v1086_v29 = vpop.f32.mrf.mxu1  ;;  %3966 = vmatmul.mubr.msk.f32.gmra.mxu1 %vm72_vm1, %v3131_v15  ;;  %v3505_v30 = vpop.f32.mrf.mxu0 }
 0x134   :  { %v1323_v31 = vmax.f32 %v1274_v24, 0.0  ;;  %v621_v33 = vadd.f32 %v4696_v41, %v566_v25  ;;  %v1226_v35 = vmul.f32 %v4686_v39, %v1086_v29  ;;  %3968 = vmatprep.mubr.msk.f32.mxu1 %vm4044_vm2, %v4043_v0 }
 0x135   :  { %v3660_v38 = vpop.f32.mrf.mxu1  ;;  %v425_v40 = vpop.f32.mrf.mxu0  ;;  %3814 = vmatmul.mubr.msk.f32.gmra.mxu0 %vm72_vm1, %v3033_v28 }
 0x136   :  { %v5180_v44 = vmax.f32 %v669_v23, %v1323_v31  ;;  %v670_v45 = vmax.f32 %v621_v33, 0.0  ;;  %v1275_v47 = vadd.f32 %v4696_v41, %v1226_v35  ;;  %v567_v48 = vmul.f32 %v4686_v39, %v425_v40  ;;  %3816 = vmatprep.mubr.msk.f32.mxu0 %vm4044_vm2, %v4043_v0  ;;  %v3036_v31 = vld [vmem:[%s6044_s0 + $0x3f8] sm:$0xff] }
 0x137   :  { %v1091_v52 = vpop.f32.mrf.mxu1  ;;  %3969 = vmatmul.mubr.msk.f32.gmra.mxu1 %vm72_vm1, %v3132_v37  ;;  %v3508_v53 = vpop.f32.mrf.mxu0 }
 0x138   :  { %v1324_v56 = vmax.f32 %v1275_v47, 0.0  ;;  %v622_v57 = vadd.f32 %v4696_v41, %v567_v48  ;;  %v1227_v58 = vmul.f32 %v4686_v39, %v1091_v52  ;;  %3971 = vmatprep.mubr.msk.f32.mxu1 %vm4044_vm2, %v4043_v0 }
 0x139   :  { %v3663_v60 = vpop.f32.mrf.mxu1  ;;  %v430_v62 = vpop.f32.mrf.mxu0  ;;  %3817 = vmatmul.mubr.msk.f32.gmra.mxu0 %vm72_vm1, %v3034_v51 }
 0x13a   :  { %v5198_v4 = vmax.f32 %v670_v45, %v1324_v56  ;;  %v671_v5 = vmax.f32 %v622_v57, 0.0  ;;  %v1276_v7 = vadd.f32 %v4696_v41, %v1227_v58  ;;  %v568_v8 = vmul.f32 %v4686_v39, %v430_v62  ;;  %3819 = vmatprep.mubr.msk.f32.mxu0 %vm4044_vm2, %v4043_v0  ;;  %v3135_v45 = vld [vmem:[%s6044_s0 + $0x580] sm:$0xff] }
 0x13b   :  { %v1096_v11 = vpop.f32.mrf.mxu1  ;;  %3972 = vmatmul.mubr.msk.f32.gmra.mxu1 %vm72_vm1, %v3133_v59  ;;  %v3511_v12 = vpop.f32.mrf.mxu0  ;;  %v3037_v57 = vld [vmem:[%s6044_s0 + $0x400] sm:$0xff] }
 0x13c   :  { %v1325_v13 = vmax.f32 %v1276_v7, 0.0  ;;  %v623_v15 = vadd.f32 %v4696_v41, %v568_v8  ;;  %v1228_v16 = vmul.f32 %v4686_v39, %v1096_v11  ;;  %3974 = vmatprep.mubr.msk.f32.mxu1 %vm4044_vm2, %v4043_v0  ;;  %v3136_v7 = vld [vmem:[%s6044_s0 + $0x588] sm:$0xff] }
 0x13d   :  { %v3666_v23 = vpop.f32.mrf.mxu1  ;;  %v435_v24 = vpop.f32.mrf.mxu0  ;;  %3820 = vmatmul.mubr.msk.f32.gmra.mxu0 %vm72_vm1, %v3035_v10 }
 0x13e   :  { %v5216_v25 = vmax.f32 %v671_v5, %v1325_v13  ;;  %v672_v28 = vmax.f32 %v623_v15, 0.0  ;;  %v1277_v29 = vadd.f32 %v4696_v41, %v1228_v16  ;;  %v569_v30 = vmul.f32 %v4686_v39, %v435_v24  ;;  %3822 = vmatprep.mubr.msk.f32.mxu0 %vm4044_vm2, %v4043_v0  ;;  %v3038_v16 = vld [vmem:[%s6044_s0 + $0x408] sm:$0xff] }
 0x13f   :  { %v1101_v33 = vpop.f32.mrf.mxu1  ;;  %3975 = vmatmul.mubr.msk.f32.gmra.mxu1 %vm72_vm1, %v3134_v18  ;;  %v3514_v35 = vpop.f32.mrf.mxu0 }
 0x140   :  { %v1326_v37 = vmax.f32 %v1277_v29, 0.0  ;;  %v624_v38 = vadd.f32 %v4696_v41, %v569_v30  ;;  %v1229_v40 = vmul.f32 %v4686_v39, %v1101_v33  ;;  %3977 = vmatprep.mubr.msk.f32.mxu1 %vm4044_vm2, %v4043_v0  ;;  %v5240_v39 = vld [vmem:[%s6045_s2] ss:$0 sm:$0xff]  ;;  %v3137_v30 = vld [vmem:[%s6044_s0 + $0x590] sm:$0xff] }
 0x141   :  { %v3669_v47 = vpop.f32.mrf.mxu1  ;;  %v440_v48 = vpop.f32.mrf.mxu0  ;;  %3823 = vmatmul.mubr.msk.f32.gmra.mxu0 %vm72_vm1, %v3036_v31 }
 0x142   :  { %v5234_v51 = vmax.f32 %v672_v28, %v1326_v37  ;;  %v673_v52 = vmax.f32 %v624_v38, 0.0  ;;  %v1278_v53 = vadd.f32 %v4696_v41, %v1229_v40  ;;  %v570_v56 = vmul.f32 %v5240_v39, %v440_v48  ;;  %3825 = vmatprep.mubr.msk.f32.mxu0 %vm4044_vm2, %v4043_v0  ;;  %v5252_v41 = vld [vmem:[%s6046_s3] ss:$0 sm:$0xff] }
 0x143   :  { %v1106_v58 = vpop.f32.mrf.mxu1  ;;  %3978 = vmatmul.mubr.msk.f32.gmra.mxu1 %vm72_vm1, %v3135_v45  ;;  %v3517_v59 = vpop.f32.mrf.mxu0  ;;  %v3039_v45 = vld [vmem:[%s6044_s0 + $0x410] sm:$0xff] }
 0x144   :  { %v1327_v60 = vmax.f32 %v1278_v53, 0.0  ;;  %v625_v62 = vadd.f32 %v5252_v41, %v570_v56  ;;  %v1230_v5 = vmul.f32 %v5240_v39, %v1106_v58  ;;  %3980 = vmatprep.mubr.msk.f32.mxu1 %vm4044_vm2, %v4043_v0 }
 0x145   :  { %v3672_v8 = vpop.f32.mrf.mxu1  ;;  %v445_v10 = vpop.f32.mrf.mxu0  ;;  %3826 = vmatmul.mubr.msk.f32.gmra.mxu0 %vm72_vm1, %v3037_v57  ;;  %v3138_v57 = vld [vmem:[%s6044_s0 + $0x598] sm:$0xff] }
 0x146   :  { %v5262_v11 = vmax.f32 %v673_v52, %v1327_v60  ;;  %v674_v12 = vmax.f32 %v625_v62, 0.0  ;;  %v1279_v13 = vadd.f32 %v5252_v41, %v1230_v5  ;;  %v571_v15 = vmul.f32 %v5240_v39, %v445_v10  ;;  %3828 = vmatprep.mubr.msk.f32.mxu0 %vm4044_vm2, %v4043_v0  ;;  %v3040_v8 = vld [vmem:[%s6044_s0 + $0x418] sm:$0xff] }
 0x147   :  { %v1111_v18 = vpop.f32.mrf.mxu1  ;;  %3981 = vmatmul.mubr.msk.f32.gmra.mxu1 %vm72_vm1, %v3136_v7  ;;  %v3520_v23 = vpop.f32.mrf.mxu0 }
 0x148   :  { %v1328_v24 = vmax.f32 %v1279_v13, 0.0  ;;  %v626_v28 = vadd.f32 %v5252_v41, %v571_v15  ;;  %v1231_v29 = vmul.f32 %v5240_v39, %v1111_v18  ;;  %3983 = vmatprep.mubr.msk.f32.mxu1 %vm4044_vm2, %v4043_v0  ;;  %v3139_v18 = vld [vmem:[%s6044_s0 + $0x5a0] sm:$0xff] }
 0x149   :  { %v3675_v31 = vpop.f32.mrf.mxu1  ;;  %v450_v33 = vpop.f32.mrf.mxu0  ;;  %3829 = vmatmul.mubr.msk.f32.gmra.mxu0 %vm72_vm1, %v3038_v16 }
 0x14a   :  { %v5280_v35 = vmax.f32 %v674_v12, %v1328_v24  ;;  %v675_v37 = vmax.f32 %v626_v28, 0.0  ;;  %v1280_v38 = vadd.f32 %v5252_v41, %v1231_v29  ;;  %v572_v40 = vmul.f32 %v5240_v39, %v450_v33  ;;  %3831 = vmatprep.mubr.msk.f32.mxu0 %vm4044_vm2, %v4043_v0  ;;  %v3041_v33 = vld [vmem:[%s6044_s0 + $0x420] sm:$0xff] }
 0x14b   :  { %v1116_v47 = vpop.f32.mrf.mxu1  ;;  %3984 = vmatmul.mubr.msk.f32.gmra.mxu1 %vm72_vm1, %v3137_v30  ;;  %v3523_v48 = vpop.f32.mrf.mxu0 }
 0x14c   :  { %v1329_v52 = vmax.f32 %v1280_v38, 0.0  ;;  %v627_v53 = vadd.f32 %v5252_v41, %v572_v40  ;;  %v1232_v56 = vmul.f32 %v5240_v39, %v1116_v47  ;;  %3986 = vmatprep.mubr.msk.f32.mxu1 %vm4044_vm2, %v4043_v0  ;;  %v3140_v48 = vld [vmem:[%s6044_s0 + $0x5a8] sm:$0xff] }
 0x14d   :  { %v3678_v58 = vpop.f32.mrf.mxu1  ;;  %v455_v59 = vpop.f32.mrf.mxu0  ;;  %3832 = vmatmul.mubr.msk.f32.gmra.mxu0 %vm72_vm1, %v3039_v45 }
 0x14e   :  { %v5298_v60 = vmax.f32 %v675_v37, %v1329_v52  ;;  %v676_v62 = vmax.f32 %v627_v53, 0.0  ;;  %v1281_v5 = vadd.f32 %v5252_v41, %v1232_v56  ;;  %v573_v7 = vmul.f32 %v5240_v39, %v455_v59  ;;  %3834 = vmatprep.mubr.msk.f32.mxu0 %vm4044_vm2, %v4043_v0 }
 0x14f   :  { %v1121_v10 = vpop.f32.mrf.mxu1  ;;  %3987 = vmatmul.mubr.msk.f32.gmra.mxu1 %vm72_vm1, %v3138_v57  ;;  %v3526_v12 = vpop.f32.mrf.mxu0 }
 0x150   :  { %v1330_v13 = vmax.f32 %v1281_v5, 0.0  ;;  %v628_v15 = vadd.f32 %v5252_v41, %v573_v7  ;;  %v1233_v16 = vmul.f32 %v5240_v39, %v1121_v10  ;;  %3989 = vmatprep.mubr.msk.f32.mxu1 %vm4044_vm2, %v4043_v0 }
 0x151   :  { %v3681_v23 = vpop.f32.mrf.mxu1  ;;  %v460_v24 = vpop.f32.mrf.mxu0  ;;  %3835 = vmatmul.mubr.msk.f32.gmra.mxu0 %vm72_vm1, %v3040_v8 }
 0x152   :  { %v5316_v28 = vmax.f32 %v676_v62, %v1330_v13  ;;  %v677_v29 = vmax.f32 %v628_v15, 0.0  ;;  %v1282_v30 = vadd.f32 %v5252_v41, %v1233_v16  ;;  %v574_v31 = vmul.f32 %v5240_v39, %v460_v24  ;;  %3837 = vmatprep.mubr.msk.f32.mxu0 %vm4044_vm2, %v4043_v0  ;;  %v3042_v62 = vld [vmem:[%s6044_s0 + $0x428] sm:$0xff]  ;;  %v3141_v13 = vld [vmem:[%s6044_s0 + $0x5b0] sm:$0xff] }
 0x153   :  { %v1126_v37 = vpop.f32.mrf.mxu1  ;;  %3990 = vmatmul.mubr.msk.f32.gmra.mxu1 %vm72_vm1, %v3139_v18  ;;  %v3529_v38 = vpop.f32.mrf.mxu0 }
 0x154   :  { %v1331_v40 = vmax.f32 %v1282_v30, 0.0  ;;  %v629_v45 = vadd.f32 %v5252_v41, %v574_v31  ;;  %v1234_v47 = vmul.f32 %v5240_v39, %v1126_v37  ;;  %3992 = vmatprep.mubr.msk.f32.mxu1 %vm4044_vm2, %v4043_v0  ;;  %v3043_v30 = vld [vmem:[%s6044_s0 + $0x430] sm:$0xff] }
 0x155   :  { %v3684_v52 = vpop.f32.mrf.mxu1  ;;  %v465_v53 = vpop.f32.mrf.mxu0  ;;  %3838 = vmatmul.mubr.msk.f32.gmra.mxu0 %vm72_vm1, %v3041_v33 }
 0x156   :  { %v5334_v56 = vmax.f32 %v677_v29, %v1331_v40  ;;  %v678_v57 = vmax.f32 %v629_v45, 0.0  ;;  %v1283_v58 = vadd.f32 %v5252_v41, %v1234_v47  ;;  %v575_v59 = vmul.f32 %v5240_v39, %v465_v53  ;;  %3840 = vmatprep.mubr.msk.f32.mxu0 %vm4044_vm2, %v4043_v0  ;;  %v3142_v45 = vld [vmem:[%s6044_s0 + $0x5b8] sm:$0xff] }
 0x157   :  { %v1131_v5 = vpop.f32.mrf.mxu1  ;;  %3993 = vmatmul.mubr.msk.f32.gmra.mxu1 %vm72_vm1, %v3140_v48  ;;  %v3532_v7 = vpop.f32.mrf.mxu0 }
 0x158   :  { %v1332_v8 = vmax.f32 %v1283_v58, 0.0  ;;  %v630_v10 = vadd.f32 %v5252_v41, %v575_v59  ;;  %v1235_v12 = vmul.f32 %v5240_v39, %v1131_v5  ;;  %3995 = vmatprep.mubr.msk.f32.mxu1 %vm4044_vm2, %v4043_v0  ;;  %v3044_v59 = vld [vmem:[%s6044_s0 + $0x438] sm:$0xff] }
 0x159   :  { %v3687_v15 = vpop.f32.mrf.mxu1  ;;  %v470_v16 = vpop.f32.mrf.mxu0  ;;  %3841 = vmatmul.mubr.msk.f32.gmra.mxu0 %vm72_vm1, %v3042_v62 }
 0x15a   :  { %v5352_v18 = vmax.f32 %v678_v57, %v1332_v8  ;;  %v679_v23 = vmax.f32 %v630_v10, 0.0  ;;  %v1284_v24 = vadd.f32 %v5252_v41, %v1235_v12  ;;  %v576_v29 = vmul.f32 %v5240_v39, %v470_v16  ;;  %3843 = vmatprep.mubr.msk.f32.mxu0 %vm4044_vm2, %v4043_v0  ;;  %v3143_v12 = vld [vmem:[%s6044_s0 + $0x5c0] sm:$0xff] }
 0x15b   :  { %v1136_v31 = vpop.f32.mrf.mxu1  ;;  %3996 = vmatmul.mubr.msk.f32.gmra.mxu1 %vm72_vm1, %v3141_v13  ;;  %v3535_v33 = vpop.f32.mrf.mxu0 }
 0x15c   :  { %v1333_v37 = vmax.f32 %v1284_v24, 0.0  ;;  %v631_v38 = vadd.f32 %v5252_v41, %v576_v29  ;;  %v1236_v40 = vmul.f32 %v5240_v39, %v1136_v31  ;;  %3998 = vmatprep.mubr.msk.f32.mxu1 %vm4044_vm2, %v4043_v0 }
 0x15d   :  { %v3690_v47 = vpop.f32.mrf.mxu1  ;;  %v475_v48 = vpop.f32.mrf.mxu0  ;;  %3844 = vmatmul.mubr.msk.f32.gmra.mxu0 %vm72_vm1, %v3043_v30  ;;  %v3045_v30 = vld [vmem:[%s6044_s0 + $0x440] sm:$0xff] }
 0x15e   :  { %v5370_v52 = vmax.f32 %v679_v23, %v1333_v37  ;;  %v680_v53 = vmax.f32 %v631_v38, 0.0  ;;  %v1285_v57 = vadd.f32 %v5252_v41, %v1236_v40  ;;  %v577_v58 = vmul.f32 %v5240_v39, %v475_v48  ;;  %3846 = vmatprep.mubr.msk.f32.mxu0 %vm4044_vm2, %v4043_v0 }
 0x15f   :  { %v1141_v62 = vpop.f32.mrf.mxu1  ;;  %3999 = vmatmul.mubr.msk.f32.gmra.mxu1 %vm72_vm1, %v3142_v45  ;;  %v3538_v5 = vpop.f32.mrf.mxu0  ;;  %v3144_v45 = vld [vmem:[%s6044_s0 + $0x5c8] sm:$0xff] }
 0x160   :  { %v1334_v7 = vmax.f32 %v1285_v57, 0.0  ;;  %v632_v8 = vadd.f32 %v5252_v41, %v577_v58  ;;  %v1237_v10 = vmul.f32 %v5240_v39, %v1141_v62  ;;  %4001 = vmatprep.mubr.msk.f32.mxu1 %vm4044_vm2, %v4043_v0  ;;  %v3046_v62 = vld [vmem:[%s6044_s0 + $0x448] sm:$0xff] }
 0x161   :  { %v3693_v13 = vpop.f32.mrf.mxu1  ;;  %v480_v15 = vpop.f32.mrf.mxu0  ;;  %3847 = vmatmul.mubr.msk.f32.gmra.mxu0 %vm72_vm1, %v3044_v59 }
 0x162   :  { %v5388_v16 = vmax.f32 %v680_v53, %v1334_v7  ;;  %v681_v23 = vmax.f32 %v632_v8, 0.0  ;;  %v1286_v24 = vadd.f32 %v5252_v41, %v1237_v10  ;;  %v578_v29 = vmul.f32 %v5240_v39, %v480_v15  ;;  %3849 = vmatprep.mubr.msk.f32.mxu0 %vm4044_vm2, %v4043_v0  ;;  %v3145_v13 = vld [vmem:[%s6044_s0 + $0x5d0] sm:$0xff] }
 0x163   :  { %v1146_v31 = vpop.f32.mrf.mxu1  ;;  %4002 = vmatmul.mubr.msk.f32.gmra.mxu1 %vm72_vm1, %v3143_v12  ;;  %v3541_v33 = vpop.f32.mrf.mxu0 }
 0x164   :  { %v1335_v37 = vmax.f32 %v1286_v24, 0.0  ;;  %v633_v38 = vadd.f32 %v5252_v41, %v578_v29  ;;  %v1238_v40 = vmul.f32 %v5240_v39, %v1146_v31  ;;  %4004 = vmatprep.mubr.msk.f32.mxu1 %vm4044_vm2, %v4043_v0  ;;  %v3047_v33 = vld [vmem:[%s6044_s0 + $0x450] sm:$0xff] }
 0x165   :  { %v3696_v47 = vpop.f32.mrf.mxu1  ;;  %v485_v48 = vpop.f32.mrf.mxu0  ;;  %3850 = vmatmul.mubr.msk.f32.gmra.mxu0 %vm72_vm1, %v3045_v30 }
 0x166   :  { %v5406_v53 = vmax.f32 %v681_v23, %v1335_v37  ;;  %v682_v57 = vmax.f32 %v633_v38, 0.0  ;;  %v1287_v58 = vadd.f32 %v5252_v41, %v1238_v40  ;;  %v579_v59 = vmul.f32 %v5240_v39, %v485_v48  ;;  %3852 = vmatprep.mubr.msk.f32.mxu0 %vm4044_vm2, %v4043_v0  ;;  %v3146_v48 = vld [vmem:[%s6044_s0 + $0x5d8] sm:$0xff] }
 0x167   :  { %v1151_v5 = vpop.f32.mrf.mxu1  ;;  %4005 = vmatmul.mubr.msk.f32.gmra.mxu1 %vm72_vm1, %v3144_v45  ;;  %v3544_v7 = vpop.f32.mrf.mxu0 }
 0x168   :  { %v1336_v8 = vmax.f32 %v1287_v58, 0.0  ;;  %v634_v10 = vadd.f32 %v5252_v41, %v579_v59  ;;  %v1239_v12 = vmul.f32 %v5240_v39, %v1151_v5  ;;  %4007 = vmatprep.mubr.msk.f32.mxu1 %vm4044_vm2, %v4043_v0 }
 0x169   :  { %v3699_v15 = vpop.f32.mrf.mxu1  ;;  %v490_v23 = vpop.f32.mrf.mxu0  ;;  %3853 = vmatmul.mubr.msk.f32.gmra.mxu0 %vm72_vm1, %v3046_v62 }
 0x16a   :  { %v5424_v24 = vmax.f32 %v682_v57, %v1336_v8  ;;  %v683_v29 = vmax.f32 %v634_v10, 0.0  ;;  %v1288_v30 = vadd.f32 %v5252_v41, %v1239_v12  ;;  %v580_v31 = vmul.f32 %v5240_v39, %v490_v23  ;;  %3855 = vmatprep.mubr.msk.f32.mxu0 %vm4044_vm2, %v4043_v0  ;;  %v3048_v8 = vld [vmem:[%s6044_s0 + $0x458] sm:$0xff] }
 0x16b   :  { %v1156_v37 = vpop.f32.mrf.mxu1  ;;  %4008 = vmatmul.mubr.msk.f32.gmra.mxu1 %vm72_vm1, %v3145_v13  ;;  %v3547_v38 = vpop.f32.mrf.mxu0 }
 0x16c   :  { %v1337_v40 = vmax.f32 %v1288_v30, 0.0  ;;  %v635_v45 = vadd.f32 %v5252_v41, %v580_v31  ;;  %v1240_v47 = vmul.f32 %v5240_v39, %v1156_v37  ;;  %4010 = vmatprep.mubr.msk.f32.mxu1 %vm4044_vm2, %v4043_v0 }
 0x16d   :  { %v3702_v57 = vpop.f32.mrf.mxu1  ;;  %v495_v58 = vpop.f32.mrf.mxu0  ;;  %3856 = vmatmul.mubr.msk.f32.gmra.mxu0 %vm72_vm1, %v3047_v33 }
 0x16e   :  { %v5442_v59 = vmax.f32 %v683_v29, %v1337_v40  ;;  %v684_v62 = vmax.f32 %v635_v45, 0.0  ;;  %v1289_v5 = vadd.f32 %v5252_v41, %v1240_v47  ;;  %v581_v7 = vmul.f32 %v5240_v39, %v495_v58  ;;  %3858 = vmatprep.mubr.msk.f32.mxu0 %vm4044_vm2, %v4043_v0  ;;  %v3147_v29 = vld [vmem:[%s6044_s0 + $0x5e0] sm:$0xff] }
 0x16f   :  { %v1161_v10 = vpop.f32.mrf.mxu1  ;;  %4011 = vmatmul.mubr.msk.f32.gmra.mxu1 %vm72_vm1, %v3146_v48  ;;  %v3550_v12 = vpop.f32.mrf.mxu0  ;;  %v3049_v45 = vld [vmem:[%s6044_s0 + $0x460] sm:$0xff] }
 0x170   :  { %v1338_v13 = vmax.f32 %v1289_v5, 0.0  ;;  %v636_v15 = vadd.f32 %v5252_v41, %v581_v7  ;;  %v1241_v23 = vmul.f32 %v5240_v39, %v1161_v10  ;;  %4013 = vmatprep.mubr.msk.f32.mxu1 %vm4044_vm2, %v4043_v0  ;;  %v3148_v5 = vld [vmem:[%s6044_s0 + $0x5e8] sm:$0xff] }
 0x171   :  { %v3705_v30 = vpop.f32.mrf.mxu1  ;;  %v500_v31 = vpop.f32.mrf.mxu0  ;;  %3859 = vmatmul.mubr.msk.f32.gmra.mxu0 %vm72_vm1, %v3048_v8 }
 0x172   :  { %v5460_v33 = vmax.f32 %v684_v62, %v1338_v13  ;;  %v685_v37 = vmax.f32 %v636_v15, 0.0  ;;  %v1290_v38 = vadd.f32 %v5252_v41, %v1241_v23  ;;  %v582_v40 = vmul.f32 %v5240_v39, %v500_v31  ;;  %3861 = vmatprep.mubr.msk.f32.mxu0 %vm4044_vm2, %v4043_v0  ;;  %v3050_v23 = vld [vmem:[%s6044_s0 + $0x468] sm:$0xff] }
 0x173   :  { %v1166_v47 = vpop.f32.mrf.mxu1  ;;  %4014 = vmatmul.mubr.msk.f32.gmra.mxu1 %vm72_vm1, %v3147_v29  ;;  %v3553_v48 = vpop.f32.mrf.mxu0 }
 0x174   :  { %v1339_v57 = vmax.f32 %v1290_v38, 0.0  ;;  %v637_v58 = vadd.f32 %v5252_v41, %v582_v40  ;;  %v1242_v62 = vmul.f32 %v5240_v39, %v1166_v47  ;;  %4016 = vmatprep.mubr.msk.f32.mxu1 %vm4044_vm2, %v4043_v0  ;;  %v3149_v40 = vld [vmem:[%s6044_s0 + $0x5f0] sm:$0xff] }
 0x175   :  { %v3708_v7 = vpop.f32.mrf.mxu1  ;;  %v505_v8 = vpop.f32.mrf.mxu0  ;;  %3862 = vmatmul.mubr.msk.f32.gmra.mxu0 %vm72_vm1, %v3049_v45 }
 0x176   :  { %v5478_v10 = vmax.f32 %v685_v37, %v1339_v57  ;;  %v686_v12 = vmax.f32 %v637_v58, 0.0  ;;  %v1291_v13 = vadd.f32 %v5252_v41, %v1242_v62  ;;  %v583_v15 = vmul.f32 %v5240_v39, %v505_v8  ;;  %3864 = vmatprep.mubr.msk.f32.mxu0 %vm4044_vm2, %v4043_v0 }
 0x177   :  { %v1171_v29 = vpop.f32.mrf.mxu1  ;;  %4017 = vmatmul.mubr.msk.f32.gmra.mxu1 %vm72_vm1, %v3148_v5  ;;  %v3556_v30 = vpop.f32.mrf.mxu0  ;;  %v3051_v5 = vld [vmem:[%s6044_s0 + $0x470] sm:$0xff] }
 0x178   :  { %v1340_v31 = vmax.f32 %v1291_v13, 0.0  ;;  %v638_v37 = vadd.f32 %v5252_v41, %v583_v15  ;;  %v1243_v38 = vmul.f32 %v5240_v39, %v1171_v29  ;;  %4019 = vmatprep.mubr.msk.f32.mxu1 %vm4044_vm2, %v4043_v0 }
 0x179   :  { %v3711_v45 = vpop.f32.mrf.mxu1  ;;  %v510_v47 = vpop.f32.mrf.mxu0  ;;  %3865 = vmatmul.mubr.msk.f32.gmra.mxu0 %vm72_vm1, %v3050_v23  ;;  %v3150_v23 = vld [vmem:[%s6044_s0 + $0x5f8] sm:$0xff] }
 0x17a   :  { %v5496_v48 = vmax.f32 %v686_v12, %v1340_v31  ;;  %v687_v57 = vmax.f32 %v638_v37, 0.0  ;;  %v1292_v58 = vadd.f32 %v5252_v41, %v1243_v38  ;;  %v584_v62 = vmul.f32 %v5240_v39, %v510_v47  ;;  %3867 = vmatprep.mubr.msk.f32.mxu0 %vm4044_vm2, %v4043_v0  ;;  %v3052_v45 = vld [vmem:[%s6044_s0 + $0x478] sm:$0xff] }
 0x17b   :  { %v1176_v7 = vpop.f32.mrf.mxu1  ;;  %4020 = vmatmul.mubr.msk.f32.gmra.mxu1 %vm72_vm1, %v3149_v40  ;;  %v3559_v8 = vpop.f32.mrf.mxu0 }
 0x17c   :  { %v1341_v13 = vmax.f32 %v1292_v58, 0.0  ;;  %v639_v12 = vadd.f32 %v5252_v41, %v584_v62  ;;  %v1244_v15 = vmul.f32 %v5240_v39, %v1176_v7  ;;  %4022 = vmatprep.mubr.msk.f32.mxu1 %vm4044_vm2, %v4043_v0  ;;  %v3151_v7 = vld [vmem:[%s6044_s0 + $0x600] sm:$0xff] }
 0x17d   :  { %v3714_v29 = vpop.f32.mrf.mxu1  ;;  %v515_v30 = vpop.f32.mrf.mxu0  ;;  %3868 = vmatmul.mubr.msk.f32.gmra.mxu0 %vm72_vm1, %v3051_v5 }
 0x17e   :  { %v5514_v31 = vmax.f32 %v687_v57, %v1341_v13  ;;  %v688_v37 = vmax.f32 %v639_v12, 0.0  ;;  %v1293_v38 = vadd.f32 %v5252_v41, %v1244_v15  ;;  %v585_v40 = vmul.f32 %v5240_v39, %v515_v30  ;;  %3870 = vmatprep.mubr.msk.f32.mxu0 %vm4044_vm2, %v4043_v0  ;;  %v3053_v30 = vld [vmem:[%s6044_s0 + $0x480] sm:$0xff] }
 0x17f   :  { %v1181_v47 = vpop.f32.mrf.mxu1  ;;  %4023 = vmatmul.mubr.msk.f32.gmra.mxu1 %vm72_vm1, %v3150_v23  ;;  %v3562_v58 = vpop.f32.mrf.mxu0 }
 0x180   :  { %6048 = vst [vmem:[#allocation2_spill] sm:$0xff] %v5514_v31  ;;  %v1342_v62 = vmax.f32 %v1293_v38, 0.0  ;;  %v640_v57 = vadd.f32 %v5252_v41, %v585_v40  ;;  %v1245_v5 = vmul.f32 %v5240_v39, %v1181_v47  ;;  %4025 = vmatprep.mubr.msk.f32.mxu1 %vm4044_vm2, %v4043_v0  ;;  %v3152_v58 = vld [vmem:[%s6044_s0 + $0x608] sm:$0xff] }
 0x181   :  { %v3717_v8 = vpop.f32.mrf.mxu1  ;;  %v520_v13 = vpop.f32.mrf.mxu0  ;;  %3871 = vmatmul.mubr.msk.f32.gmra.mxu0 %vm72_vm1, %v3052_v45 }
 0x182   :  { %v5532_v12 = vmax.f32 %v688_v37, %v1342_v62  ;;  %v689_v15 = vmax.f32 %v640_v57, 0.0  ;;  %v1294_v23 = vadd.f32 %v5252_v41, %v1245_v5  ;;  %v586_v29 = vmul.f32 %v5240_v39, %v520_v13  ;;  %3873 = vmatprep.mubr.msk.f32.mxu0 %vm4044_vm2, %v4043_v0 }
 0x183   :  { %v1186_v38 = vpop.f32.mrf.mxu1  ;;  %4026 = vmatmul.mubr.msk.f32.gmra.mxu1 %vm72_vm1, %v3151_v7  ;;  %v3565_v40 = vpop.f32.mrf.mxu0 }
 0x184   :  { %6049 = vst [vmem:[#allocation3_spill] sm:$0xff] %v5532_v12  ;;  %v1343_v47 = vmax.f32 %v1294_v23, 0.0  ;;  %v641_v37 = vadd.f32 %v5252_v41, %v586_v29  ;;  %v1246_v45 = vmul.f32 %v5240_v39, %v1186_v38  ;;  %4028 = vmatprep.mubr.msk.f32.mxu1 %vm4044_vm2, %v4043_v0  ;;  %v3054_v23 = vld [vmem:[%s6044_s0 + $0x488] sm:$0xff] }
 0x185   :  { %v3720_v62 = vpop.f32.mrf.mxu1  ;;  %v525_v57 = vpop.f32.mrf.mxu0  ;;  %3874 = vmatmul.mubr.msk.f32.gmra.mxu0 %vm72_vm1, %v3053_v30 }
 0x186   :  { %v5550_v5 = vmax.f32 %v689_v15, %v1343_v47  ;;  %v690_v7 = vmax.f32 %v641_v37, 0.0  ;;  %v1295_v8 = vadd.f32 %v5252_v41, %v1246_v45  ;;  %v587_v13 = vmul.f32 %v5240_v39, %v525_v57  ;;  %3876 = vmatprep.mubr.msk.f32.mxu0 %vm4044_vm2, %v4043_v0  ;;  %v3153_v47 = vld [vmem:[%s6044_s0 + $0x610] sm:$0xff] }
 0x187   :  { %v1191_v29 = vpop.f32.mrf.mxu1  ;;  %4029 = vmatmul.mubr.msk.f32.gmra.mxu1 %vm72_vm1, %v3152_v58  ;;  %v3568_v38 = vpop.f32.mrf.mxu0 }
 0x188   :  { %6050 = vst [vmem:[#allocation4_spill] sm:$0xff] %v5550_v5  ;;  %v1344_v40 = vmax.f32 %v1295_v8, 0.0  ;;  %v642_v15 = vadd.f32 %v5252_v41, %v587_v13  ;;  %v1247_v30 = vmul.f32 %v5240_v39, %v1191_v29  ;;  %4031 = vmatprep.mubr.msk.f32.mxu1 %vm4044_vm2, %v4043_v0  ;;  %v3055_v13 = vld [vmem:[%s6044_s0 + $0x490] sm:$0xff] }
 0x189   :  { %v3723_v37 = vpop.f32.mrf.mxu1  ;;  %v530_v45 = vpop.f32.mrf.mxu0  ;;  %3877 = vmatmul.mubr.msk.f32.gmra.mxu0 %vm72_vm1, %v3054_v23 }
 0x18a   :  { %v5568_v62 = vmax.f32 %v690_v7, %v1344_v40  ;;  %v691_v58 = vmax.f32 %v642_v15, 0.0  ;;  %v1296_v57 = vadd.f32 %v5252_v41, %v1247_v30  ;;  %v588_v8 = vmul.f32 %v5240_v39, %v530_v45  ;;  %3879 = vmatprep.mubr.msk.f32.mxu0 %vm4044_vm2, %v4043_v0  ;;  %v3154_v40 = vld [vmem:[%s6044_s0 + $0x618] sm:$0xff] }
 0x18b   :  { %v1196_v29 = vpop.f32.mrf.mxu1  ;;  %4032 = vmatmul.mubr.msk.f32.gmra.mxu1 %vm72_vm1, %v3153_v47  ;;  %v3571_v38 = vpop.f32.mrf.mxu0 }
 0x18c   :  { %6051 = vst [vmem:[#allocation5_spill] sm:$0xff] %v5568_v62  ;;  %v1345_v37 = vmax.f32 %v1296_v57, 0.0  ;;  %v643_v7 = vadd.f32 %v5252_v41, %v588_v8  ;;  %v1248_v23 = vmul.f32 %v5240_v39, %v1196_v29  ;;  %4034 = vmatprep.mubr.msk.f32.mxu1 %vm4044_vm2, %v4043_v0 }
 0x18d   :  { %v3726_v15 = vpop.f32.mrf.mxu1  ;;  %v1659_v30 = vpop.f32.mrf.mxu0  ;;  %3880 = vmatmul.mubr.msk.f32.gmra.mxu0 %vm72_vm1, %v3055_v13 }
 0x18e   :  { %v5586_v45 = vmax.f32 %v691_v58, %v1345_v37  ;;  %v692_v47 = vmax.f32 %v643_v7, 0.0  ;;  %v1297_v57 = vadd.f32 %v5252_v41, %v1248_v23  ;;  %v1903_v8 = vmul.f32 %v5240_v39, %v1659_v30 }
 0x18f   :  { %v2362_v38 = vpop.f32.mrf.mxu1  ;;  %4035 = vmatmul.mubr.msk.f32.gmra.mxu1 %vm72_vm1, %v3154_v40  ;;  %v3737_v29 = vpop.f32.mrf.mxu0 }
 0x190   :  { %v1346_v0 = vmax.f32 %v1297_v57, 0.0  ;;  %v1952_v62 = vadd.f32 %v5252_v41, %v1903_v8  ;;  %v2606_v5 = vmul.f32 %v5240_v39, %v2362_v38 }
 0x191   :  { %v3892_v15 = vpop.f32.mrf.mxu1  ;;  %v1664_v12 = vpop.f32.mrf.mxu0 }
 0x192   :  { %v5593_v31 = vmax.f32 %v692_v47, %v1346_v0  ;;  %v2001_v58 = vmax.f32 %v1952_v62, 0.0  ;;  %v2655_v13 = vadd.f32 %v5252_v41, %v2606_v5  ;;  %v1904_v37 = vmul.f32 %v5240_v39, %v1664_v12 }
 0x193   :  { %v2367_v7 = vpop.f32.mrf.mxu1  ;;  %v3740_v23 = vpop.f32.mrf.mxu0 }
 0x194   :  { %v2050_v30 = vmax.f32 %v4730_v1, %v2001_v58  ;;  %v2704_v40 = vmax.f32 %v2655_v13, 0.0  ;;  %v1953_v57 = vadd.f32 %v5252_v41, %v1904_v37  ;;  %v2607_v8 = vmul.f32 %v5240_v39, %v2367_v7 }
 0x195   :  { %v3895_v38 = vpop.f32.mrf.mxu1  ;;  %v1669_v29 = vpop.f32.mrf.mxu0 }
 0x196   :  { %v2753_v15 = vmax.f32 %v2050_v30, %v2704_v40  ;;  %v2002_v47 = vmax.f32 %v1953_v57, 0.0  ;;  %v2656_v62 = vadd.f32 %v5252_v41, %v2607_v8  ;;  %v1905_v5 = vmul.f32 %v5240_v39, %v1669_v29 }
 0x197   :  { %v2372_v0 = vpop.f32.mrf.mxu1  ;;  %v3743_v12 = vpop.f32.mrf.mxu0 }
 0x198   :  { %2803 = vst.msk [vmem:[%s6047_s4] sm:$0xff] %vm2802_vm3, %v2753_v15  ;;  %v2051_v1 = vmax.f32 %v4748_v14, %v2002_v47  ;;  %v2705_v58 = vmax.f32 %v2656_v62, 0.0  ;;  %v1954_v13 = vadd.f32 %v5252_v41, %v1905_v5  ;;  %v2608_v37 = vmul.f32 %v5240_v39, %v2372_v0 }
 0x199   :  { %v3898_v7 = vpop.f32.mrf.mxu1  ;;  %v1674_v23 = vpop.f32.mrf.mxu0 }
 0x19a   :  { %v2754_v30 = vmax.f32 %v2051_v1, %v2705_v58  ;;  %v2003_v40 = vmax.f32 %v1954_v13, 0.0  ;;  %v2657_v57 = vadd.f32 %v5252_v41, %v2608_v37  ;;  %v1906_v8 = vmul.f32 %v5240_v39, %v1674_v23 }
 0x19b   :  { %v2377_v38 = vpop.f32.mrf.mxu1  ;;  %v3746_v29 = vpop.f32.mrf.mxu0 }
 0x19c   :  { %2804 = vst.msk [vmem:[%s6047_s4 + $0x8] sm:$0xff] %vm2802_vm3, %v2754_v30  ;;  %v2052_v14 = vmax.f32 %v4766_v27, %v2003_v40  ;;  %v2706_v15 = vmax.f32 %v2657_v57, 0.0  ;;  %v1955_v47 = vadd.f32 %v5252_v41, %v1906_v8  ;;  %v2609_v62 = vmul.f32 %v5240_v39, %v2377_v38 }
 0x19d   :  { %v3901_v5 = vpop.f32.mrf.mxu1  ;;  %v1679_v0 = vpop.f32.mrf.mxu0 }
 0x19e   :  { %v2755_v12 = vmax.f32 %v2052_v14, %v2706_v15  ;;  %v2004_v1 = vmax.f32 %v1955_v47, 0.0  ;;  %v2658_v58 = vadd.f32 %v5252_v41, %v2609_v62  ;;  %v1907_v13 = vmul.f32 %v5240_v39, %v1679_v0 }
 0x19f   :  { %v2382_v37 = vpop.f32.mrf.mxu1  ;;  %v3749_v7 = vpop.f32.mrf.mxu0 }
 0x1a0   :  { %2805 = vst.msk [vmem:[%s6047_s4 + $0x10] sm:$0xff] %vm2802_vm3, %v2755_v12  ;;  %v2053_v27 = vmax.f32 %v4784_v42, %v2004_v1  ;;  %v2707_v23 = vmax.f32 %v2658_v58, 0.0  ;;  %v1956_v30 = vadd.f32 %v5252_v41, %v1907_v13  ;;  %v2610_v40 = vmul.f32 %v5240_v39, %v2382_v37 }
 0x1a1   :  { %v3904_v57 = vpop.f32.mrf.mxu1  ;;  %v1684_v8 = vpop.f32.mrf.mxu0 }
 0x1a2   :  { %v2756_v38 = vmax.f32 %v2053_v27, %v2707_v23  ;;  %v2005_v29 = vmax.f32 %v1956_v30, 0.0  ;;  %v2659_v14 = vadd.f32 %v5252_v41, %v2610_v40  ;;  %v1908_v15 = vmul.f32 %v5240_v39, %v1684_v8 }
 0x1a3   :  { %v2387_v47 = vpop.f32.mrf.mxu1  ;;  %v3752_v62 = vpop.f32.mrf.mxu0 }
 0x1a4   :  { %2806 = vst.msk [vmem:[%s6047_s4 + $0x18] sm:$0xff] %vm2802_vm3, %v2756_v38  ;;  %v2054_v42 = vmax.f32 %v4802_v55, %v2005_v29  ;;  %v2708_v5 = vmax.f32 %v2659_v14, 0.0  ;;  %v1957_v0 = vadd.f32 %v5252_v41, %v1908_v15  ;;  %v2611_v12 = vmul.f32 %v5240_v39, %v2387_v47 }
 0x1a5   :  { %v3907_v1 = vpop.f32.mrf.mxu1  ;;  %v1689_v58 = vpop.f32.mrf.mxu0 }
 0x1a6   :  { %v2757_v13 = vmax.f32 %v2054_v42, %v2708_v5  ;;  %v2006_v37 = vmax.f32 %v1957_v0, 0.0  ;;  %v2660_v7 = vadd.f32 %v5252_v41, %v2611_v12  ;;  %v1909_v27 = vmul.f32 %v5240_v39, %v1689_v58 }
 0x1a7   :  { %v2392_v23 = vpop.f32.mrf.mxu1  ;;  %v3755_v30 = vpop.f32.mrf.mxu0 }
 0x1a8   :  { %2807 = vst.msk [vmem:[%s6047_s4 + $0x20] sm:$0xff] %vm2802_vm3, %v2757_v13  ;;  %v2055_v55 = vmax.f32 %v4820_v6, %v2006_v37  ;;  %v2709_v40 = vmax.f32 %v2660_v7, 0.0  ;;  %v1958_v57 = vadd.f32 %v5252_v41, %v1909_v27  ;;  %v2612_v8 = vmul.f32 %v5240_v39, %v2392_v23 }
 0x1a9   :  { %v3910_v38 = vpop.f32.mrf.mxu1  ;;  %v1694_v29 = vpop.f32.mrf.mxu0 }
 0x1aa   :  { %v2758_v14 = vmax.f32 %v2055_v55, %v2709_v40  ;;  %v2007_v15 = vmax.f32 %v1958_v57, 0.0  ;;  %v2661_v47 = vadd.f32 %v5252_v41, %v2612_v8  ;;  %v1910_v62 = vmul.f32 %v5240_v39, %v1694_v29 }
 0x1ab   :  { %v2397_v42 = vpop.f32.mrf.mxu1  ;;  %v3758_v5 = vpop.f32.mrf.mxu0 }
 0x1ac   :  { %2808 = vst.msk [vmem:[%s6047_s4 + $0x28] sm:$0xff] %vm2802_vm3, %v2758_v14  ;;  %v2056_v6 = vmax.f32 %v4838_v20, %v2007_v15  ;;  %v2710_v0 = vmax.f32 %v2661_v47, 0.0  ;;  %v1959_v12 = vadd.f32 %v5252_v41, %v1910_v62  ;;  %v2613_v1 = vmul.f32 %v5240_v39, %v2397_v42 }
 0x1ad   :  { %v3913_v58 = vpop.f32.mrf.mxu1  ;;  %v1699_v13 = vpop.f32.mrf.mxu0 }
 0x1ae   :  { %v2759_v37 = vmax.f32 %v2056_v6, %v2710_v0  ;;  %v2008_v7 = vmax.f32 %v1959_v12, 0.0  ;;  %v2662_v27 = vadd.f32 %v5252_v41, %v2613_v1  ;;  %v1911_v23 = vmul.f32 %v5240_v39, %v1699_v13 }
 0x1af   :  { %v2402_v30 = vpop.f32.mrf.mxu1  ;;  %v3761_v55 = vpop.f32.mrf.mxu0 }
 0x1b0   :  { %2809 = vst.msk [vmem:[%s6047_s4 + $0x30] sm:$0xff] %vm2802_vm3, %v2759_v37  ;;  %v2057_v20 = vmax.f32 %v4856_v34, %v2008_v7  ;;  %v2711_v40 = vmax.f32 %v2662_v27, 0.0  ;;  %v1960_v57 = vadd.f32 %v5252_v41, %v1911_v23  ;;  %v2614_v8 = vmul.f32 %v5240_v39, %v2402_v30 }
 0x1b1   :  { %v3916_v38 = vpop.f32.mrf.mxu1  ;;  %v1704_v29 = vpop.f32.mrf.mxu0 }
 0x1b2   :  { %v2760_v14 = vmax.f32 %v2057_v20, %v2711_v40  ;;  %v2009_v15 = vmax.f32 %v1960_v57, 0.0  ;;  %v2663_v47 = vadd.f32 %v5252_v41, %v2614_v8  ;;  %v1912_v62 = vmul.f32 %v5240_v39, %v1704_v29 }
 0x1b3   :  { %v2407_v42 = vpop.f32.mrf.mxu1  ;;  %v3764_v5 = vpop.f32.mrf.mxu0 }
 0x1b4   :  { %2810 = vst.msk [vmem:[%s6047_s4 + $0x38] sm:$0xff] %vm2802_vm3, %v2760_v14  ;;  %v2058_v34 = vmax.f32 %v4874_v50, %v2009_v15  ;;  %v2712_v6 = vmax.f32 %v2663_v47, 0.0  ;;  %v1961_v0 = vadd.f32 %v5252_v41, %v1912_v62  ;;  %v2615_v12 = vmul.f32 %v5240_v39, %v2407_v42 }
 0x1b5   :  { %v3919_v1 = vpop.f32.mrf.mxu1  ;;  %v1709_v58 = vpop.f32.mrf.mxu0 }
 0x1b6   :  { %v2761_v13 = vmax.f32 %v2058_v34, %v2712_v6  ;;  %v2010_v37 = vmax.f32 %v1961_v0, 0.0  ;;  %v2664_v7 = vadd.f32 %v5252_v41, %v2615_v12  ;;  %v1913_v27 = vmul.f32 %v5240_v39, %v1709_v58 }
 0x1b7   :  { %v2412_v23 = vpop.f32.mrf.mxu1  ;;  %v3767_v30 = vpop.f32.mrf.mxu0 }
 0x1b8   :  { %2811 = vst.msk [vmem:[%s6047_s4 + $0x40] sm:$0xff] %vm2802_vm3, %v2761_v13  ;;  %v2059_v50 = vmax.f32 %v4892_v2, %v2010_v37  ;;  %v2713_v55 = vmax.f32 %v2664_v7, 0.0  ;;  %v1962_v20 = vadd.f32 %v5252_v41, %v1913_v27  ;;  %v2616_v40 = vmul.f32 %v5240_v39, %v2412_v23 }
 0x1b9   :  { %v3922_v57 = vpop.f32.mrf.mxu1  ;;  %v1714_v8 = vpop.f32.mrf.mxu0 }
 0x1ba   :  { %v2762_v38 = vmax.f32 %v2059_v50, %v2713_v55  ;;  %v2011_v29 = vmax.f32 %v1962_v20, 0.0  ;;  %v2665_v14 = vadd.f32 %v5252_v41, %v2616_v40  ;;  %v1914_v15 = vmul.f32 %v5240_v39, %v1714_v8 }
 0x1bb   :  { %v2417_v47 = vpop.f32.mrf.mxu1  ;;  %v3770_v62 = vpop.f32.mrf.mxu0 }
 0x1bc   :  { %2812 = vst.msk [vmem:[%s6047_s4 + $0x48] sm:$0xff] %vm2802_vm3, %v2762_v38  ;;  %v2060_v2 = vmax.f32 %v4910_v17, %v2011_v29  ;;  %v2714_v42 = vmax.f32 %v2665_v14, 0.0  ;;  %v1963_v5 = vadd.f32 %v5252_v41, %v1914_v15  ;;  %v2617_v34 = vmul.f32 %v5240_v39, %v2417_v47 }
 0x1bd   :  { %v3925_v6 = vpop.f32.mrf.mxu1  ;;  %v1719_v0 = vpop.f32.mrf.mxu0 }
 0x1be   :  { %v2763_v12 = vmax.f32 %v2060_v2, %v2714_v42  ;;  %v2012_v1 = vmax.f32 %v1963_v5, 0.0  ;;  %v2666_v58 = vadd.f32 %v5252_v41, %v2617_v34  ;;  %v1915_v13 = vmul.f32 %v5240_v39, %v1719_v0 }
 0x1bf   :  { %v2422_v37 = vpop.f32.mrf.mxu1  ;;  %v3773_v7 = vpop.f32.mrf.mxu0 }
 0x1c0   :  { %2813 = vst.msk [vmem:[%s6047_s4 + $0x50] sm:$0xff] %vm2802_vm3, %v2763_v12  ;;  %v2061_v17 = vmax.f32 %v4928_v32, %v2012_v1  ;;  %v2715_v27 = vmax.f32 %v2666_v58, 0.0  ;;  %v1964_v23 = vadd.f32 %v5252_v41, %v1915_v13  ;;  %v2618_v30 = vmul.f32 %v5240_v39, %v2422_v37  ;;  %v5719_v13 = vld [vmem:[%s6045_s2] ss:$0 sm:$0xff] }
 0x1c1   :  { %v3928_v50 = vpop.f32.mrf.mxu1  ;;  %v1724_v55 = vpop.f32.mrf.mxu0 }
 0x1c2   :  { %v2764_v20 = vmax.f32 %v2061_v17, %v2715_v27  ;;  %v2013_v40 = vmax.f32 %v1964_v23, 0.0  ;;  %v2667_v57 = vadd.f32 %v5252_v41, %v2618_v30  ;;  %v1916_v8 = vmul.f32 %v5240_v39, %v1724_v55 }
 0x1c3   :  { %v2427_v38 = vpop.f32.mrf.mxu1  ;;  %v3776_v29 = vpop.f32.mrf.mxu0 }
 0x1c4   :  { %2814 = vst.msk [vmem:[%s6047_s4 + $0x58] sm:$0xff] %vm2802_vm3, %v2764_v20  ;;  %v2062_v32 = vmax.f32 %v4946_v49, %v2013_v40  ;;  %v2716_v14 = vmax.f32 %v2667_v57, 0.0  ;;  %v1965_v15 = vadd.f32 %v5252_v41, %v1916_v8  ;;  %v2619_v47 = vmul.f32 %v5240_v39, %v2427_v38  ;;  %v5732_v40 = vld [vmem:[%s6046_s3] ss:$0 sm:$0xff] }
 0x1c5   :  { %v3931_v62 = vpop.f32.mrf.mxu1  ;;  %v1729_v2 = vpop.f32.mrf.mxu0 }
 0x1c6   :  { %v2765_v42 = vmax.f32 %v2062_v32, %v2716_v14  ;;  %v2014_v5 = vmax.f32 %v1965_v15, 0.0  ;;  %v2668_v34 = vadd.f32 %v5252_v41, %v2619_v47  ;;  %v1917_v6 = vmul.f32 %v5240_v39, %v1729_v2 }
 0x1c7   :  { %v2432_v0 = vpop.f32.mrf.mxu1  ;;  %v3779_v12 = vpop.f32.mrf.mxu0 }
 0x1c8   :  { %2815 = vst.msk [vmem:[%s6047_s4 + $0x60] sm:$0xff] %vm2802_vm3, %v2765_v42  ;;  %v2063_v49 = vmax.f32 %v4964_v3, %v2014_v5  ;;  %v2717_v1 = vmax.f32 %v2668_v34, 0.0  ;;  %v1966_v58 = vadd.f32 %v5252_v41, %v1917_v6  ;;  %v2620_v37 = vmul.f32 %v5719_v13, %v2432_v0 }
 0x1c9   :  { %v3934_v39 = vpop.f32.mrf.mxu1  ;;  %v1734_v7 = vpop.f32.mrf.mxu0 }
 0x1ca   :  { %v2766_v17 = vmax.f32 %v2063_v49, %v2717_v1  ;;  %v2015_v27 = vmax.f32 %v1966_v58, 0.0  ;;  %v2669_v23 = vadd.f32 %v5252_v41, %v2620_v37  ;;  %v1918_v30 = vmul.f32 %v5719_v13, %v1734_v7 }
 0x1cb   :  { %v2437_v50 = vpop.f32.mrf.mxu1  ;;  %v3782_v3 = vpop.f32.mrf.mxu0 }
 0x1cc   :  { %2816 = vst.msk [vmem:[%s6047_s4 + $0x68] sm:$0xff] %vm2802_vm3, %v2766_v17  ;;  %v2064_v55 = vmax.f32 %v4982_v19, %v2015_v27  ;;  %v2718_v20 = vmax.f32 %v2669_v23, 0.0  ;;  %v1967_v57 = vadd.f32 %v5732_v40, %v1918_v30  ;;  %v2621_v41 = vmul.f32 %v5719_v13, %v2437_v50 }
 0x1cd   :  { %v3937_v8 = vpop.f32.mrf.mxu1  ;;  %v1739_v38 = vpop.f32.mrf.mxu0 }
 0x1ce   :  { %v2767_v29 = vmax.f32 %v2064_v55, %v2718_v20  ;;  %v2016_v32 = vmax.f32 %v1967_v57, 0.0  ;;  %v2670_v14 = vadd.f32 %v5732_v40, %v2621_v41  ;;  %v1919_v15 = vmul.f32 %v5719_v13, %v1739_v38 }
 0x1cf   :  { %v2442_v47 = vpop.f32.mrf.mxu1  ;;  %v3785_v19 = vpop.f32.mrf.mxu0 }
 0x1d0   :  { %2817 = vst.msk [vmem:[%s6047_s4 + $0x70] sm:$0xff] %vm2802_vm3, %v2767_v29  ;;  %v2065_v62 = vmax.f32 %v5000_v36, %v2016_v32  ;;  %v2719_v2 = vmax.f32 %v2670_v14, 0.0  ;;  %v1968_v42 = vadd.f32 %v5732_v40, %v1919_v15  ;;  %v2622_v5 = vmul.f32 %v5719_v13, %v2442_v47 }
 0x1d1   :  { %v3940_v34 = vpop.f32.mrf.mxu1  ;;  %v1744_v6 = vpop.f32.mrf.mxu0 }
 0x1d2   :  { %v2768_v0 = vmax.f32 %v2065_v62, %v2719_v2  ;;  %v2017_v12 = vmax.f32 %v1968_v42, 0.0  ;;  %v2671_v49 = vadd.f32 %v5732_v40, %v2622_v5  ;;  %v1920_v1 = vmul.f32 %v5719_v13, %v1744_v6 }
 0x1d3   :  { %v2447_v58 = vpop.f32.mrf.mxu1  ;;  %v3788_v37 = vpop.f32.mrf.mxu0 }
 0x1d4   :  { %2818 = vst.msk [vmem:[%s6047_s4 + $0x78] sm:$0xff] %vm2802_vm3, %v2768_v0  ;;  %v2066_v36 = vmax.f32 %v5018_v54, %v2017_v12  ;;  %v2720_v39 = vmax.f32 %v2671_v49, 0.0  ;;  %v1969_v7 = vadd.f32 %v5732_v40, %v1920_v1  ;;  %v2623_v17 = vmul.f32 %v5719_v13, %v2447_v58 }
 0x1d5   :  { %v3943_v27 = vpop.f32.mrf.mxu1  ;;  %v1749_v23 = vpop.f32.mrf.mxu0 }
 0x1d6   :  { %v2769_v30 = vmax.f32 %v2066_v36, %v2720_v39  ;;  %v2018_v50 = vmax.f32 %v1969_v7, 0.0  ;;  %v2672_v3 = vadd.f32 %v5732_v40, %v2623_v17  ;;  %v1921_v55 = vmul.f32 %v5719_v13, %v1749_v23 }
 0x1d7   :  { %v2452_v20 = vpop.f32.mrf.mxu1  ;;  %v3791_v57 = vpop.f32.mrf.mxu0 }
 0x1d8   :  { %2819 = vst.msk [vmem:[%s6047_s4 + $0x80] sm:$0xff] %vm2802_vm3, %v2769_v30  ;;  %v2067_v54 = vmax.f32 %v5036_v9, %v2018_v50  ;;  %v2721_v41 = vmax.f32 %v2672_v3, 0.0  ;;  %v1970_v8 = vadd.f32 %v5732_v40, %v1921_v55  ;;  %v2624_v38 = vmul.f32 %v5719_v13, %v2452_v20 }
 0x1d9   :  { %v3946_v29 = vpop.f32.mrf.mxu1  ;;  %v1754_v32 = vpop.f32.mrf.mxu0 }
 0x1da   :  { %v2770_v14 = vmax.f32 %v2067_v54, %v2721_v41  ;;  %v2019_v15 = vmax.f32 %v1970_v8, 0.0  ;;  %v2673_v47 = vadd.f32 %v5732_v40, %v2624_v38  ;;  %v1922_v19 = vmul.f32 %v5719_v13, %v1754_v32 }
 0x1db   :  { %v2457_v62 = vpop.f32.mrf.mxu1  ;;  %v3794_v2 = vpop.f32.mrf.mxu0 }
 0x1dc   :  { %2820 = vst.msk [vmem:[%s6047_s4 + $0x88] sm:$0xff] %vm2802_vm3, %v2770_v14  ;;  %v2068_v9 = vmax.f32 %v5054_v26, %v2019_v15  ;;  %v2722_v42 = vmax.f32 %v2673_v47, 0.0  ;;  %v1971_v5 = vadd.f32 %v5732_v40, %v1922_v19  ;;  %v2625_v34 = vmul.f32 %v5719_v13, %v2457_v62 }
 0x1dd   :  { %v3949_v6 = vpop.f32.mrf.mxu1  ;;  %v1759_v0 = vpop.f32.mrf.mxu0 }
 0x1de   :  { %v2771_v12 = vmax.f32 %v2068_v9, %v2722_v42  ;;  %v2020_v49 = vmax.f32 %v1971_v5, 0.0  ;;  %v2674_v1 = vadd.f32 %v5732_v40, %v2625_v34  ;;  %v1923_v58 = vmul.f32 %v5719_v13, %v1759_v0 }
 0x1df   :  { %v2462_v37 = vpop.f32.mrf.mxu1  ;;  %v3797_v36 = vpop.f32.mrf.mxu0 }
 0x1e0   :  { %2821 = vst.msk [vmem:[%s6047_s4 + $0x90] sm:$0xff] %vm2802_vm3, %v2771_v12  ;;  %v2069_v26 = vmax.f32 %v5072_v46, %v2020_v49  ;;  %v2723_v39 = vmax.f32 %v2674_v1, 0.0  ;;  %v1972_v7 = vadd.f32 %v5732_v40, %v1923_v58  ;;  %v2626_v17 = vmul.f32 %v5719_v13, %v2462_v37 }
 0x1e1   :  { %v3952_v27 = vpop.f32.mrf.mxu1  ;;  %v1764_v23 = vpop.f32.mrf.mxu0 }
 0x1e2   :  { %v2772_v30 = vmax.f32 %v2069_v26, %v2723_v39  ;;  %v2021_v50 = vmax.f32 %v1972_v7, 0.0  ;;  %v2675_v3 = vadd.f32 %v5732_v40, %v2626_v17  ;;  %v1924_v55 = vmul.f32 %v5719_v13, %v1764_v23 }
 0x1e3   :  { %v2467_v20 = vpop.f32.mrf.mxu1  ;;  %v3800_v57 = vpop.f32.mrf.mxu0 }
 0x1e4   :  { %2822 = vst.msk [vmem:[%s6047_s4 + $0x98] sm:$0xff] %vm2802_vm3, %v2772_v30  ;;  %v2070_v46 = vmax.f32 %v5090_v63, %v2021_v50  ;;  %v2724_v54 = vmax.f32 %v2675_v3, 0.0  ;;  %v1973_v41 = vadd.f32 %v5732_v40, %v1924_v55  ;;  %v2627_v8 = vmul.f32 %v5719_v13, %v2467_v20 }
 0x1e5   :  { %v3955_v38 = vpop.f32.mrf.mxu1  ;;  %v1769_v29 = vpop.f32.mrf.mxu0 }
 0x1e6   :  { %v2773_v32 = vmax.f32 %v2070_v46, %v2724_v54  ;;  %v2022_v14 = vmax.f32 %v1973_v41, 0.0  ;;  %v2676_v15 = vadd.f32 %v5732_v40, %v2627_v8  ;;  %v1925_v47 = vmul.f32 %v5719_v13, %v1769_v29 }
 0x1e7   :  { %v2472_v19 = vpop.f32.mrf.mxu1  ;;  %v3803_v62 = vpop.f32.mrf.mxu0 }
 0x1e8   :  { %2823 = vst.msk [vmem:[%s6047_s4 + $0xa0] sm:$0xff] %vm2802_vm3, %v2773_v32  ;;  %v2071_v63 = vmax.f32 %v5108_v22, %v2022_v14  ;;  %v2725_v2 = vmax.f32 %v2676_v15, 0.0  ;;  %v1974_v9 = vadd.f32 %v5732_v40, %v1925_v47  ;;  %v2628_v42 = vmul.f32 %v5719_v13, %v2472_v19 }
 0x1e9   :  { %v3958_v5 = vpop.f32.mrf.mxu1  ;;  %v1774_v34 = vpop.f32.mrf.mxu0 }
 0x1ea   :  { %v2774_v6 = vmax.f32 %v2071_v63, %v2725_v2  ;;  %v2023_v0 = vmax.f32 %v1974_v9, 0.0  ;;  %v2677_v12 = vadd.f32 %v5732_v40, %v2628_v42  ;;  %v1926_v49 = vmul.f32 %v5719_v13, %v1774_v34 }
 0x1eb   :  { %v2477_v1 = vpop.f32.mrf.mxu1  ;;  %v3806_v58 = vpop.f32.mrf.mxu0 }
 0x1ec   :  { %2824 = vst.msk [vmem:[%s6047_s4 + $0xa8] sm:$0xff] %vm2802_vm3, %v2774_v6  ;;  %v2072_v22 = vmax.f32 %v5126_v43, %v2023_v0  ;;  %v2726_v37 = vmax.f32 %v2677_v12, 0.0  ;;  %v1975_v36 = vadd.f32 %v5732_v40, %v1926_v49  ;;  %v2629_v26 = vmul.f32 %v5719_v13, %v2477_v1 }
 0x1ed   :  { %v3961_v39 = vpop.f32.mrf.mxu1  ;;  %v1779_v7 = vpop.f32.mrf.mxu0 }
 0x1ee   :  { %v2775_v17 = vmax.f32 %v2072_v22, %v2726_v37  ;;  %v2024_v27 = vmax.f32 %v1975_v36, 0.0  ;;  %v2678_v23 = vadd.f32 %v5732_v40, %v2629_v26  ;;  %v1927_v30 = vmul.f32 %v5719_v13, %v1779_v7 }
 0x1ef   :  { %v2482_v50 = vpop.f32.mrf.mxu1  ;;  %v3809_v3 = vpop.f32.mrf.mxu0 }
 0x1f0   :  { %2825 = vst.msk [vmem:[%s6047_s4 + $0xb0] sm:$0xff] %vm2802_vm3, %v2775_v17  ;;  %v2073_v43 = vmax.f32 %v5144_v61, %v2024_v27  ;;  %v2727_v55 = vmax.f32 %v2678_v23, 0.0  ;;  %v1976_v20 = vadd.f32 %v5732_v40, %v1927_v30  ;;  %v2630_v57 = vmul.f32 %v5719_v13, %v2482_v50 }
 0x1f1   :  { %v3964_v46 = vpop.f32.mrf.mxu1  ;;  %v1784_v54 = vpop.f32.mrf.mxu0 }
 0x1f2   :  { %v2776_v41 = vmax.f32 %v2073_v43, %v2727_v55  ;;  %v2025_v8 = vmax.f32 %v1976_v20, 0.0  ;;  %v2679_v38 = vadd.f32 %v5732_v40, %v2630_v57  ;;  %v1928_v29 = vmul.f32 %v5719_v13, %v1784_v54 }
 0x1f3   :  { %v2487_v32 = vpop.f32.mrf.mxu1  ;;  %v3812_v14 = vpop.f32.mrf.mxu0 }
 0x1f4   :  { %2826 = vst.msk [vmem:[%s6047_s4 + $0xb8] sm:$0xff] %vm2802_vm3, %v2776_v41  ;;  %v2074_v61 = vmax.f32 %v5162_v21, %v2025_v8  ;;  %v2728_v15 = vmax.f32 %v2679_v38, 0.0  ;;  %v1977_v47 = vadd.f32 %v5732_v40, %v1928_v29  ;;  %v2631_v19 = vmul.f32 %v5719_v13, %v2487_v32 }
 0x1f5   :  { %v3967_v62 = vpop.f32.mrf.mxu1  ;;  %v1789_v63 = vpop.f32.mrf.mxu0 }
 0x1f6   :  { %v2777_v2 = vmax.f32 %v2074_v61, %v2728_v15  ;;  %v2026_v9 = vmax.f32 %v1977_v47, 0.0  ;;  %v2680_v42 = vadd.f32 %v5732_v40, %v2631_v19  ;;  %v1929_v5 = vmul.f32 %v5719_v13, %v1789_v63 }
 0x1f7   :  { %v2492_v34 = vpop.f32.mrf.mxu1  ;;  %v3815_v6 = vpop.f32.mrf.mxu0 }
 0x1f8   :  { %2827 = vst.msk [vmem:[%s6047_s4 + $0xc0] sm:$0xff] %vm2802_vm3, %v2777_v2  ;;  %v2075_v21 = vmax.f32 %v5180_v44, %v2026_v9  ;;  %v2729_v0 = vmax.f32 %v2680_v42, 0.0  ;;  %v1978_v12 = vadd.f32 %v5732_v40, %v1929_v5  ;;  %v2632_v49 = vmul.f32 %v5719_v13, %v2492_v34 }
 0x1f9   :  { %v3970_v1 = vpop.f32.mrf.mxu1  ;;  %v1794_v58 = vpop.f32.mrf.mxu0 }
 0x1fa   :  { %v2778_v22 = vmax.f32 %v2075_v21, %v2729_v0  ;;  %v2027_v37 = vmax.f32 %v1978_v12, 0.0  ;;  %v2681_v36 = vadd.f32 %v5732_v40, %v2632_v49  ;;  %v1930_v26 = vmul.f32 %v5719_v13, %v1794_v58 }
 0x1fb   :  { %v2497_v39 = vpop.f32.mrf.mxu1  ;;  %v3818_v7 = vpop.f32.mrf.mxu0 }
 0x1fc   :  { %2828 = vst.msk [vmem:[%s6047_s4 + $0xc8] sm:$0xff] %vm2802_vm3, %v2778_v22  ;;  %v2076_v44 = vmax.f32 %v5198_v4, %v2027_v37  ;;  %v2730_v17 = vmax.f32 %v2681_v36, 0.0  ;;  %v1979_v27 = vadd.f32 %v5732_v40, %v1930_v26  ;;  %v2633_v23 = vmul.f32 %v5719_v13, %v2497_v39 }
 0x1fd   :  { %v3973_v30 = vpop.f32.mrf.mxu1  ;;  %v1799_v50 = vpop.f32.mrf.mxu0 }
 0x1fe   :  { %v2779_v3 = vmax.f32 %v2076_v44, %v2730_v17  ;;  %v2028_v43 = vmax.f32 %v1979_v27, 0.0  ;;  %v2682_v55 = vadd.f32 %v5732_v40, %v2633_v23  ;;  %v1931_v20 = vmul.f32 %v5719_v13, %v1799_v50 }
 0x1ff   :  { %v2502_v57 = vpop.f32.mrf.mxu1  ;;  %v3821_v46 = vpop.f32.mrf.mxu0 }
 0x200   :  { %2829 = vst.msk [vmem:[%s6047_s4 + $0xd0] sm:$0xff] %vm2802_vm3, %v2779_v3  ;;  %v2077_v4 = vmax.f32 %v5216_v25, %v2028_v43  ;;  %v2731_v54 = vmax.f32 %v2682_v55, 0.0  ;;  %v1980_v41 = vadd.f32 %v5732_v40, %v1931_v20  ;;  %v2634_v8 = vmul.f32 %v5719_v13, %v2502_v57 }
 0x201   :  { %v3976_v38 = vpop.f32.mrf.mxu1  ;;  %v1804_v29 = vpop.f32.mrf.mxu0 }
 0x202   :  { %v2780_v32 = vmax.f32 %v2077_v4, %v2731_v54  ;;  %v2029_v14 = vmax.f32 %v1980_v41, 0.0  ;;  %v2683_v61 = vadd.f32 %v5732_v40, %v2634_v8  ;;  %v1932_v15 = vmul.f32 %v5719_v13, %v1804_v29 }
 0x203   :  { %v2507_v47 = vpop.f32.mrf.mxu1  ;;  %v3824_v19 = vpop.f32.mrf.mxu0 }
 0x204   :  { %2830 = vst.msk [vmem:[%s6047_s4 + $0xd8] sm:$0xff] %vm2802_vm3, %v2780_v32  ;;  %v2078_v25 = vmax.f32 %v5234_v51, %v2029_v14  ;;  %v2732_v62 = vmax.f32 %v2683_v61, 0.0  ;;  %v1981_v63 = vadd.f32 %v5732_v40, %v1932_v15  ;;  %v2635_v2 = vmul.f32 %v5719_v13, %v2507_v47 }
 0x205   :  { %v3979_v9 = vpop.f32.mrf.mxu1  ;;  %v1809_v42 = vpop.f32.mrf.mxu0 }
 0x206   :  { %v2781_v5 = vmax.f32 %v2078_v25, %v2732_v62  ;;  %v2030_v34 = vmax.f32 %v1981_v63, 0.0  ;;  %v2684_v6 = vadd.f32 %v5732_v40, %v2635_v2  ;;  %v1933_v21 = vmul.f32 %v5719_v13, %v1809_v42 }
 0x207   :  { %v2512_v0 = vpop.f32.mrf.mxu1  ;;  %v3827_v12 = vpop.f32.mrf.mxu0 }
 0x208   :  { %2831 = vst.msk [vmem:[%s6047_s4 + $0xe0] sm:$0xff] %vm2802_vm3, %v2781_v5  ;;  %v2079_v51 = vmax.f32 %v5262_v11, %v2030_v34  ;;  %v2733_v49 = vmax.f32 %v2684_v6, 0.0  ;;  %v1982_v1 = vadd.f32 %v5732_v40, %v1933_v21  ;;  %v2636_v58 = vmul.f32 %v5719_v13, %v2512_v0 }
 0x209   :  { %v3982_v22 = vpop.f32.mrf.mxu1  ;;  %v1814_v37 = vpop.f32.mrf.mxu0 }
 0x20a   :  { %v2782_v36 = vmax.f32 %v2079_v51, %v2733_v49  ;;  %v2031_v26 = vmax.f32 %v1982_v1, 0.0  ;;  %v2685_v39 = vadd.f32 %v5732_v40, %v2636_v58  ;;  %v1934_v7 = vmul.f32 %v5719_v13, %v1814_v37 }
 0x20b   :  { %v2517_v44 = vpop.f32.mrf.mxu1  ;;  %v3830_v17 = vpop.f32.mrf.mxu0 }
 0x20c   :  { %2832 = vst.msk [vmem:[%s6047_s4 + $0xe8] sm:$0xff] %vm2802_vm3, %v2782_v36  ;;  %v2080_v11 = vmax.f32 %v5280_v35, %v2031_v26  ;;  %v2734_v27 = vmax.f32 %v2685_v39, 0.0  ;;  %v1983_v23 = vadd.f32 %v5732_v40, %v1934_v7  ;;  %v2637_v30 = vmul.f32 %v5719_v13, %v2517_v44 }
 0x20d   :  { %v3985_v50 = vpop.f32.mrf.mxu1  ;;  %v1819_v3 = vpop.f32.mrf.mxu0 }
 0x20e   :  { %v2783_v43 = vmax.f32 %v2080_v11, %v2734_v27  ;;  %v2032_v55 = vmax.f32 %v1983_v23, 0.0  ;;  %v2686_v20 = vadd.f32 %v5732_v40, %v2637_v30  ;;  %v1935_v57 = vmul.f32 %v5719_v13, %v1819_v3 }
 0x20f   :  { %v2522_v46 = vpop.f32.mrf.mxu1  ;;  %v3833_v4 = vpop.f32.mrf.mxu0 }
 0x210   :  { %2833 = vst.msk [vmem:[%s6047_s4 + $0xf0] sm:$0xff] %vm2802_vm3, %v2783_v43  ;;  %v2081_v35 = vmax.f32 %v5298_v60, %v2032_v55  ;;  %v2735_v54 = vmax.f32 %v2686_v20, 0.0  ;;  %v1984_v41 = vadd.f32 %v5732_v40, %v1935_v57  ;;  %v2638_v8 = vmul.f32 %v5719_v13, %v2522_v46 }
 0x211   :  { %v3988_v38 = vpop.f32.mrf.mxu1  ;;  %v1824_v29 = vpop.f32.mrf.mxu0 }
 0x212   :  { %v2784_v32 = vmax.f32 %v2081_v35, %v2735_v54  ;;  %v2033_v14 = vmax.f32 %v1984_v41, 0.0  ;;  %v2687_v61 = vadd.f32 %v5732_v40, %v2638_v8  ;;  %v1936_v15 = vmul.f32 %v5719_v13, %v1824_v29 }
 0x213   :  { %v2527_v47 = vpop.f32.mrf.mxu1  ;;  %v3836_v19 = vpop.f32.mrf.mxu0 }
 0x214   :  { %2834 = vst.msk [vmem:[%s6047_s4 + $0xf8] sm:$0xff] %vm2802_vm3, %v2784_v32  ;;  %v2082_v60 = vmax.f32 %v5316_v28, %v2033_v14  ;;  %v2736_v25 = vmax.f32 %v2687_v61, 0.0  ;;  %v1985_v62 = vadd.f32 %v5732_v40, %v1936_v15  ;;  %v2639_v63 = vmul.f32 %v5719_v13, %v2527_v47 }
 0x215   :  { %v3991_v2 = vpop.f32.mrf.mxu1  ;;  %v1829_v9 = vpop.f32.mrf.mxu0 }
 0x216   :  { %v2785_v42 = vmax.f32 %v2082_v60, %v2736_v25  ;;  %v2034_v5 = vmax.f32 %v1985_v62, 0.0  ;;  %v2688_v34 = vadd.f32 %v5732_v40, %v2639_v63  ;;  %v1937_v6 = vmul.f32 %v5719_v13, %v1829_v9 }
 0x217   :  { %v2532_v21 = vpop.f32.mrf.mxu1  ;;  %v3839_v0 = vpop.f32.mrf.mxu0 }
 0x218   :  { %2835 = vst.msk [vmem:[%s6047_s4 + $0x100] sm:$0xff] %vm2802_vm3, %v2785_v42  ;;  %v2083_v28 = vmax.f32 %v5334_v56, %v2034_v5  ;;  %v2737_v12 = vmax.f32 %v2688_v34, 0.0  ;;  %v1986_v51 = vadd.f32 %v5732_v40, %v1937_v6  ;;  %v2640_v49 = vmul.f32 %v5719_v13, %v2532_v21 }
 0x219   :  { %v3994_v1 = vpop.f32.mrf.mxu1  ;;  %v1834_v58 = vpop.f32.mrf.mxu0 }
 0x21a   :  { %v2786_v22 = vmax.f32 %v2083_v28, %v2737_v12  ;;  %v2035_v37 = vmax.f32 %v1986_v51, 0.0  ;;  %v2689_v36 = vadd.f32 %v5732_v40, %v2640_v49  ;;  %v1938_v26 = vmul.f32 %v5719_v13, %v1834_v58 }
 0x21b   :  { %v2537_v39 = vpop.f32.mrf.mxu1  ;;  %v3842_v7 = vpop.f32.mrf.mxu0 }
 0x21c   :  { %2836 = vst.msk [vmem:[%s6047_s4 + $0x108] sm:$0xff] %vm2802_vm3, %v2786_v22  ;;  %v2084_v56 = vmax.f32 %v5352_v18, %v2035_v37  ;;  %v2738_v44 = vmax.f32 %v2689_v36, 0.0  ;;  %v1987_v17 = vadd.f32 %v5732_v40, %v1938_v26  ;;  %v2641_v11 = vmul.f32 %v5719_v13, %v2537_v39 }
 0x21d   :  { %v3997_v27 = vpop.f32.mrf.mxu1  ;;  %v1839_v23 = vpop.f32.mrf.mxu0 }
 0x21e   :  { %v2787_v30 = vmax.f32 %v2084_v56, %v2738_v44  ;;  %v2036_v50 = vmax.f32 %v1987_v17, 0.0  ;;  %v2690_v3 = vadd.f32 %v5732_v40, %v2641_v11  ;;  %v1939_v43 = vmul.f32 %v5719_v13, %v1839_v23 }
 0x21f   :  { %v2542_v55 = vpop.f32.mrf.mxu1  ;;  %v3845_v20 = vpop.f32.mrf.mxu0 }
 0x220   :  { %2837 = vst.msk [vmem:[%s6047_s4 + $0x110] sm:$0xff] %vm2802_vm3, %v2787_v30  ;;  %v2085_v18 = vmax.f32 %v5370_v52, %v2036_v50  ;;  %v2739_v57 = vmax.f32 %v2690_v3, 0.0  ;;  %v1988_v46 = vadd.f32 %v5732_v40, %v1939_v43  ;;  %v2642_v4 = vmul.f32 %v5719_v13, %v2542_v55 }
 0x221   :  { %v4000_v35 = vpop.f32.mrf.mxu1  ;;  %v1844_v54 = vpop.f32.mrf.mxu0 }
 0x222   :  { %v2788_v41 = vmax.f32 %v2085_v18, %v2739_v57  ;;  %v2037_v8 = vmax.f32 %v1988_v46, 0.0  ;;  %v2691_v38 = vadd.f32 %v5732_v40, %v2642_v4  ;;  %v1940_v29 = vmul.f32 %v5719_v13, %v1844_v54 }
 0x223   :  { %v2547_v32 = vpop.f32.mrf.mxu1  ;;  %v3848_v14 = vpop.f32.mrf.mxu0 }
 0x224   :  { %2838 = vst.msk [vmem:[%s6047_s4 + $0x118] sm:$0xff] %vm2802_vm3, %v2788_v41  ;;  %v2086_v52 = vmax.f32 %v5388_v16, %v2037_v8  ;;  %v2740_v61 = vmax.f32 %v2691_v38, 0.0  ;;  %v1989_v15 = vadd.f32 %v5732_v40, %v1940_v29  ;;  %v2643_v47 = vmul.f32 %v5719_v13, %v2547_v32 }
 0x225   :  { %v4003_v19 = vpop.f32.mrf.mxu1  ;;  %v1849_v60 = vpop.f32.mrf.mxu0 }
 0x226   :  { %v2789_v25 = vmax.f32 %v2086_v52, %v2740_v61  ;;  %v2038_v62 = vmax.f32 %v1989_v15, 0.0  ;;  %v2692_v63 = vadd.f32 %v5732_v40, %v2643_v47  ;;  %v1941_v2 = vmul.f32 %v5719_v13, %v1849_v60 }
 0x227   :  { %v2552_v9 = vpop.f32.mrf.mxu1  ;;  %v3851_v42 = vpop.f32.mrf.mxu0 }
 0x228   :  { %2839 = vst.msk [vmem:[%s6047_s4 + $0x120] sm:$0xff] %vm2802_vm3, %v2789_v25  ;;  %v2087_v16 = vmax.f32 %v5406_v53, %v2038_v62  ;;  %v2741_v5 = vmax.f32 %v2692_v63, 0.0  ;;  %v1990_v34 = vadd.f32 %v5732_v40, %v1941_v2  ;;  %v2644_v6 = vmul.f32 %v5719_v13, %v2552_v9 }
 0x229   :  { %v4006_v21 = vpop.f32.mrf.mxu1  ;;  %v1854_v0 = vpop.f32.mrf.mxu0 }
 0x22a   :  { %v2790_v28 = vmax.f32 %v2087_v16, %v2741_v5  ;;  %v2039_v12 = vmax.f32 %v1990_v34, 0.0  ;;  %v2693_v51 = vadd.f32 %v5732_v40, %v2644_v6  ;;  %v1942_v49 = vmul.f32 %v5719_v13, %v1854_v0 }
 0x22b   :  { %v2557_v1 = vpop.f32.mrf.mxu1  ;;  %v3854_v58 = vpop.f32.mrf.mxu0 }
 0x22c   :  { %2840 = vst.msk [vmem:[%s6047_s4 + $0x128] sm:$0xff] %vm2802_vm3, %v2790_v28  ;;  %v2088_v53 = vmax.f32 %v5424_v24, %v2039_v12  ;;  %v2742_v22 = vmax.f32 %v2693_v51, 0.0  ;;  %v1991_v37 = vadd.f32 %v5732_v40, %v1942_v49  ;;  %v2645_v36 = vmul.f32 %v5719_v13, %v2557_v1 }
 0x22d   :  { %v4009_v26 = vpop.f32.mrf.mxu1  ;;  %v1859_v39 = vpop.f32.mrf.mxu0 }
 0x22e   :  { %v2791_v7 = vmax.f32 %v2088_v53, %v2742_v22  ;;  %v2040_v56 = vmax.f32 %v1991_v37, 0.0  ;;  %v2694_v44 = vadd.f32 %v5732_v40, %v2645_v36  ;;  %v1943_v17 = vmul.f32 %v5719_v13, %v1859_v39 }
 0x22f   :  { %v2562_v11 = vpop.f32.mrf.mxu1  ;;  %v3857_v27 = vpop.f32.mrf.mxu0 }
 0x230   :  { %2841 = vst.msk [vmem:[%s6047_s4 + $0x130] sm:$0xff] %vm2802_vm3, %v2791_v7  ;;  %v2089_v24 = vmax.f32 %v5442_v59, %v2040_v56  ;;  %v2743_v23 = vmax.f32 %v2694_v44, 0.0  ;;  %v1992_v30 = vadd.f32 %v5732_v40, %v1943_v17  ;;  %v2646_v50 = vmul.f32 %v5719_v13, %v2562_v11 }
 0x231   :  { %v4012_v3 = vpop.f32.mrf.mxu1  ;;  %v1864_v43 = vpop.f32.mrf.mxu0 }
 0x232   :  { %v2792_v55 = vmax.f32 %v2089_v24, %v2743_v23  ;;  %v2041_v20 = vmax.f32 %v1992_v30, 0.0  ;;  %v2695_v18 = vadd.f32 %v5732_v40, %v2646_v50  ;;  %v1944_v57 = vmul.f32 %v5719_v13, %v1864_v43  ;;  %v6053_v23 = vld [vmem:[#allocation3_spill] sm:$0xff] }
 0x233   :  { %v2567_v46 = vpop.f32.mrf.mxu1  ;;  %v3860_v4 = vpop.f32.mrf.mxu0 }
 0x234   :  { %2842 = vst.msk [vmem:[%s6047_s4 + $0x138] sm:$0xff] %vm2802_vm3, %v2792_v55  ;;  %v2090_v59 = vmax.f32 %v5460_v33, %v2041_v20  ;;  %v2744_v35 = vmax.f32 %v2695_v18, 0.0  ;;  %v1993_v54 = vadd.f32 %v5732_v40, %v1944_v57  ;;  %v2647_v41 = vmul.f32 %v5719_v13, %v2567_v46 }
 0x235   :  { %v4015_v8 = vpop.f32.mrf.mxu1  ;;  %v1869_v38 = vpop.f32.mrf.mxu0 }
 0x236   :  { %v2793_v29 = vmax.f32 %v2090_v59, %v2744_v35  ;;  %v2042_v32 = vmax.f32 %v1993_v54, 0.0  ;;  %v2696_v14 = vadd.f32 %v5732_v40, %v2647_v41  ;;  %v1945_v52 = vmul.f32 %v5719_v13, %v1869_v38  ;;  %v6054_v54 = vld [vmem:[#allocation4_spill] sm:$0xff] }
 0x237   :  { %v2572_v61 = vpop.f32.mrf.mxu1  ;;  %v3863_v15 = vpop.f32.mrf.mxu0 }
 0x238   :  { %2843 = vst.msk [vmem:[%s6047_s4 + $0x140] sm:$0xff] %vm2802_vm3, %v2793_v29  ;;  %v2091_v33 = vmax.f32 %v5478_v10, %v2042_v32  ;;  %v2745_v47 = vmax.f32 %v2696_v14, 0.0  ;;  %v1994_v19 = vadd.f32 %v5732_v40, %v1945_v52  ;;  %v2648_v60 = vmul.f32 %v5719_v13, %v2572_v61 }
 0x239   :  { %v4018_v25 = vpop.f32.mrf.mxu1  ;;  %v1874_v62 = vpop.f32.mrf.mxu0 }
 0x23a   :  { %v2794_v63 = vmax.f32 %v2091_v33, %v2745_v47  ;;  %v2043_v2 = vmax.f32 %v1994_v19, 0.0  ;;  %v2697_v9 = vadd.f32 %v5732_v40, %v2648_v60  ;;  %v1946_v42 = vmul.f32 %v5719_v13, %v1874_v62  ;;  %v6055_v60 = vld [vmem:[#allocation5_spill] sm:$0xff] }
 0x23b   :  { %v2577_v16 = vpop.f32.mrf.mxu1  ;;  %v3866_v5 = vpop.f32.mrf.mxu0 }
 0x23c   :  { %2844 = vst.msk [vmem:[%s6047_s4 + $0x148] sm:$0xff] %vm2802_vm3, %v2794_v63  ;;  %v2092_v10 = vmax.f32 %v5496_v48, %v2043_v2  ;;  %v2746_v34 = vmax.f32 %v2697_v9, 0.0  ;;  %v1995_v6 = vadd.f32 %v5732_v40, %v1946_v42  ;;  %v2649_v21 = vmul.f32 %v5719_v13, %v2577_v16  ;;  %v6052_v48 = vld [vmem:[#allocation2_spill] sm:$0xff] }
 0x23d   :  { %v4021_v0 = vpop.f32.mrf.mxu1  ;;  %v1879_v28 = vpop.f32.mrf.mxu0 }
 0x23e   :  { %v2795_v12 = vmax.f32 %v2092_v10, %v2746_v34  ;;  %v2044_v51 = vmax.f32 %v1995_v6, 0.0  ;;  %v2698_v49 = vadd.f32 %v5732_v40, %v2649_v21  ;;  %v1947_v1 = vmul.f32 %v5719_v13, %v1879_v28 }
 0x23f   :  { %v2582_v58 = vpop.f32.mrf.mxu1  ;;  %v3869_v53 = vpop.f32.mrf.mxu0 }
 0x240   :  { %2845 = vst.msk [vmem:[%s6047_s4 + $0x150] sm:$0xff] %vm2802_vm3, %v2795_v12  ;;  %v2093_v22 = vmax.f32 %v6052_v48, %v2044_v51  ;;  %v2747_v37 = vmax.f32 %v2698_v49, 0.0  ;;  %v1996_v36 = vadd.f32 %v5732_v40, %v1947_v1  ;;  %v2650_v26 = vmul.f32 %v5719_v13, %v2582_v58 }
 0x241   :  { %v4024_v39 = vpop.f32.mrf.mxu1  ;;  %v1884_v7 = vpop.f32.mrf.mxu0 }
 0x242   :  { %v2796_v56 = vmax.f32 %v2093_v22, %v2747_v37  ;;  %v2045_v44 = vmax.f32 %v1996_v36, 0.0  ;;  %v2699_v17 = vadd.f32 %v5732_v40, %v2650_v26  ;;  %v1948_v11 = vmul.f32 %v5719_v13, %v1884_v7 }
 0x243   :  { %v2587_v27 = vpop.f32.mrf.mxu1  ;;  %v3872_v24 = vpop.f32.mrf.mxu0 }
 0x244   :  { %2846 = vst.msk [vmem:[%s6047_s4 + $0x158] sm:$0xff] %vm2802_vm3, %v2796_v56  ;;  %v2094_v30 = vmax.f32 %v6053_v23, %v2045_v44  ;;  %v2748_v50 = vmax.f32 %v2699_v17, 0.0  ;;  %v1997_v3 = vadd.f32 %v5732_v40, %v1948_v11  ;;  %v2651_v43 = vmul.f32 %v5719_v13, %v2587_v27 }
 0x245   :  { %v4027_v55 = vpop.f32.mrf.mxu1  ;;  %v1889_v20 = vpop.f32.mrf.mxu0 }
 0x246   :  { %v2797_v18 = vmax.f32 %v2094_v30, %v2748_v50  ;;  %v2046_v57 = vmax.f32 %v1997_v3, 0.0  ;;  %v2700_v46 = vadd.f32 %v5732_v40, %v2651_v43  ;;  %v1949_v4 = vmul.f32 %v5719_v13, %v1889_v20 }
 0x247   :  { %v2592_v59 = vpop.f32.mrf.mxu1  ;;  %v3875_v35 = vpop.f32.mrf.mxu0 }
 0x248   :  { %2847 = vst.msk [vmem:[%s6047_s4 + $0x160] sm:$0xff] %vm2802_vm3, %v2797_v18  ;;  %v2095_v41 = vmax.f32 %v6054_v54, %v2046_v57  ;;  %v2749_v8 = vmax.f32 %v2700_v46, 0.0  ;;  %v1998_v38 = vadd.f32 %v5732_v40, %v1949_v4  ;;  %v2652_v29 = vmul.f32 %v5719_v13, %v2592_v59 }
 0x249   :  { %v4030_v32 = vpop.f32.mrf.mxu1  ;;  %v1894_v14 = vpop.f32.mrf.mxu0 }
 0x24a   :  { %v2798_v52 = vmax.f32 %v2095_v41, %v2749_v8  ;;  %v2047_v61 = vmax.f32 %v1998_v38, 0.0  ;;  %v2701_v15 = vadd.f32 %v5732_v40, %v2652_v29  ;;  %v1950_v33 = vmul.f32 %v5719_v13, %v1894_v14 }
 0x24b   :  { %v2597_v47 = vpop.f32.mrf.mxu1  ;;  %v3878_v19 = vpop.f32.mrf.mxu0 }
 0x24c   :  { %2848 = vst.msk [vmem:[%s6047_s4 + $0x168] sm:$0xff] %vm2802_vm3, %v2798_v52  ;;  %v2096_v25 = vmax.f32 %v6055_v60, %v2047_v61  ;;  %v2750_v62 = vmax.f32 %v2701_v15, 0.0  ;;  %v1999_v63 = vadd.f32 %v5732_v40, %v1950_v33  ;;  %v2653_v2 = vmul.f32 %v5719_v13, %v2597_v47 }
 0x24d   :  { %v4033_v9 = vpop.f32.mrf.mxu1  ;;  %v1899_v42 = vpop.f32.mrf.mxu0 }
 0x24e   :  { %v2799_v16 = vmax.f32 %v2096_v25, %v2750_v62  ;;  %v2048_v5 = vmax.f32 %v1999_v63, 0.0  ;;  %v2702_v10 = vadd.f32 %v5732_v40, %v2653_v2  ;;  %v1951_v34 = vmul.f32 %v5719_v13, %v1899_v42 }
 0x24f   :  { %v2602_v6 = vpop.f32.mrf.mxu1  ;;  %v3881_v21 = vpop.f32.mrf.mxu0 }
 0x250   :  { %2849 = vst.msk [vmem:[%s6047_s4 + $0x170] sm:$0xff] %vm2802_vm3, %v2799_v16  ;;  %v2097_v0 = vmax.f32 %v5586_v45, %v2048_v5  ;;  %v2751_v28 = vmax.f32 %v2702_v10, 0.0  ;;  %v2000_v12 = vadd.f32 %v5732_v40, %v1951_v34  ;;  %v2654_v51 = vmul.f32 %v5719_v13, %v2602_v6 }
 0x251   :  { %v4036_v49 = vpop.f32.mrf.mxu1 }
 0x252   :  { %v2800_v1 = vmax.f32 %v2097_v0, %v2751_v28  ;;  %v2049_v58 = vmax.f32 %v2000_v12, 0.0  ;;  %v2703_v53 = vadd.f32 %v5732_v40, %v2654_v51 }
 0x254   :  { %2850 = vst.msk [vmem:[%s6047_s4 + $0x178] sm:$0xff] %vm2802_vm3, %v2800_v1  ;;  %v2098_v48 = vmax.f32 %v5593_v31, %v2049_v58  ;;  %v2752_v22 = vmax.f32 %v2703_v53, 0.0 }
 0x256   :  { %v2801_v37 = vmax.f32 %v2098_v48, %v2752_v22 }
 0x258   :  { %2851 = vst.msk [vmem:[%s6047_s4 + $0x180] sm:$0xff] %vm2802_vm3, %v2801_v37 }

// kernel: lenet5_forward.4
= control target key start
LH: loop header
LB: loop body
LE: loop exit
PB: predicated region body
PF: predicated region fallthrough
CT: control target
= control target key end

     0   :  { %v793_v0 = vmov 0.0   ;;  %vm74_vm0 = vcmask 1045504   ;;  %vm52_vm1 = vcmask 179200   ;;  %vm703_vm2 = vcmask 130048   ;;  %s1371_s1 = inlined_call_operand.vmem [shape: f32[150,16], index: 1, kind: input, shape index: {}]   ;;  %s1372_s0 = inlined_call_operand.vmem [shape: f32[4,50,150], index: 0, kind: input, shape index: {}]   ;;  %s1373_s2 = inlined_call_operand.vmem [shape: f32[1,16], index: 2, kind: input, shape index: {}]   ;;  %s1374_s3 = inlined_call_operand.vmem [shape: f32[1,16], index: 3, kind: input, shape index: {}]   ;;  %s1375_s4 = inlined_call_operand.vmem [shape: f32[50,16], index: 4, kind: output, shape index: {}]  }
   0x1   :  { %78 = vmatprep.subr.mxu0 %v793_v0  ;;  %247 = vmatprep.subr.mxu1 %v793_v0  ;;  %v824_v1 = vld [vmem:[%s1371_s1 + $0x78] sm:$0xff]  ;;  %v829_v2 = vld [vmem:[%s1371_s1 + $0x70] sm:$0xff]  ;;  %v838_v3 = vld [vmem:[%s1371_s1 + $0x68] sm:$0xff]  ;;  %vm710_vm3 = vcmask 123904  }
   0x2   :  { %79 = vmatpush1.msra.mxu0 %v824_v1  ;;  %248 = vmatpush1.msra.mxu1 %v824_v1  ;;  %v847_v4 = vld [vmem:[%s1371_s1 + $0x60] sm:$0xff]  ;;  %v856_v5 = vld [vmem:[%s1371_s1 + $0x58] sm:$0xff]  ;;  %v865_v6 = vld [vmem:[%s1371_s1 + $0x50] sm:$0xff] }
   0x3   :  { %80 = vmatprep.subr.mxu0 %v793_v0  ;;  %249 = vmatprep.subr.mxu1 %v793_v0  ;;  %v874_v7 = vld [vmem:[%s1371_s1 + $0x48] sm:$0xff]  ;;  %v883_v8 = vld [vmem:[%s1371_s1 + $0x40] sm:$0xff]  ;;  %v892_v9 = vld [vmem:[%s1371_s1 + $0x38] sm:$0xff] }
   0x4   :  { %81 = vmatpush1.msra.mxu0 %v829_v2  ;;  %250 = vmatpush1.msra.mxu1 %v829_v2  ;;  %v901_v10 = vld [vmem:[%s1371_s1 + $0x30] sm:$0xff]  ;;  %v910_v11 = vld [vmem:[%s1371_s1 + $0x28] sm:$0xff]  ;;  %v919_v12 = vld [vmem:[%s1371_s1 + $0x20] sm:$0xff] }
   0x5   :  { %82 = vmatprep.subr.mxu0 %v793_v0  ;;  %251 = vmatprep.subr.mxu1 %v793_v0  ;;  %v928_v13 = vld [vmem:[%s1371_s1 + $0x18] sm:$0xff]  ;;  %v937_v14 = vld [vmem:[%s1371_s1 + $0x10] sm:$0xff]  ;;  %v946_v15 = vld [vmem:[%s1371_s1 + $0x8] sm:$0xff] }
   0x6   :  { %83 = vmatpush1.msra.mxu0 %v838_v3  ;;  %252 = vmatpush1.msra.mxu1 %v838_v3  ;;  %v955_v16 = vld [vmem:[%s1371_s1] sm:$0xff]  ;;  %v964_v17 = vld [vmem:[%s1371_s1 + $0x90] sm:$0x3f]  ;;  %v973_v18 = vld [vmem:[%s1371_s1 + $0x88] sm:$0xff] }
   0x7   :  { %84 = vmatprep.subr.mxu0 %v793_v0  ;;  %253 = vmatprep.subr.mxu1 %v793_v0  ;;  %v984_v19 = vld [vmem:[%s1371_s1 + $0x80] sm:$0xff]  ;;  %v39_v20 = vld [vmem:[%s1372_s0 + $0x8] sm:$0xff]  ;;  %v727_v22 = vld [vmem:[%s1372_s0 + $0x78] sm:$0xff] }
   0x8   :  { %85 = vmatpush1.msra.mxu0 %v847_v4  ;;  %254 = vmatpush1.msra.mxu1 %v847_v4  ;;  %v38_v21 = vld [vmem:[%s1372_s0] sm:$0xff]  ;;  %v726_v23 = vld [vmem:[%s1372_s0 + $0x70] sm:$0xff]  ;;  %v41_v24 = vld [vmem:[%s1372_s0 + $0x18] sm:$0xff] }
   0x9   :  { %86 = vmatprep.subr.mxu0 %v793_v0  ;;  %255 = vmatprep.subr.mxu1 %v793_v0  ;;  %v40_v25 = vld [vmem:[%s1372_s0 + $0x10] sm:$0xff]  ;;  %v729_v26 = vld [vmem:[%s1372_s0 + $0x88] sm:$0xff]  ;;  %v728_v27 = vld [vmem:[%s1372_s0 + $0x80] sm:$0xff] }
   0xa   :  { %87 = vmatpush1.msra.mxu0 %v856_v5  ;;  %256 = vmatpush1.msra.mxu1 %v856_v5  ;;  %v43_v28 = vld [vmem:[%s1372_s0 + $0x28] sm:$0xff]  ;;  %v42_v29 = vld [vmem:[%s1372_s0 + $0x20] sm:$0xff]  ;;  %v731_v30 = vld [vmem:[%s1372_s0 + $0x98] sm:$0xff] }
   0xb   :  { %88 = vmatprep.subr.mxu0 %v793_v0  ;;  %257 = vmatprep.subr.mxu1 %v793_v0  ;;  %v730_v31 = vld [vmem:[%s1372_s0 + $0x90] sm:$0xff]  ;;  %v45_v32 = vld [vmem:[%s1372_s0 + $0x38] sm:$0xff]  ;;  %v733_v34 = vld [vmem:[%s1372_s0 + $0xa8] sm:$0xff] }
   0xc   :  { %89 = vmatpush1.msra.mxu0 %v865_v6  ;;  %258 = vmatpush1.msra.mxu1 %v865_v6  ;;  %v44_v33 = vld [vmem:[%s1372_s0 + $0x30] sm:$0xff]  ;;  %v732_v35 = vld [vmem:[%s1372_s0 + $0xa0] sm:$0xff]  ;;  %v47_v36 = vld [vmem:[%s1372_s0 + $0x48] sm:$0xff] }
   0xd   :  { %90 = vmatprep.subr.mxu0 %v793_v0  ;;  %259 = vmatprep.subr.mxu1 %v793_v0  ;;  %v46_v37 = vld [vmem:[%s1372_s0 + $0x40] sm:$0xff]  ;;  %v735_v38 = vld [vmem:[%s1372_s0 + $0xb8] sm:$0xff]  ;;  %v734_v39 = vld [vmem:[%s1372_s0 + $0xb0] sm:$0xff] }
   0xe   :  { %91 = vmatpush1.msra.mxu0 %v874_v7  ;;  %260 = vmatpush1.msra.mxu1 %v874_v7  ;;  %v49_v40 = vld [vmem:[%s1372_s0 + $0x58] sm:$0xff]  ;;  %v48_v41 = vld [vmem:[%s1372_s0 + $0x50] sm:$0xff]  ;;  %v737_v42 = vld [vmem:[%s1372_s0 + $0xc8] sm:$0xff] }
   0xf   :  { %92 = vmatprep.subr.mxu0 %v793_v0  ;;  %261 = vmatprep.subr.mxu1 %v793_v0  ;;  %v736_v43 = vld [vmem:[%s1372_s0 + $0xc0] sm:$0xff]  ;;  %v51_v44 = vld [vmem:[%s1372_s0 + $0x68] sm:$0x3]  ;;  %v739_v46 = vld [vmem:[%s1372_s0 + $0xd8] sm:$0x3] }
  0x10   :  { %93 = vmatpush1.msra.mxu0 %v883_v8  ;;  %262 = vmatpush1.msra.mxu1 %v883_v8  ;;  %v50_v45 = vld [vmem:[%s1372_s0 + $0x60] sm:$0x3]  ;;  %v738_v47 = vld [vmem:[%s1372_s0 + $0xd0] sm:$0x3]  ;;  %v749_v48 = vld [vmem:[%s1372_s0 + $0xe8] sm:$0xff] }
  0x11   :  { %94 = vmatprep.subr.mxu0 %v793_v0  ;;  %263 = vmatprep.subr.mxu1 %v793_v0  ;;  %v771_v49 = vld [vmem:[%s1372_s0 + $0x158] sm:$0xff]  ;;  %v748_v50 = vld [vmem:[%s1372_s0 + $0xe0] sm:$0xff]  ;;  %v770_v51 = vld [vmem:[%s1372_s0 + $0x150] sm:$0xff] }
  0x12   :  { %95 = vmatpush1.msra.mxu0 %v892_v9  ;;  %264 = vmatpush1.msra.mxu1 %v892_v9  ;;  %v751_v52 = vld [vmem:[%s1372_s0 + $0xf8] sm:$0xff]  ;;  %v773_v53 = vld [vmem:[%s1372_s0 + $0x168] sm:$0xff]  ;;  %v750_v54 = vld [vmem:[%s1372_s0 + $0xf0] sm:$0xff] }
  0x13   :  { %96 = vmatprep.subr.mxu0 %v793_v0  ;;  %265 = vmatprep.subr.mxu1 %v793_v0  ;;  %v772_v55 = vld [vmem:[%s1372_s0 + $0x160] sm:$0xff]  ;;  %v753_v56 = vld [vmem:[%s1372_s0 + $0x108] sm:$0xff]  ;;  %v775_v57 = vld [vmem:[%s1372_s0 + $0x178] sm:$0xff] }
  0x14   :  { %97 = vmatpush1.msra.mxu0 %v901_v10  ;;  %266 = vmatpush1.msra.mxu1 %v901_v10  ;;  %v752_v58 = vld [vmem:[%s1372_s0 + $0x100] sm:$0xff]  ;;  %v774_v59 = vld [vmem:[%s1372_s0 + $0x170] sm:$0xff]  ;;  %v755_v60 = vld [vmem:[%s1372_s0 + $0x118] sm:$0xff] }
  0x15   :  { %98 = vmatprep.subr.mxu0 %v793_v0  ;;  %267 = vmatprep.subr.mxu1 %v793_v0  ;;  %v777_v61 = vld [vmem:[%s1372_s0 + $0x188] sm:$0xff]  ;;  %v754_v62 = vld [vmem:[%s1372_s0 + $0x110] sm:$0xff]  ;;  %v776_v63 = vld [vmem:[%s1372_s0 + $0x180] sm:$0xff] }
  0x16   :  { %99 = vmatpush1.msra.mxu0 %v910_v11  ;;  %268 = vmatpush1.msra.mxu1 %v910_v11 }
  0x17   :  { %100 = vmatprep.subr.mxu0 %v793_v0  ;;  %269 = vmatprep.subr.mxu1 %v793_v0 }
  0x18   :  { %101 = vmatpush1.msra.mxu0 %v919_v12  ;;  %270 = vmatpush1.msra.mxu1 %v919_v12 }
  0x19   :  { %102 = vmatprep.subr.mxu0 %v793_v0  ;;  %271 = vmatprep.subr.mxu1 %v793_v0 }
  0x1a   :  { %103 = vmatpush1.msra.mxu0 %v928_v13  ;;  %272 = vmatpush1.msra.mxu1 %v928_v13 }
  0x1b   :  { %104 = vmatprep.subr.mxu0 %v793_v0  ;;  %273 = vmatprep.subr.mxu1 %v793_v0 }
  0x1c   :  { %105 = vmatpush1.msra.mxu0 %v937_v14  ;;  %274 = vmatpush1.msra.mxu1 %v937_v14 }
  0x1d   :  { %106 = vmatprep.subr.mxu0 %v793_v0  ;;  %275 = vmatprep.subr.mxu1 %v793_v0 }
  0x1e   :  { %107 = vmatpush1.msra.mxu0 %v946_v15  ;;  %276 = vmatpush1.msra.mxu1 %v946_v15 }
  0x1f   :  { %108 = vmatprep.subr.mxu0 %v793_v0  ;;  %277 = vmatprep.subr.mxu1 %v793_v0 }
  0x20   :  { %109 = vmatpush1.msra.mxu0 %v955_v16  ;;  %278 = vmatpush1.msra.mxu1 %v955_v16 }
  0x21   :  { %136 = vmatprep.subr.mxu0 %v793_v0  ;;  %305 = vmatprep.subr.mxu1 %v793_v0 }
  0x22   :  { %716 = vmatpush2.msk.msra.mxu0 %vm74_vm0, %v964_v17  ;;  %740 = vmatpush2.msk.msra.mxu1 %vm74_vm0, %v964_v17 }
  0x23   :  { %138 = vmatprep.subr.mxu0 %v793_v0  ;;  %307 = vmatprep.subr.mxu1 %v793_v0 }
  0x24   :  { %139 = vmatpush2.msra.mxu0 %v973_v18  ;;  %308 = vmatpush2.msra.mxu1 %v973_v18 }
  0x25   :  { %140 = vmatprep.subr.mxu0 %v793_v0  ;;  %309 = vmatprep.subr.mxu1 %v793_v0 }
  0x26   :  { %141 = vmatpush2.msra.mxu0 %v984_v19  ;;  %717 = vmatprep.mubr.msk.f32.mxu0 %vm52_vm1, %v39_v20 }
  0x27   :  { %310 = vmatpush2.msra.mxu1 %v984_v19  ;;  %143 = vmatmul.mubr.f32.vlgmr.msra.gmra.mxu0 %v38_v21 }
  0x28   :  { %741 = vmatprep.mubr.msk.f32.mxu1 %vm52_vm1, %v727_v22  ;;  %411 = vmatprep.subr.mxu0 %v793_v0 }
  0x29   :  { %575 = vmatprep.subr.mxu1 %v793_v0  ;;  %312 = vmatmul.mubr.f32.vlgmr.msra.gmra.mxu1 %v726_v23 }
  0x2a   :  { %412 = vmatpush1.msra.mxu0 %v824_v1  ;;  %576 = vmatpush1.msra.mxu1 %v824_v1  ;;  %v779_v1 = vld [vmem:[%s1372_s0 + $0x198] sm:$0xff] }
  0x2b   :  { %413 = vmatprep.subr.mxu0 %v793_v0  ;;  %577 = vmatprep.subr.mxu1 %v793_v0 }
  0x2c   :  { %414 = vmatpush1.msra.mxu0 %v829_v2  ;;  %578 = vmatpush1.msra.mxu1 %v829_v2  ;;  %v756_v2 = vld [vmem:[%s1372_s0 + $0x120] sm:$0xff] }
  0x2d   :  { %415 = vmatprep.subr.mxu0 %v793_v0  ;;  %579 = vmatprep.subr.mxu1 %v793_v0 }
  0x2e   :  { %416 = vmatpush1.msra.mxu0 %v838_v3  ;;  %580 = vmatpush1.msra.mxu1 %v838_v3  ;;  %v778_v3 = vld [vmem:[%s1372_s0 + $0x190] sm:$0xff] }
  0x2f   :  { %417 = vmatprep.subr.mxu0 %v793_v0  ;;  %581 = vmatprep.subr.mxu1 %v793_v0 }
  0x30   :  { %418 = vmatpush1.msra.mxu0 %v847_v4  ;;  %582 = vmatpush1.msra.mxu1 %v847_v4  ;;  %v759_v4 = vld [vmem:[%s1372_s0 + $0x138] sm:$0xff] }
  0x31   :  { %419 = vmatprep.subr.mxu0 %v793_v0  ;;  %583 = vmatprep.subr.mxu1 %v793_v0 }
  0x32   :  { %420 = vmatpush1.msra.mxu0 %v856_v5  ;;  %584 = vmatpush1.msra.mxu1 %v856_v5  ;;  %v781_v5 = vld [vmem:[%s1372_s0 + $0x1a8] sm:$0xff] }
  0x33   :  { %421 = vmatprep.subr.mxu0 %v793_v0  ;;  %585 = vmatprep.subr.mxu1 %v793_v0 }
  0x34   :  { %718 = vmatprep.mubr.msk.f32.mxu0 %vm52_vm1, %v41_v24  ;;  %422 = vmatpush1.msra.mxu0 %v865_v6 }
  0x35   :  { %586 = vmatpush1.msra.mxu1 %v865_v6  ;;  %148 = vmatmul.mubr.f32.gmra.mxu0 %v40_v25  ;;  %v758_v6 = vld [vmem:[%s1372_s0 + $0x130] sm:$0xff] }
  0x36   :  { %423 = vmatprep.subr.mxu0 %v793_v0  ;;  %587 = vmatprep.subr.mxu1 %v793_v0 }
  0x37   :  { %742 = vmatprep.mubr.msk.f32.mxu1 %vm52_vm1, %v729_v26  ;;  %424 = vmatpush1.msra.mxu0 %v874_v7 }
  0x38   :  { %588 = vmatpush1.msra.mxu1 %v874_v7  ;;  %425 = vmatprep.subr.mxu0 %v793_v0  ;;  %v780_v7 = vld [vmem:[%s1372_s0 + $0x1a0] sm:$0xff] }
  0x39   :  { %317 = vmatmul.mubr.f32.gmra.mxu1 %v728_v27  ;;  %589 = vmatprep.subr.mxu1 %v793_v0 }
  0x3a   :  { %719 = vmatprep.mubr.msk.f32.mxu0 %vm52_vm1, %v43_v28  ;;  %426 = vmatpush1.msra.mxu0 %v883_v8 }
  0x3b   :  { %590 = vmatpush1.msra.mxu1 %v883_v8  ;;  %153 = vmatmul.mubr.f32.gmra.mxu0 %v42_v29  ;;  %v761_v8 = vld [vmem:[%s1372_s0 + $0x148] sm:$0x3] }
  0x3c   :  { %427 = vmatprep.subr.mxu0 %v793_v0  ;;  %591 = vmatprep.subr.mxu1 %v793_v0 }
  0x3d   :  { %743 = vmatprep.mubr.msk.f32.mxu1 %vm52_vm1, %v731_v30  ;;  %428 = vmatpush1.msra.mxu0 %v892_v9 }
  0x3e   :  { %592 = vmatpush1.msra.mxu1 %v892_v9  ;;  %429 = vmatprep.subr.mxu0 %v793_v0  ;;  %v783_v9 = vld [vmem:[%s1372_s0 + $0x1b8] sm:$0x3] }
  0x3f   :  { %322 = vmatmul.mubr.f32.gmra.mxu1 %v730_v31  ;;  %593 = vmatprep.subr.mxu1 %v793_v0 }
  0x40   :  { %720 = vmatprep.mubr.msk.f32.mxu0 %vm52_vm1, %v45_v32  ;;  %430 = vmatpush1.msra.mxu0 %v901_v10 }
  0x41   :  { %594 = vmatpush1.msra.mxu1 %v901_v10  ;;  %158 = vmatmul.mubr.f32.gmra.mxu0 %v44_v33  ;;  %v760_v10 = vld [vmem:[%s1372_s0 + $0x140] sm:$0x3] }
  0x42   :  { %431 = vmatprep.subr.mxu0 %v793_v0  ;;  %595 = vmatprep.subr.mxu1 %v793_v0 }
  0x43   :  { %744 = vmatprep.mubr.msk.f32.mxu1 %vm52_vm1, %v733_v34  ;;  %432 = vmatpush1.msra.mxu0 %v910_v11  ;;  %v1271_v34 = vld [vmem:[%s1373_s2] ss:$0 sm:$0xff] }
  0x44   :  { %596 = vmatpush1.msra.mxu1 %v910_v11  ;;  %433 = vmatprep.subr.mxu0 %v793_v0  ;;  %v782_v11 = vld [vmem:[%s1372_s0 + $0x1b0] sm:$0x3] }
  0x45   :  { %327 = vmatmul.mubr.f32.gmra.mxu1 %v732_v35  ;;  %597 = vmatprep.subr.mxu1 %v793_v0 }
  0x46   :  { %721 = vmatprep.mubr.msk.f32.mxu0 %vm52_vm1, %v47_v36  ;;  %434 = vmatpush1.msra.mxu0 %v919_v12 }
  0x47   :  { %598 = vmatpush1.msra.mxu1 %v919_v12  ;;  %163 = vmatmul.mubr.f32.gmra.mxu0 %v46_v37 }
  0x48   :  { %435 = vmatprep.subr.mxu0 %v793_v0  ;;  %599 = vmatprep.subr.mxu1 %v793_v0 }
  0x49   :  { %745 = vmatprep.mubr.msk.f32.mxu1 %vm52_vm1, %v735_v38  ;;  %436 = vmatpush1.msra.mxu0 %v928_v13 }
  0x4a   :  { %600 = vmatpush1.msra.mxu1 %v928_v13  ;;  %437 = vmatprep.subr.mxu0 %v793_v0 }
  0x4b   :  { %332 = vmatmul.mubr.f32.gmra.mxu1 %v734_v39  ;;  %601 = vmatprep.subr.mxu1 %v793_v0 }
  0x4c   :  { %722 = vmatprep.mubr.msk.f32.mxu0 %vm52_vm1, %v49_v40  ;;  %438 = vmatpush1.msra.mxu0 %v937_v14  ;;  %v1282_v40 = vld [vmem:[%s1374_s3] ss:$0 sm:$0xff] }
  0x4d   :  { %602 = vmatpush1.msra.mxu1 %v937_v14  ;;  %168 = vmatmul.mubr.f32.gmra.mxu0 %v48_v41 }
  0x4e   :  { %439 = vmatprep.subr.mxu0 %v793_v0  ;;  %603 = vmatprep.subr.mxu1 %v793_v0 }
  0x4f   :  { %746 = vmatprep.mubr.msk.f32.mxu1 %vm52_vm1, %v737_v42  ;;  %440 = vmatpush1.msra.mxu0 %v946_v15 }
  0x50   :  { %604 = vmatpush1.msra.mxu1 %v946_v15  ;;  %441 = vmatprep.subr.mxu0 %v793_v0 }
  0x51   :  { %337 = vmatmul.mubr.f32.gmra.mxu1 %v736_v43  ;;  %605 = vmatprep.subr.mxu1 %v793_v0 }
  0x52   :  { %723 = vmatprep.mubr.msk.f32.mxu0 %vm52_vm1, %v51_v44  ;;  %442 = vmatpush1.msra.mxu0 %v955_v16 }
  0x53   :  { %606 = vmatpush1.msra.mxu1 %v955_v16  ;;  %173 = vmatmul.mubr.f32.gmra.mxu0 %v50_v45 }
  0x54   :  { %469 = vmatprep.subr.mxu0 %v793_v0  ;;  %633 = vmatprep.subr.mxu1 %v793_v0 }
  0x55   :  { %747 = vmatprep.mubr.msk.f32.mxu1 %vm52_vm1, %v739_v46  ;;  %762 = vmatpush2.msk.msra.mxu0 %vm74_vm0, %v964_v17 }
  0x56   :  { %784 = vmatpush2.msk.msra.mxu1 %vm74_vm0, %v964_v17  ;;  %471 = vmatprep.subr.mxu0 %v793_v0 }
  0x57   :  { %342 = vmatmul.mubr.f32.gmra.mxu1 %v738_v47  ;;  %635 = vmatprep.subr.mxu1 %v793_v0 }
  0x58   :  { %472 = vmatpush2.msra.mxu0 %v973_v18  ;;  %636 = vmatpush2.msra.mxu1 %v973_v18 }
  0x59   :  { %473 = vmatprep.subr.mxu0 %v793_v0  ;;  %637 = vmatprep.subr.mxu1 %v793_v0  ;;  %v757_v0 = vld [vmem:[%s1372_s0 + $0x128] sm:$0xff] }
  0x5a   :  { %474 = vmatpush2.msra.mxu0 %v984_v19  ;;  %763 = vmatprep.mubr.msk.f32.mxu0 %vm52_vm1, %v749_v48 }
  0x5b   :  { %638 = vmatpush2.msra.mxu1 %v984_v19  ;;  %785 = vmatprep.mubr.msk.f32.mxu1 %vm52_vm1, %v771_v49 }
  0x5c   :  { %476 = vmatmul.mubr.f32.vlgmr.msra.gmra.mxu0 %v748_v50  ;;  %640 = vmatmul.mubr.f32.vlgmr.msra.gmra.mxu1 %v770_v51 }
  0x5d   :  { %764 = vmatprep.mubr.msk.f32.mxu0 %vm52_vm1, %v751_v52  ;;  %786 = vmatprep.mubr.msk.f32.mxu1 %vm52_vm1, %v773_v53 }
  0x60   :  { %481 = vmatmul.mubr.f32.gmra.mxu0 %v750_v54  ;;  %645 = vmatmul.mubr.f32.gmra.mxu1 %v772_v55 }
  0x61   :  { %765 = vmatprep.mubr.msk.f32.mxu0 %vm52_vm1, %v753_v56  ;;  %787 = vmatprep.mubr.msk.f32.mxu1 %vm52_vm1, %v775_v57 }
  0x64   :  { %486 = vmatmul.mubr.f32.gmra.mxu0 %v752_v58  ;;  %650 = vmatmul.mubr.f32.gmra.mxu1 %v774_v59 }
  0x65   :  { %766 = vmatprep.mubr.msk.f32.mxu0 %vm52_vm1, %v755_v60  ;;  %788 = vmatprep.mubr.msk.f32.mxu1 %vm52_vm1, %v777_v61 }
  0x68   :  { %491 = vmatmul.mubr.f32.gmra.mxu0 %v754_v62  ;;  %655 = vmatmul.mubr.f32.gmra.mxu1 %v776_v63 }
  0x69   :  { %767 = vmatprep.mubr.msk.f32.mxu0 %vm52_vm1, %v757_v0  ;;  %789 = vmatprep.mubr.msk.f32.mxu1 %vm52_vm1, %v779_v1 }
  0x6c   :  { %496 = vmatmul.mubr.f32.gmra.mxu0 %v756_v2  ;;  %660 = vmatmul.mubr.f32.gmra.mxu1 %v778_v3 }
  0x6d   :  { %768 = vmatprep.mubr.msk.f32.mxu0 %vm52_vm1, %v759_v4  ;;  %790 = vmatprep.mubr.msk.f32.mxu1 %vm52_vm1, %v781_v5 }
  0x70   :  { %501 = vmatmul.mubr.f32.gmra.mxu0 %v758_v6  ;;  %665 = vmatmul.mubr.f32.gmra.mxu1 %v780_v7 }
  0x71   :  { %769 = vmatprep.mubr.msk.f32.mxu0 %vm52_vm1, %v761_v8  ;;  %791 = vmatprep.mubr.msk.f32.mxu1 %vm52_vm1, %v783_v9 }
  0x74   :  { %506 = vmatmul.mubr.f32.gmra.mxu0 %v760_v10  ;;  %670 = vmatmul.mubr.f32.gmra.mxu1 %v782_v11 }
  0xe7   :  { %v144_v12 = vpop.f32.mrf.mxu0 }
  0xe8   :  { %v184_v36 = vmul.f32 %v1271_v34, %v144_v12 }
  0xe9   :  { %v313_v13 = vpop.f32.mrf.mxu1  ;;  %v146_v14 = vpop.f32.mrf.mxu0 }
  0xea   :  { %v347_v37 = vmul.f32 %v1271_v34, %v313_v13  ;;  %v197_v42 = vadd.f32 %v1282_v40, %v184_v36 }
  0xeb   :  { %v315_v15 = vpop.f32.mrf.mxu1 }
  0xec   :  { %v354_v43 = vadd.f32 %v1282_v40, %v347_v37  ;;  %v204_v49 = vmax.f32 %v197_v42, 0.0 }
  0xee   :  { %v361_v50 = vmax.f32 %v354_v43, 0.0 }
  0xf0   :  { %v368_v61 = vmax.f32 %v204_v49, %v361_v50 }
  0xf5   :  { %v149_v16 = vpop.f32.mrf.mxu0 }
  0xf6   :  { %v185_v45 = vmul.f32 %v1271_v34, %v149_v16 }
  0xf7   :  { %v151_v17 = vpop.f32.mrf.mxu0 }
  0xf8   :  { %v198_v52 = vadd.f32 %v1282_v40, %v185_v45 }
  0xf9   :  { %v318_v18 = vpop.f32.mrf.mxu1 }
  0xfa   :  { %v348_v46 = vmul.f32 %v1271_v34, %v318_v18  ;;  %v205_v1 = vmax.f32 %v198_v52, 0.0 }
  0xfb   :  { %v154_v19 = vpop.f32.mrf.mxu0  ;;  %v320_v20 = vpop.f32.mrf.mxu1 }
  0xfc   :  { %v186_v48 = vmul.f32 %v1271_v34, %v154_v19  ;;  %v355_v53 = vadd.f32 %v1282_v40, %v348_v46 }
  0xfd   :  { %v156_v21 = vpop.f32.mrf.mxu0 }
  0xfe   :  { %v199_v58 = vadd.f32 %v1282_v40, %v186_v48  ;;  %v362_v2 = vmax.f32 %v355_v53, 0.0 }
  0xff   :  { %v323_v22 = vpop.f32.mrf.mxu1 }
 0x100   :  { %v349_v51 = vmul.f32 %v1271_v34, %v323_v22  ;;  %v206_v11 = vmax.f32 %v199_v58, 0.0  ;;  %v369_v20 = vmax.f32 %v205_v1, %v362_v2 }
 0x101   :  { %v159_v23 = vpop.f32.mrf.mxu0  ;;  %v325_v24 = vpop.f32.mrf.mxu1 }
 0x102   :  { %v356_v62 = vadd.f32 %v1282_v40, %v349_v51  ;;  %v187_v3 = vmul.f32 %v1271_v34, %v159_v23 }
 0x103   :  { %v161_v25 = vpop.f32.mrf.mxu0 }
 0x104   :  { %v363_v16 = vmax.f32 %v356_v62, 0.0  ;;  %v200_v21 = vadd.f32 %v1282_v40, %v187_v3 }
 0x105   :  { %v328_v26 = vpop.f32.mrf.mxu1 }
 0x106   :  { %v350_v4 = vmul.f32 %v1271_v34, %v328_v26  ;;  %v370_v37 = vmax.f32 %v206_v11, %v363_v16  ;;  %v207_v43 = vmax.f32 %v200_v21, 0.0 }
 0x107   :  { %v164_v27 = vpop.f32.mrf.mxu0  ;;  %v330_v28 = vpop.f32.mrf.mxu1 }
 0x108   :  { %v188_v12 = vmul.f32 %v1271_v34, %v164_v27  ;;  %v357_v22 = vadd.f32 %v1282_v40, %v350_v4 }
 0x109   :  { %v166_v29 = vpop.f32.mrf.mxu0 }
 0x10a   :  { %v201_v29 = vadd.f32 %v1282_v40, %v188_v12  ;;  %v364_v45 = vmax.f32 %v357_v22, 0.0 }
 0x10b   :  { %v333_v30 = vpop.f32.mrf.mxu1 }
 0x10c   :  { %v351_v13 = vmul.f32 %v1271_v34, %v333_v30  ;;  %v208_v53 = vmax.f32 %v201_v29, 0.0 }
 0x10d   :  { %v1266_v31 = vpop.f32.mrf.mxu0  ;;  %v335_v32 = vpop.f32.mrf.mxu1 }
 0x10e   :  { %v358_v30 = vadd.f32 %v1282_v40, %v351_v13 }
 0x10f   :  { %v171_v33 = vpop.f32.mrf.mxu0 }
 0x111   :  { %v1273_v35 = vpop.f32.mrf.mxu1 }
 0x112   :  { %v352_v46 = vmul.f32 %v1271_v34, %v1273_v35 }
 0x113   :  { %v1277_v38 = vpop.f32.mrf.mxu0  ;;  %v340_v39 = vpop.f32.mrf.mxu1 }
 0x114   :  { %v189_v39 = vmul.f32 %v1271_v34, %v1266_v31  ;;  %v359_v62 = vadd.f32 %v1282_v40, %v352_v46 }
 0x115   :  { %v176_v41 = vpop.f32.mrf.mxu0 }
 0x116   :  { %v202_v58 = vadd.f32 %v1282_v40, %v189_v39  ;;  %v366_v12 = vmax.f32 %v359_v62, 0.0 }
 0x117   :  { %v1286_v44 = vpop.f32.mrf.mxu1 }
 0x118   :  { %v209_v11 = vmax.f32 %v202_v58, 0.0 }
 0x119   :  { %v345_v47 = vpop.f32.mrf.mxu1 }
 0x11c   :  { %v477_v54 = vpop.f32.mrf.mxu0  ;;  %v641_v55 = vpop.f32.mrf.mxu1 }
 0x11d   :  { %v511_v56 = vmul.f32 %v1271_v34, %v477_v54  ;;  %v675_v57 = vmul.f32 %v1271_v34, %v641_v55  ;;  %v365_v54 = vmax.f32 %v358_v30, 0.0 }
 0x11e   :  { %v479_v59 = vpop.f32.mrf.mxu0  ;;  %v643_v60 = vpop.f32.mrf.mxu1 }
 0x11f   :  { %v518_v63 = vadd.f32 %v1282_v40, %v511_v56  ;;  %v682_v0 = vadd.f32 %v1282_v40, %v675_v57 }
 0x120   :  { %v482_v5 = vpop.f32.mrf.mxu0  ;;  %v646_v6 = vpop.f32.mrf.mxu1 }
 0x121   :  { %v525_v7 = vmax.f32 %v518_v63, 0.0  ;;  %v689_v8 = vmax.f32 %v682_v0, 0.0  ;;  %v512_v9 = vmul.f32 %v1271_v34, %v482_v5  ;;  %v676_v10 = vmul.f32 %v1271_v34, %v646_v6 }
 0x122   :  { %v484_v14 = vpop.f32.mrf.mxu0  ;;  %v648_v15 = vpop.f32.mrf.mxu1  ;;  %v190_v63 = vmul.f32 %v1271_v34, %v1277_v38  ;;  %v353_v0 = vmul.f32 %v1271_v34, %v1286_v44 }
 0x123   :  { %v532_v17 = vmax.f32 %v368_v61, %v525_v7  ;;  %v519_v18 = vadd.f32 %v1282_v40, %v512_v9  ;;  %v683_v19 = vadd.f32 %v1282_v40, %v676_v10  ;;  %v371_v61 = vmax.f32 %v207_v43, %v364_v45 }
 0x124   :  { %v487_v23 = vpop.f32.mrf.mxu0  ;;  %v651_v24 = vpop.f32.mrf.mxu1  ;;  %v372_v10 = vmax.f32 %v208_v53, %v365_v54  ;;  %v203_v13 = vadd.f32 %v1282_v40, %v190_v63  ;;  %v360_v14 = vadd.f32 %v1282_v40, %v353_v0 }
 0x125   :  { %v696_v25 = vmax.f32 %v532_v17, %v689_v8  ;;  %v526_v26 = vmax.f32 %v519_v18, 0.0  ;;  %v690_v27 = vmax.f32 %v683_v19, 0.0  ;;  %v513_v28 = vmul.f32 %v1271_v34, %v487_v23 }
 0x126   :  { %v677_v32 = vmul.f32 %v1271_v34, %v651_v24  ;;  %v489_v33 = vpop.f32.mrf.mxu0  ;;  %v653_v36 = vpop.f32.mrf.mxu1  ;;  %v210_v29 = vmax.f32 %v203_v13, 0.0  ;;  %v367_v30 = vmax.f32 %v360_v14, 0.0 }
 0x127   :  { %704 = vst.msk [vmem:[%s1375_s4] sm:$0xff] %vm703_vm2, %v696_v25  ;;  %v533_v41 = vmax.f32 %v369_v20, %v526_v26  ;;  %v520_v42 = vadd.f32 %v1282_v40, %v513_v28  ;;  %v373_v28 = vmax.f32 %v209_v11, %v366_v12 }
 0x128   :  { %v684_v47 = vadd.f32 %v1282_v40, %v677_v32  ;;  %v492_v48 = vpop.f32.mrf.mxu0  ;;  %v656_v49 = vpop.f32.mrf.mxu1 }
 0x129   :  { %v697_v50 = vmax.f32 %v533_v41, %v690_v27  ;;  %v527_v51 = vmax.f32 %v520_v42, 0.0  ;;  %v514_v31 = vmul.f32 %v1271_v34, %v492_v48  ;;  %v678_v52 = vmul.f32 %v1271_v34, %v656_v49 }
 0x12a   :  { %v691_v55 = vmax.f32 %v684_v47, 0.0  ;;  %v494_v56 = vpop.f32.mrf.mxu0  ;;  %v658_v57 = vpop.f32.mrf.mxu1  ;;  %v374_v49 = vmax.f32 %v210_v29, %v367_v30 }
 0x12b   :  { %705 = vst.msk [vmem:[%s1375_s4 + $0x8] sm:$0xff] %vm703_vm2, %v697_v50  ;;  %v534_v35 = vmax.f32 %v370_v37, %v527_v51  ;;  %v521_v59 = vadd.f32 %v1282_v40, %v514_v31  ;;  %v685_v60 = vadd.f32 %v1282_v40, %v678_v52 }
 0x12c   :  { %v497_v1 = vpop.f32.mrf.mxu0  ;;  %v661_v2 = vpop.f32.mrf.mxu1 }
 0x12d   :  { %v698_v3 = vmax.f32 %v534_v35, %v691_v55  ;;  %v528_v4 = vmax.f32 %v521_v59, 0.0  ;;  %v692_v5 = vmax.f32 %v685_v60, 0.0  ;;  %v515_v6 = vmul.f32 %v1271_v34, %v497_v1 }
 0x12e   :  { %v679_v7 = vmul.f32 %v1271_v34, %v661_v2  ;;  %v499_v8 = vpop.f32.mrf.mxu0  ;;  %v663_v9 = vpop.f32.mrf.mxu1 }
 0x12f   :  { %706 = vst.msk [vmem:[%s1375_s4 + $0x10] sm:$0xff] %vm703_vm2, %v698_v3  ;;  %v535_v38 = vmax.f32 %v371_v61, %v528_v4  ;;  %v522_v44 = vadd.f32 %v1282_v40, %v515_v6 }
 0x130   :  { %v686_v15 = vadd.f32 %v1282_v40, %v679_v7  ;;  %v502_v16 = vpop.f32.mrf.mxu0  ;;  %v666_v17 = vpop.f32.mrf.mxu1 }
 0x131   :  { %v699_v18 = vmax.f32 %v535_v38, %v692_v5  ;;  %v529_v19 = vmax.f32 %v522_v44, 0.0  ;;  %v516_v20 = vmul.f32 %v1271_v34, %v502_v16  ;;  %v680_v21 = vmul.f32 %v1271_v34, %v666_v17 }
 0x132   :  { %v693_v22 = vmax.f32 %v686_v15, 0.0  ;;  %v504_v23 = vpop.f32.mrf.mxu0  ;;  %v668_v24 = vpop.f32.mrf.mxu1 }
 0x133   :  { %707 = vst.msk [vmem:[%s1375_s4 + $0x18] sm:$0xff] %vm703_vm2, %v699_v18  ;;  %v536_v25 = vmax.f32 %v372_v10, %v529_v19  ;;  %v523_v26 = vadd.f32 %v1282_v40, %v516_v20  ;;  %v687_v27 = vadd.f32 %v1282_v40, %v680_v21 }
 0x134   :  { %v507_v32 = vpop.f32.mrf.mxu0  ;;  %v671_v33 = vpop.f32.mrf.mxu1 }
 0x135   :  { %v700_v36 = vmax.f32 %v536_v25, %v693_v22  ;;  %v530_v37 = vmax.f32 %v523_v26, 0.0  ;;  %v694_v39 = vmax.f32 %v687_v27, 0.0  ;;  %v517_v41 = vmul.f32 %v1271_v34, %v507_v32 }
 0x136   :  { %v681_v42 = vmul.f32 %v1271_v34, %v671_v33  ;;  %v509_v43 = vpop.f32.mrf.mxu0  ;;  %v673_v45 = vpop.f32.mrf.mxu1 }
 0x137   :  { %708 = vst.msk [vmem:[%s1375_s4 + $0x20] sm:$0xff] %vm703_vm2, %v700_v36  ;;  %v537_v46 = vmax.f32 %v373_v28, %v530_v37  ;;  %v524_v47 = vadd.f32 %v1282_v40, %v517_v41 }
 0x138   :  { %v688_v48 = vadd.f32 %v1282_v40, %v681_v42 }
 0x139   :  { %v701_v50 = vmax.f32 %v537_v46, %v694_v39  ;;  %v531_v51 = vmax.f32 %v524_v47, 0.0 }
 0x13a   :  { %v695_v31 = vmax.f32 %v688_v48, 0.0 }
 0x13b   :  { %709 = vst.msk [vmem:[%s1375_s4 + $0x28] sm:$0xff] %vm703_vm2, %v701_v50  ;;  %v538_v34 = vmax.f32 %v374_v49, %v531_v51 }
 0x13d   :  { %v702_v52 = vmax.f32 %v538_v34, %v695_v31 }
 0x13f   :  { %711 = vst.msk [vmem:[%s1375_s4 + $0x30] sm:$0x3] %vm710_vm3, %v702_v52 }

// kernel: lenet5_forward.5
= control target key start
LH: loop header
LB: loop body
LE: loop exit
PB: predicated region body
PF: predicated region fallthrough
CT: control target
= control target key end

     0   :  { %v614_v3 = vmov 0.0   ;;  %v615_v23 = vmov 1983009808   ;;  %v90_v25 = vlaneseq  ;;  %s947_s0 = inlined_call_operand.vmem [shape: f32[2,400], index: 0, kind: input, shape index: {}]   ;;  %s948_s1 = inlined_call_operand.vmem [shape: f32[400,120], index: 1, kind: input, shape index: {}]   ;;  %s949_s2 = inlined_call_operand.vmem [shape: f32[1,120], index: 2, kind: input, shape index: {}]   ;;  %s950_s3 = inlined_call_operand.vmem [shape: f32[120,84], index: 3, kind: input, shape index: {}]   ;;  %s951_s4 = inlined_call_operand.vmem [shape: f32[1,84], index: 4, kind: input, shape index: {}]   ;;  %s952_s5 = inlined_call_operand.vmem [shape: f32[84,4], index: 5, kind: input, shape index: {}]   ;;  %s953_s6 = inlined_call_operand.vmem [shape: f32[1,4], index: 6, kind: input, shape index: {}]   ;;  %s954_s7 = inlined_call_operand.hbm [shape: f32[2,4], index: 7, kind: output, shape index: {}]  }
   0x1   :  { %v59_v0 = vld [vmem:[%s948_s1 + $0xf8] sm:$0xff]  ;;  %179 = vmatprep.subr.mxu1 %v614_v3  ;;  %v58_v4 = vld [vmem:[%s948_s1 + $0xf0] sm:$0xff]  ;;  %v57_v7 = vld [vmem:[%s948_s1 + $0xe8] sm:$0xff]  ;;  %v88_v24 = vunpack.c.l.s4 %v615_v23 }
   0x2   :  { %v43_v1 = vld [vmem:[%s948_s1 + $0x78] sm:$0xff]  ;;  %466 = vmatprep.subr.mxu0 %v59_v0  ;;  %v42_v5 = vld [vmem:[%s948_s1 + $0x70] sm:$0xff]  ;;  %v41_v8 = vld [vmem:[%s948_s1 + $0x68] sm:$0xff]  ;;  %v91_v33 = vshrl.u32 %v90_v25, 7 }
   0x3   :  { %v75_v2 = vld [vmem:[%s948_s1 + $0x178] sm:$0xff]  ;;  %v74_v6 = vld [vmem:[%s948_s1 + $0x170] sm:$0xff]  ;;  %467 = vmatpush3.msra.mxu0 %v43_v1  ;;  %v73_v9 = vld [vmem:[%s948_s1 + $0x168] sm:$0xff]  ;;  %v89_v32 = vunpack.c.0.s8 %v88_v24 }
   0x4   :  { %180 = vmatpush1.msra.mxu1 %v75_v2  ;;  %468 = vmatprep.subr.mxu0 %v58_v4  ;;  %v56_v10 = vld [vmem:[%s948_s1 + $0xe0] sm:$0xff]  ;;  %v55_v13 = vld [vmem:[%s948_s1 + $0xd8] sm:$0xff]  ;;  %v54_v16 = vld [vmem:[%s948_s1 + $0xd0] sm:$0xff] }
   0x5   :  { %181 = vmatprep.subr.mxu1 %v614_v3  ;;  %469 = vmatpush3.msra.mxu0 %v42_v5  ;;  %v40_v11 = vld [vmem:[%s948_s1 + $0x60] sm:$0xff]  ;;  %v39_v14 = vld [vmem:[%s948_s1 + $0x58] sm:$0xff]  ;;  %v38_v17 = vld [vmem:[%s948_s1 + $0x50] sm:$0xff]  ;;  %v92_v40 = vsub.s32 %v89_v32, %v91_v33 }
   0x6   :  { %182 = vmatpush1.msra.mxu1 %v74_v6  ;;  %470 = vmatprep.subr.mxu0 %v57_v7  ;;  %v72_v12 = vld [vmem:[%s948_s1 + $0x160] sm:$0xff]  ;;  %v71_v15 = vld [vmem:[%s948_s1 + $0x158] sm:$0xff]  ;;  %v70_v18 = vld [vmem:[%s948_s1 + $0x150] sm:$0xff] }
   0x7   :  { %183 = vmatprep.subr.mxu1 %v614_v3  ;;  %471 = vmatpush3.msra.mxu0 %v41_v8  ;;  %v53_v19 = vld [vmem:[%s948_s1 + $0xc8] sm:$0xff]  ;;  %v52_v22 = vld [vmem:[%s948_s1 + $0xc0] sm:$0xff]  ;;  %v51_v28 = vld [vmem:[%s948_s1 + $0xb8] sm:$0xff] }
   0x8   :  { %184 = vmatpush1.msra.mxu1 %v73_v9  ;;  %472 = vmatprep.subr.mxu0 %v56_v10  ;;  %v37_v20 = vld [vmem:[%s948_s1 + $0x48] sm:$0xff]  ;;  %v36_v26 = vld [vmem:[%s948_s1 + $0x40] sm:$0xff]  ;;  %v35_v29 = vld [vmem:[%s948_s1 + $0x38] sm:$0xff] }
   0x9   :  { %185 = vmatprep.subr.mxu1 %v614_v3  ;;  %473 = vmatpush3.msra.mxu0 %v40_v11  ;;  %v69_v21 = vld [vmem:[%s948_s1 + $0x148] sm:$0xff]  ;;  %v68_v27 = vld [vmem:[%s948_s1 + $0x140] sm:$0xff]  ;;  %v67_v30 = vld [vmem:[%s948_s1 + $0x138] sm:$0xff] }
   0xa   :  { %186 = vmatpush1.msra.mxu1 %v72_v12  ;;  %474 = vmatprep.subr.mxu0 %v55_v13  ;;  %v50_v31 = vld [vmem:[%s948_s1 + $0xb0] sm:$0xff]  ;;  %v49_v36 = vld [vmem:[%s948_s1 + $0xa8] sm:$0xff]  ;;  %v48_v39 = vld [vmem:[%s948_s1 + $0xa0] sm:$0xff] }
   0xb   :  { %187 = vmatprep.subr.mxu1 %v614_v3  ;;  %475 = vmatpush3.msra.mxu0 %v39_v14  ;;  %v34_v34 = vld [vmem:[%s948_s1 + $0x30] sm:$0xff]  ;;  %v33_v37 = vld [vmem:[%s948_s1 + $0x28] sm:$0xff] }
   0xc   :  { %188 = vmatpush1.msra.mxu1 %v71_v15  ;;  %476 = vmatprep.subr.mxu0 %v54_v16  ;;  %v66_v35 = vld [vmem:[%s948_s1 + $0x130] sm:$0xff]  ;;  %v65_v38 = vld [vmem:[%s948_s1 + $0x128] sm:$0xff] }
   0xd   :  { %189 = vmatprep.subr.mxu1 %v614_v3  ;;  %477 = vmatpush3.msra.mxu0 %v38_v17 }
   0xe   :  { %190 = vmatpush1.msra.mxu1 %v70_v18  ;;  %478 = vmatprep.subr.mxu0 %v53_v19 }
   0xf   :  { %191 = vmatprep.subr.mxu1 %v614_v3  ;;  %479 = vmatpush3.msra.mxu0 %v37_v20 }
  0x10   :  { %192 = vmatpush1.msra.mxu1 %v69_v21  ;;  %480 = vmatprep.subr.mxu0 %v52_v22 }
  0x11   :  { %193 = vmatprep.subr.mxu1 %v614_v3  ;;  %481 = vmatpush3.msra.mxu0 %v36_v26 }
  0x12   :  { %194 = vmatpush1.msra.mxu1 %v68_v27  ;;  %482 = vmatprep.subr.mxu0 %v51_v28 }
  0x13   :  { %195 = vmatprep.subr.mxu1 %v614_v3  ;;  %483 = vmatpush3.msra.mxu0 %v35_v29 }
  0x14   :  { %196 = vmatpush1.msra.mxu1 %v67_v30  ;;  %484 = vmatprep.subr.mxu0 %v50_v31 }
  0x15   :  { %197 = vmatprep.subr.mxu1 %v614_v3  ;;  %485 = vmatpush3.msra.mxu0 %v34_v34 }
  0x16   :  { %198 = vmatpush1.msra.mxu1 %v66_v35 }
  0x17   :  { %12 = vsyncpa [#allocation3], 0  ;;  %486 = vmatprep.subr.mxu0 %v49_v36  ;;  %199 = vmatprep.subr.mxu1 %v614_v3  ;;  %v32_v41 = vld [vmem:[%s948_s1 + $0x20] sm:$0xff]  ;;  %v47_v44 = vld [vmem:[%s948_s1 + $0x98] sm:$0xff]  ;;  %vm106_vm0 = vcmask 130048   ;;  %vm616_vm1 = vmmov 0  }
  0x18   :  { %v64_v42 = vld [vmem:[%s948_s1 + $0x120] sm:$0xff]  ;;  %487 = vmatpush3.msra.mxu0 %v33_v37  ;;  %200 = vmatpush1.msra.mxu1 %v65_v38  ;;  %v31_v46 = vld [vmem:[%s948_s1 + $0x18] sm:$0xff]  ;;  %v46_v48 = vld [vmem:[%s948_s1 + $0x90] sm:$0xff]  ;;  %vm369_vm2 = vcmask 1043456   ;;  %vm272_vm3 = vcmask 982016   ;;  %vm365_vm4 = vcmask 687104  }
  0x19   :  { %v27_v43 = vld [vmem:[%s947_s0] sm:$0xff]  ;;  %488 = vmatprep.subr.mxu0 %v48_v39  ;;  %201 = vmatprep.subr.mxu1 %v614_v3  ;;  %v63_v47 = vld [vmem:[%s948_s1 + $0x118] sm:$0xff]  ;;  %v30_v50 = vld [vmem:[%s948_s1 + $0x10] sm:$0xff]  ;;  %vm443_vm5 = vcmask 25600  }
  0x1a   :  { %v86_v45 = vcombine.high %v27_v43, %v27_v43  ;;  %489 = vmatpush3.msra.mxu0 %v32_v41  ;;  %202 = vmatpush1.msra.mxu1 %v64_v42  ;;  %v93_v49 = vrot.slane %v27_v43, %v92_v40  ;;  %v62_v51 = vld [vmem:[%s948_s1 + $0x110] sm:$0xff]  ;;  %v45_v52 = vld [vmem:[%s948_s1 + $0x88] sm:$0xff]  ;;  %v44_v56 = vld [vmem:[%s948_s1 + $0x80] sm:$0xff] }
  0x1b   :  { %490 = vmatprep.subr.mxu0 %v47_v44  ;;  %203 = vmatprep.subr.mxu1 %v614_v3  ;;  %v29_v54 = vld [vmem:[%s948_s1 + $0x8] sm:$0xff]  ;;  %v28_v58 = vld [vmem:[%s948_s1] sm:$0xff]  ;;  %v264_v62 = vld [vmem:[%s950_s3 + $0x70] sm:$0xff] }
  0x1c   :  { %491 = vmatpush3.msra.mxu0 %v31_v46  ;;  %204 = vmatpush1.msra.mxu1 %v63_v47  ;;  %v100_v53 = vrot.slane %v86_v45, %v92_v40  ;;  %v61_v55 = vld [vmem:[%s948_s1 + $0x108] sm:$0xff]  ;;  %v101_v57 = vcombine.high %v93_v49, %v93_v49  ;;  %v60_v59 = vld [vmem:[%s948_s1 + $0x100] sm:$0xff]  ;;  %v261_v2 = vld [vmem:[%s950_s3 + $0x58] sm:$0xff] }
  0x1d   :  { %492 = vmatprep.subr.mxu0 %v46_v48  ;;  %205 = vmatprep.subr.mxu1 %v614_v3  ;;  %v77_v61 = vld [vmem:[%s948_s1 + $0x188] sm:$0xff]  ;;  %v76_v63 = vld [vmem:[%s948_s1 + $0x180] sm:$0xff]  ;;  %v260_v4 = vld [vmem:[%s950_s3 + $0x50] sm:$0xff]  ;;  %s617_s1 = smov [#allocation2]  }
  0x1e   :  { %493 = vmatpush3.msra.mxu0 %v30_v50  ;;  %206 = vmatpush1.msra.mxu1 %v62_v51  ;;  %v102_v60 = vcombine.high %v100_v53, %v100_v53  ;;  %v263_v0 = vld [vmem:[%s950_s3 + $0x68] sm:$0xff]  ;;  %v262_v1 = vld [vmem:[%s950_s3 + $0x60] sm:$0xff]  ;;  %v257_v7 = vld [vmem:[%s950_s3 + $0x38] sm:$0xff]  ;;  %s451_s15 = sshll.u32 %s617_s1, 4  ;;  %s452_s15 = int_to_ptr.vmem [resolvable:$true] %s451_s15 }
  0x1f   :  { %494 = vmatprep.subr.mxu0 %v45_v52  ;;  %207 = vmatprep.subr.mxu1 %v614_v3  ;;  %v259_v5 = vld [vmem:[%s950_s3 + $0x48] sm:$0xff]  ;;  %v258_v6 = vld [vmem:[%s950_s3 + $0x40] sm:$0xff]  ;;  %v256_v8 = vld [vmem:[%s950_s3 + $0x30] sm:$0xff]  ;;  %p597_p1 = scmp.lt.s32.totalorder %s452_s15, %s452_s15 }
  0x20   :  { %495 = vmatpush3.msra.mxu0 %v29_v54  ;;  %208 = vmatpush1.msra.mxu1 %v61_v55  ;;  %v255_v9 = vld [vmem:[%s950_s3 + $0x28] sm:$0xff]  ;;  %v254_v10 = vld [vmem:[%s950_s3 + $0x20] sm:$0xff]  ;;  %v253_v11 = vld [vmem:[%s950_s3 + $0x18] sm:$0xff] }
  0x21   :  { %496 = vmatprep.subr.mxu0 %v44_v56  ;;  %209 = vmatprep.subr.mxu1 %v614_v3  ;;  %v252_v12 = vld [vmem:[%s950_s3 + $0x10] sm:$0xff]  ;;  %v251_v13 = vld [vmem:[%s950_s3 + $0x8] sm:$0xff]  ;;  %v250_v14 = vld [vmem:[%s950_s3] sm:$0xff] }
  0x22   :  { %497 = vmatpush3.msra.mxu0 %v28_v58  ;;  %173 = vmatprep.mubr.f32.mxu0 %v101_v57  ;;  %v357_v15 = vld [vmem:[%s952_s5 + $0x50] sm:$0xf]  ;;  %v356_v16 = vld [vmem:[%s952_s5 + $0x48] sm:$0xff]  ;;  %v355_v17 = vld [vmem:[%s952_s5 + $0x40] sm:$0xff] }
  0x23   :  { %210 = vmatpush1.msra.mxu1 %v60_v59  ;;  %174 = vmatmul.mubr.f32.vlgmr.msra.gmra.mxu0 %v93_v49  ;;  %v354_v18 = vld [vmem:[%s952_s5 + $0x38] sm:$0xff]  ;;  %v353_v19 = vld [vmem:[%s952_s5 + $0x30] sm:$0xff]  ;;  %v352_v20 = vld [vmem:[%s952_s5 + $0x28] sm:$0xff] }
  0x24   :  { %239 = vmatprep.subr.mxu1 %v614_v3  ;;  %460 = vmatprep.mubr.msk.f32.mxu1 %vm106_vm0, %v102_v60  ;;  %v351_v21 = vld [vmem:[%s952_s5 + $0x20] sm:$0xff]  ;;  %v350_v22 = vld [vmem:[%s952_s5 + $0x18] sm:$0xff]  ;;  %v349_v32 = vld [vmem:[%s952_s5 + $0x10] sm:$0xff] }
  0x25   :  { %240 = vmatpush2.msra.mxu1 %v77_v61  ;;  %529 = vmatprep.subr.mxu0 %v614_v3  ;;  %v459_v25 = vld [vmem:[%s949_s2] ss:$0 sm:$0xff]  ;;  %v348_v33 = vld [vmem:[%s952_s5 + $0x8] sm:$0xff] }
  0x26   :  { %241 = vmatprep.subr.mxu1 %v614_v3  ;;  %530 = vmatpush3.msra.mxu0 %v264_v62  ;;  %v347_v34 = vld [vmem:[%s952_s5] sm:$0xff]  ;;  %s592_s5 = scalar_lea.vmem %s452_s15, 32 }
  0x27   :  { %242 = vmatpush2.msra.mxu1 %v76_v63  ;;  %531 = vmatprep.subr.mxu0 %v614_v3  ;;  %v461_v35 = vld [vmem:[%s951_s4] ss:$0 sm:$0xff]  ;;  %p593_p0 = scmp.ne.s32.totalorder %s452_s15, %s592_s5  ;;  %p598_p2 = scmp.lt.s32.totalorder %s592_s5, %s592_s5 }
  0x28   :  { %244 = vmatmul.mubr.f32.vlgmr.msra.gmra.mxu1 %v100_v53  ;;  %532 = vmatpush3.msra.mxu0 %v263_v0  ;;  %v463_v40 = vld [vmem:[%s953_s6] ss:$0 sm:$0xff] }
  0x29   :  { %533 = vmatprep.subr.mxu0 %v614_v3  ;;  %562 = vmatprep.subr.mxu1 %v614_v3  ;;  %p599_p3 = por %p598_p2, %p597_p1 }
  0x2a   :  { %534 = vmatpush3.msra.mxu0 %v262_v1  ;;  %559 = vmatprep.mubr.msk.f32.mxu0 %vm616_vm1, %v614_v3 }
  0x2b   :  { %535 = vmatprep.subr.mxu0 %v614_v3  ;;  %584 = vmatprep.mubr.msk.f32.mxu1 %vm616_vm1, %v614_v3  ;;  %p600_p4 = pnand %p599_p3, %p593_p0 }
  0x2c   :  { %536 = vmatpush3.msra.mxu0 %v261_v2  ;;  %563 = vmatpush3.msk.msra.mxu1 %vm369_vm2, %v357_v15 }
  0x2d   :  { %537 = vmatprep.subr.mxu0 %v614_v3  ;;  %564 = vmatprep.subr.mxu1 %v614_v3 }
  0x2e   :  { %538 = vmatpush3.msra.mxu0 %v260_v4  ;;  %565 = vmatpush3.msra.mxu1 %v356_v16 }
  0x2f   :  { %539 = vmatprep.subr.mxu0 %v614_v3  ;;  %566 = vmatprep.subr.mxu1 %v614_v3 }
  0x30   :  { %540 = vmatpush3.msra.mxu0 %v259_v5  ;;  %567 = vmatpush3.msra.mxu1 %v355_v17 }
  0x31   :  { %541 = vmatprep.subr.mxu0 %v614_v3  ;;  %568 = vmatprep.subr.mxu1 %v614_v3 }
  0x32   :  { %542 = vmatpush3.msra.mxu0 %v258_v6  ;;  %569 = vmatpush3.msra.mxu1 %v354_v18 }
  0x33   :  { %543 = vmatprep.subr.mxu0 %v614_v3  ;;  %570 = vmatprep.subr.mxu1 %v614_v3 }
  0x34   :  { %544 = vmatpush3.msra.mxu0 %v257_v7  ;;  %571 = vmatpush3.msra.mxu1 %v353_v19 }
  0x35   :  { %545 = vmatprep.subr.mxu0 %v614_v3  ;;  %572 = vmatprep.subr.mxu1 %v614_v3 }
  0x36   :  { %546 = vmatpush3.msra.mxu0 %v256_v8  ;;  %573 = vmatpush3.msra.mxu1 %v352_v20 }
  0x37   :  { %547 = vmatprep.subr.mxu0 %v614_v3  ;;  %574 = vmatprep.subr.mxu1 %v614_v3 }
  0x38   :  { %548 = vmatpush3.msra.mxu0 %v255_v9  ;;  %575 = vmatpush3.msra.mxu1 %v351_v21 }
  0x39   :  { %549 = vmatprep.subr.mxu0 %v614_v3  ;;  %576 = vmatprep.subr.mxu1 %v614_v3 }
  0x3a   :  { %550 = vmatpush3.msra.mxu0 %v254_v10  ;;  %577 = vmatpush3.msra.mxu1 %v350_v22 }
  0x3b   :  { %551 = vmatprep.subr.mxu0 %v614_v3  ;;  %578 = vmatprep.subr.mxu1 %v614_v3 }
  0x3c   :  { %552 = vmatpush3.msra.mxu0 %v253_v11  ;;  %579 = vmatpush3.msra.mxu1 %v349_v32 }
  0x3d   :  { %553 = vmatprep.subr.mxu0 %v614_v3  ;;  %580 = vmatprep.subr.mxu1 %v614_v3 }
  0x3e   :  { %554 = vmatpush3.msra.mxu0 %v252_v12  ;;  %581 = vmatpush3.msra.mxu1 %v348_v33 }
  0x3f   :  { %555 = vmatprep.subr.mxu0 %v614_v3  ;;  %582 = vmatprep.subr.mxu1 %v614_v3 }
  0x40   :  { %556 = vmatpush3.msra.mxu0 %v251_v13  ;;  %583 = vmatpush3.msra.mxu1 %v347_v34 }
  0x41   :  { %557 = vmatprep.subr.mxu0 %v614_v3 }
  0x42   :  { %558 = vmatpush3.msra.mxu0 %v250_v14 }
  0xe3   :  { %v498_v23 = vpop.f32.mrf.mxu0 }
  0xe5   :  { %v499_v24 = vpop.f32.mrf.mxu0 }
  0xe6   :  { %v500_v26 = vadd.f32 %v499_v24, %v498_v23 }
  0xe8   :  { %v176_v27 = vadd.f32 %v500_v26, %v459_v25  ;;  %v245_v28 = vpop.f32.mrf.mxu1 }
  0xea   :  { %v246_v29 = vadd.f32 %v245_v28, %v176_v27  ;;  %v247_v30 = vpop.f32.mrf.mxu1 }
  0xec   :  { %v249_v31 = vmax.f32 %v246_v29, 0.0 }
  0xee   :  { %560 = vmatmul.mubr.msk.f32.vlgmr.msra.gmra.mxu0 %vm272_vm3, %v249_v31 }
 0x1ae   :  { %v342_v36 = vpop.f32.mrf.mxu0 }
 0x1af   :  { %v343_v37 = vadd.f32 %v461_v35, %v342_v36 }
 0x1b0   :  { %v561_v38 = vpop.f32.mrf.mxu0 }
 0x1b1   :  { %v346_v39 = vmax.f32 %v343_v37, 0.0 }
 0x1b3   :  { %585 = vmatmul.mubr.msk.f32.vlgmr.msra.gmra.mxu1 %vm365_vm4, %v346_v39 }
 0x273   :  { %v439_v41 = vpop.f32.mrf.mxu1 }
 0x274   :  { %v440_v3 = vadd.f32 %v463_v40, %v439_v41 }
 0x275   :  { %v586_v42 = vpop.f32.mrf.mxu1 }
 0x276   :  { %444 = vst.msk [vmem:[#allocation2] sm:$0x3] %vm443_vm5, %v440_v3 }
 0x277   :  { %603 = shalt.err (!%p600_p4)
}
 0x278   :  { %454 = dma.vmem_to_hbm [thread:$0]  %s452_s15, 32, %s954_s7, [#allocation3]  }
 0x279   :  { %612 = dma.done.wait [#allocation3], 32  }
 0x27a   :  { %613 = vsyncadd [#allocation3], 4294967264 }
 0x27b   :  { %458 = vsyncpa [#allocation3], 1 }

</bundles_post_ra>
